<compile_context>
chip_gen: v7x
topology: tpu7x:2x2x1
jax: 0.10.0
libtpu: 0.0.40
codegen_flags: <defaults>
</compile_context>

<pallas_src>
import jax
import jax.numpy as jnp
from jax import lax
from jax.experimental import pallas as pl
from jax.experimental.pallas import tpu as pltpu


def basic_block_kernel(x_ref, w1_ref, s1_ref, b1_ref, w2_ref, s2_ref, b2_ref,
                       out_ref, pad_ref, patch_ref):
    """One grid step == one batch element (NHWC, channels padded to Cp).

    x_ref    : (1, H, W, Cp)   input block (compute dtype), padded channels = 0
    w1_ref   : (9*Cp, Cp)      conv1 weights, rows ordered (ky*3+kx, cin)
    s1_ref   : (1, Cp) f32     folded BN1 scale   b1_ref : folded BN1 bias
    w2_ref   : (9*Cp, Cp)      conv2 weights
    s2_ref   : (1, Cp) f32     folded BN2 scale   b2_ref : folded BN2 bias
    out_ref  : (1, H, W, Cp)   output block
    pad_ref  : (H+2, W+2, Cp)  f32 VMEM scratch with a zero halo; holds the
                               spatially-padded input, then the bn1/relu output
    patch_ref: (H*W, 9*Cp)     VMEM scratch: im2col patch matrix (compute dtype)
    """
    H, W, Cp = out_ref.shape[1], out_ref.shape[2], out_ref.shape[3]

    # (Re)zero only the 1-element halo ring; the interior is fully overwritten
    # below.  Done every step, so correctness never depends on grid order or on
    # which TensorCore owns which grid slice.
    pad_ref[0:1, :, :] = jnp.zeros((1, W + 2, Cp), pad_ref.dtype)
    pad_ref[H + 1:H + 2, :, :] = jnp.zeros((1, W + 2, Cp), pad_ref.dtype)
    pad_ref[:, 0:1, :] = jnp.zeros((H + 2, 1, Cp), pad_ref.dtype)
    pad_ref[:, W + 1:W + 2, :] = jnp.zeros((H + 2, 1, Cp), pad_ref.dtype)

    def im2col_into_patches():
        # patch[:, t*Cp:(t+1)*Cp] = window of pad_ref shifted by tap (ky, kx).
        for ky in range(3):
            for kx in range(3):
                t = ky * 3 + kx
                win = pad_ref[ky:ky + H, kx:kx + W, :].reshape(H * W, Cp)
                patch_ref[:, t * Cp:(t + 1) * Cp] = win.astype(patch_ref.dtype)

    # ---- conv1 (3x3, stride 1, pad 1) + bn1 + relu :  one MXU matmul ----
    pad_ref[1:H + 1, 1:W + 1, :] = x_ref[0].astype(pad_ref.dtype)
    im2col_into_patches()
    acc1 = jnp.dot(patch_ref[...], w1_ref[...],
                   preferred_element_type=jnp.float32)           # (H*W, Cp) f32
    out1 = jnp.maximum(acc1 * s1_ref[...] + b1_ref[...], 0.0)

    # ---- conv2 (3x3, stride 1, pad 1) : reuse the same padded scratch ----
    # NOTE: for large H*W (e.g. 3136) the matmul M dim should additionally be
    # tiled to bound live f32 values; at these block sizes it is not needed.
    pad_ref[1:H + 1, 1:W + 1, :] = out1.reshape(H, W, Cp).astype(pad_ref.dtype)
    im2col_into_patches()
    acc2 = jnp.dot(patch_ref[...], w2_ref[...],
                   preferred_element_type=jnp.float32)           # (H*W, Cp) f32

    # ---- bn2 + residual add + relu ----
    ident = x_ref[0].reshape(H * W, Cp).astype(jnp.float32)
    res = jnp.maximum(acc2 * s2_ref[...] + b2_ref[...] + ident, 0.0)
    out_ref[...] = res.reshape(1, H, W, Cp).astype(out_ref.dtype)


def basic_block_pallas(x_nhwc, w1, gamma1, beta1, mean1, var1,
                       w2, gamma2, beta2, mean2, var2,
                       eps=1e-5, compute_dtype=jnp.float32):
    """BasicBlock forward (stride=1, downsample=None) on NHWC input.

    x_nhwc: (N, H, W, C);  w1, w2: (3, 3, Cin, Cout) in HWIO.
    compute_dtype: dtype of the MXU operands (activations / weights / patches);
    accumulation and all elementwise math stay in float32.
    """
    N, H, W, C = x_nhwc.shape
    Cout = w1.shape[-1]
    assert C == Cout, "BasicBlock with downsample=None requires inplanes == planes"
    assert W % 8 == 0, "W should be a multiple of 8 for cheap (H,W,Cp)->(H*W,Cp) reshapes"

    LANES = 128
    Cp = ((C + LANES - 1) // LANES) * LANES      # lane-dense channel padding

    # Fold BN (eval mode, running stats) into per-channel scale / bias.
    s1 = gamma1 / jnp.sqrt(var1 + eps)
    b1 = beta1 - mean1 * s1
    s2 = gamma2 / jnp.sqrt(var2 + eps)
    b2 = beta2 - mean2 * s2

    def pad_c(a):
        return jnp.pad(a, [(0, 0)] * (a.ndim - 1) + [(0, Cp - C)])

    def pack_w(w):   # (3,3,C,C) -> channel-padded, im2col-major (9*Cp, Cp)
        wp = jnp.pad(w, ((0, 0), (0, 0), (0, Cp - C), (0, Cp - C)))
        return wp.reshape(9 * Cp, Cp).astype(compute_dtype)

    xq = pad_c(x_nhwc).astype(compute_dtype)                     # (N, H, W, Cp)
    w1m, w2m = pack_w(w1), pack_w(w2)
    s1p = pad_c(s1).reshape(1, Cp).astype(jnp.float32)
    b1p = pad_c(b1).reshape(1, Cp).astype(jnp.float32)
    s2p = pad_c(s2).reshape(1, Cp).astype(jnp.float32)
    b2p = pad_c(b2).reshape(1, Cp).astype(jnp.float32)

    # Explicit VMEM budget: scratches + double-buffered in/out blocks + weights.
    itemsize = jnp.dtype(compute_dtype).itemsize
    vmem_est = ((H + 2) * (W + 2) * Cp * 4           # padded f32 scratch
                + H * W * 9 * Cp * itemsize          # im2col scratch
                + 2 * 9 * Cp * Cp * itemsize         # both weight matrices
                + 2 * H * W * Cp * itemsize          # input block (double-buffered)
                + 2 * H * W * Cp * 4                 # output block (double-buffered)
                + 4 * Cp * 4)                        # BN scale / bias
    vmem_limit = int(min(48 * 1024 * 1024, 2 * vmem_est + 16 * 1024 * 1024))

    grid_spec = pltpu.PrefetchScalarGridSpec(
        num_scalar_prefetch=0,
        grid=(N,),
        in_specs=[
            pl.BlockSpec((1, H, W, Cp), lambda n: (n, 0, 0, 0)),
            pl.BlockSpec((9 * Cp, Cp), lambda n: (0, 0)),
            pl.BlockSpec((1, Cp), lambda n: (0, 0)),
            pl.BlockSpec((1, Cp), lambda n: (0, 0)),
            pl.BlockSpec((9 * Cp, Cp), lambda n: (0, 0)),
            pl.BlockSpec((1, Cp), lambda n: (0, 0)),
            pl.BlockSpec((1, Cp), lambda n: (0, 0)),
        ],
        out_specs=pl.BlockSpec((1, H, W, Cp), lambda n: (n, 0, 0, 0)),
        scratch_shapes=[
            pltpu.VMEM((H + 2, W + 2, Cp), jnp.float32),
            pltpu.VMEM((H * W, 9 * Cp), compute_dtype),
        ],
    )

    out_padded = pl.pallas_call(
        basic_block_kernel,
        out_shape=jax.ShapeDtypeStruct((N, H, W, Cp), x_nhwc.dtype),
        grid_spec=grid_spec,
        compiler_params=pltpu.CompilerParams(
            dimension_semantics=("parallel",),
            vmem_limit_bytes=vmem_limit),
    )(xq, w1m, s1p, b1p, w2m, s2p, b2p)

    return out_padded[..., :C]


def basic_block_reference(x_nhwc, w1, gamma1, beta1, mean1, var1,
                          w2, gamma2, beta2, mean2, var2, eps=1e-5):
    """Pure-JAX reference (NHWC), for correctness check only."""
    dn = ('NHWC', 'HWIO', 'NHWC')

    def bn(y, g, b, m, v):
        return (y - m) / jnp.sqrt(v + eps) * g + b

    out = lax.conv_general_dilated(x_nhwc, w1, (1, 1), 'SAME',
                                   dimension_numbers=dn)
    out = jax.nn.relu(bn(out, gamma1, beta1, mean1, var1))
    out = lax.conv_general_dilated(out, w2, (1, 1), 'SAME',
                                   dimension_numbers=dn)
    out = bn(out, gamma2, beta2, mean2, var2)
    return jax.nn.relu(out + x_nhwc)


if __name__ == "__main__":
    # Small shapes consistent with BasicBlock(inplanes=8, planes=8, stride=1).
    N, C, Hs, Ws = 2, 8, 16, 16

    key = jax.random.PRNGKey(0)
    ks = jax.random.split(key, 9)

    # Input in PyTorch NCHW convention, transposed to NHWC for the kernel.
    x_nchw = jax.random.normal(ks[0], (N, C, Hs, Ws), jnp.float32)
    x_nhwc = jnp.transpose(x_nchw, (0, 2, 3, 1))

    # Deterministic parameter init (shapes per the module's __init__);
    # conv weights stored here as HWIO (3, 3, Cin, Cout).
    w1 = jax.random.normal(ks[1], (3, 3, C, C), jnp.float32) * 0.1
    w2 = jax.random.normal(ks[2], (3, 3, C, C), jnp.float32) * 0.1
    gamma1 = 1.0 + 0.1 * jax.random.normal(ks[3], (C,), jnp.float32)
    beta1 = 0.1 * jax.random.normal(ks[4], (C,), jnp.float32)
    mean1 = 0.1 * jax.random.normal(ks[5], (C,), jnp.float32)
    var1 = jnp.abs(1.0 + 0.1 * jax.random.normal(ks[6], (C,), jnp.float32))
    gamma2 = 1.0 + 0.1 * jax.random.normal(ks[7], (C,), jnp.float32)
    beta2 = 0.1 * jax.random.normal(ks[8], (C,), jnp.float32)
    mean2 = jnp.zeros((C,), jnp.float32)
    var2 = jnp.ones((C,), jnp.float32)

    ref = basic_block_reference(x_nhwc, w1, gamma1, beta1, mean1, var1,
                                w2, gamma2, beta2, mean2, var2)
    ref = jax.block_until_ready(ref)

    # f32 compute path (bit-faithful to the PyTorch eval-mode forward).
    out_f32 = basic_block_pallas(x_nhwc, w1, gamma1, beta1, mean1, var1,
                                 w2, gamma2, beta2, mean2, var2,
                                 compute_dtype=jnp.float32)
    out_f32 = jax.block_until_ready(out_f32)
    assert out_f32.shape == (N, Hs, Ws, C)
    err_f32 = float(jnp.max(jnp.abs(out_f32 - ref)))
    assert err_f32 < 1e-4, f"f32 max abs err {err_f32}"

    # bf16 MXU-operand path (v6e/v7x-oriented), f32 accumulation + elementwise.
    out_bf16 = basic_block_pallas(x_nhwc, w1, gamma1, beta1, mean1, var1,
                                  w2, gamma2, beta2, mean2, var2,
                                  compute_dtype=jnp.bfloat16)
    out_bf16 = jax.block_until_ready(out_bf16)
    err_bf16 = float(jnp.max(jnp.abs(out_bf16 - ref)))
    assert err_bf16 < 0.25, f"bf16 max abs err {err_bf16}"

    # Back to PyTorch NCHW convention for the final result.
    out_nchw = jnp.transpose(out_f32, (0, 3, 1, 2))
    jax.block_until_ready(out_nchw)

    print("KERNEL_OK")
</pallas_src>

<mosaic_0001>
module attributes {stable_mosaic.version = 11 : i64} {
  func.func @basic_block_kernel(%arg0: i32, %arg1: memref<1x16x16x128xf32, #tpu.memory_space<vmem>>, %arg2: memref<1152x128xf32, #tpu.memory_space<vmem>>, %arg3: memref<1x128xf32, #tpu.memory_space<vmem>>, %arg4: memref<1x128xf32, #tpu.memory_space<vmem>>, %arg5: memref<1152x128xf32, #tpu.memory_space<vmem>>, %arg6: memref<1x128xf32, #tpu.memory_space<vmem>>, %arg7: memref<1x128xf32, #tpu.memory_space<vmem>>, %arg8: memref<1x16x16x128xf32, #tpu.memory_space<vmem>>, %arg9: memref<18x18x128xf32, #tpu.memory_space<vmem>>, %arg10: memref<256x1152xf32, #tpu.memory_space<vmem>>) attributes {dimension_semantics = [#tpu.dimension_semantics<parallel>], iteration_bounds = array<i64: 2>, scalar_prefetch = 0 : i64, scratch_operands = 2 : i64, tpu.core_type = #tpu.core_type<tc>, window_params = [{transform_indices = @transform_0, window_bounds = array<i64: 1, 16, 16, 128>}, {pipeline_mode = #tpu.pipeline_mode<synchronous>, transform_indices = @transform_1, window_bounds = array<i64: 1152, 128>}, {pipeline_mode = #tpu.pipeline_mode<synchronous>, transform_indices = @transform_2, window_bounds = array<i64: 1, 128>}, {pipeline_mode = #tpu.pipeline_mode<synchronous>, transform_indices = @transform_3, window_bounds = array<i64: 1, 128>}, {pipeline_mode = #tpu.pipeline_mode<synchronous>, transform_indices = @transform_4, window_bounds = array<i64: 1152, 128>}, {pipeline_mode = #tpu.pipeline_mode<synchronous>, transform_indices = @transform_5, window_bounds = array<i64: 1, 128>}, {pipeline_mode = #tpu.pipeline_mode<synchronous>, transform_indices = @transform_6, window_bounds = array<i64: 1, 128>}, {transform_indices = @transform_7, window_bounds = array<i64: 1, 16, 16, 128>}]} {
    %cst = arith.constant 0.000000e+00 : f32
    %0 = vector.broadcast %cst : f32 to vector<1x18x128xf32>
    %c0 = arith.constant 0 : index
    %c0_0 = arith.constant 0 : index
    %c0_1 = arith.constant 0 : index
    %1 = vector.load %arg9[%c0, %c0_0, %c0_1] : memref<18x18x128xf32, #tpu.memory_space<vmem>>, vector<1x18x128xf32>
    tpu.vector_store %arg9[%c0, %c0_0, %c0_1], %0 {strides = array<i32>} : memref<18x18x128xf32, #tpu.memory_space<vmem>>, vector<1x18x128xf32>,
    %cst_2 = arith.constant 0.000000e+00 : f32
    %2 = vector.broadcast %cst_2 : f32 to vector<1x18x128xf32>
    %c17 = arith.constant 17 : index
    %c0_3 = arith.constant 0 : index
    %c0_4 = arith.constant 0 : index
    %3 = vector.load %arg9[%c17, %c0_3, %c0_4] : memref<18x18x128xf32, #tpu.memory_space<vmem>>, vector<1x18x128xf32>
    tpu.vector_store %arg9[%c17, %c0_3, %c0_4], %2 {strides = array<i32>} : memref<18x18x128xf32, #tpu.memory_space<vmem>>, vector<1x18x128xf32>,
    %cst_5 = arith.constant 0.000000e+00 : f32
    %4 = vector.broadcast %cst_5 : f32 to vector<18x1x128xf32>
    %c0_6 = arith.constant 0 : index
    %c0_7 = arith.constant 0 : index
    %c0_8 = arith.constant 0 : index
    %5 = vector.load %arg9[%c0_6, %c0_7, %c0_8] : memref<18x18x128xf32, #tpu.memory_space<vmem>>, vector<18x1x128xf32>
    tpu.vector_store %arg9[%c0_6, %c0_7, %c0_8], %4 {strides = array<i32>} : memref<18x18x128xf32, #tpu.memory_space<vmem>>, vector<18x1x128xf32>,
    %cst_9 = arith.constant 0.000000e+00 : f32
    %6 = vector.broadcast %cst_9 : f32 to vector<18x1x128xf32>
    %c0_10 = arith.constant 0 : index
    %c17_11 = arith.constant 17 : index
    %c0_12 = arith.constant 0 : index
    %7 = vector.load %arg9[%c0_10, %c17_11, %c0_12] : memref<18x18x128xf32, #tpu.memory_space<vmem>>, vector<18x1x128xf32>
    tpu.vector_store %arg9[%c0_10, %c17_11, %c0_12], %6 {strides = array<i32>} : memref<18x18x128xf32, #tpu.memory_space<vmem>>, vector<18x1x128xf32>,
    %c0_13 = arith.constant 0 : index
    %c0_14 = arith.constant 0 : index
    %c0_15 = arith.constant 0 : index
    %c0_16 = arith.constant 0 : index
    %8 = vector.load %arg1[%c0_13, %c0_14, %c0_15, %c0_16] : memref<1x16x16x128xf32, #tpu.memory_space<vmem>>, vector<1x16x16x128xf32>
    %9 = vector.shape_cast %8 : vector<1x16x16x128xf32> to vector<16x16x128xf32>
    %c1 = arith.constant 1 : index
    %c1_17 = arith.constant 1 : index
    %c0_18 = arith.constant 0 : index
    %10 = vector.load %arg9[%c1, %c1_17, %c0_18] : memref<18x18x128xf32, #tpu.memory_space<vmem>>, vector<16x16x128xf32>
    tpu.vector_store %arg9[%c1, %c1_17, %c0_18], %9 {strides = array<i32>} : memref<18x18x128xf32, #tpu.memory_space<vmem>>, vector<16x16x128xf32>,
    %c0_19 = arith.constant 0 : index
    %c0_20 = arith.constant 0 : index
    %c0_21 = arith.constant 0 : index
    %11 = vector.load %arg9[%c0_19, %c0_20, %c0_21] : memref<18x18x128xf32, #tpu.memory_space<vmem>>, vector<16x16x128xf32>
    %12 = vector.shape_cast %11 : vector<16x16x128xf32> to vector<256x128xf32>
    %c0_22 = arith.constant 0 : index
    %c0_23 = arith.constant 0 : index
    %13 = vector.load %arg10[%c0_22, %c0_23] : memref<256x1152xf32, #tpu.memory_space<vmem>>, vector<256x128xf32>
    tpu.vector_store %arg10[%c0_22, %c0_23], %12 {strides = array<i32>} : memref<256x1152xf32, #tpu.memory_space<vmem>>, vector<256x128xf32>,
    %c0_24 = arith.constant 0 : index
    %c1_25 = arith.constant 1 : index
    %c0_26 = arith.constant 0 : index
    %14 = vector.load %arg9[%c0_24, %c1_25, %c0_26] : memref<18x18x128xf32, #tpu.memory_space<vmem>>, vector<16x16x128xf32>
    %15 = vector.shape_cast %14 : vector<16x16x128xf32> to vector<256x128xf32>
    %c0_27 = arith.constant 0 : index
    %c128 = arith.constant 128 : index
    %16 = vector.load %arg10[%c0_27, %c128] : memref<256x1152xf32, #tpu.memory_space<vmem>>, vector<256x128xf32>
    tpu.vector_store %arg10[%c0_27, %c128], %15 {strides = array<i32>} : memref<256x1152xf32, #tpu.memory_space<vmem>>, vector<256x128xf32>,
    %c0_28 = arith.constant 0 : index
    %c2 = arith.constant 2 : index
    %c0_29 = arith.constant 0 : index
    %17 = vector.load %arg9[%c0_28, %c2, %c0_29] : memref<18x18x128xf32, #tpu.memory_space<vmem>>, vector<16x16x128xf32>
    %18 = vector.shape_cast %17 : vector<16x16x128xf32> to vector<256x128xf32>
    %c0_30 = arith.constant 0 : index
    %c256 = arith.constant 256 : index
    %19 = vector.load %arg10[%c0_30, %c256] : memref<256x1152xf32, #tpu.memory_space<vmem>>, vector<256x128xf32>
    tpu.vector_store %arg10[%c0_30, %c256], %18 {strides = array<i32>} : memref<256x1152xf32, #tpu.memory_space<vmem>>, vector<256x128xf32>,
    %c1_31 = arith.constant 1 : index
    %c0_32 = arith.constant 0 : index
    %c0_33 = arith.constant 0 : index
    %20 = vector.load %arg9[%c1_31, %c0_32, %c0_33] : memref<18x18x128xf32, #tpu.memory_space<vmem>>, vector<16x16x128xf32>
    %21 = vector.shape_cast %20 : vector<16x16x128xf32> to vector<256x128xf32>
    %c0_34 = arith.constant 0 : index
    %c384 = arith.constant 384 : index
    %22 = vector.load %arg10[%c0_34, %c384] : memref<256x1152xf32, #tpu.memory_space<vmem>>, vector<256x128xf32>
    tpu.vector_store %arg10[%c0_34, %c384], %21 {strides = array<i32>} : memref<256x1152xf32, #tpu.memory_space<vmem>>, vector<256x128xf32>,
    %c1_35 = arith.constant 1 : index
    %c1_36 = arith.constant 1 : index
    %c0_37 = arith.constant 0 : index
    %23 = vector.load %arg9[%c1_35, %c1_36, %c0_37] : memref<18x18x128xf32, #tpu.memory_space<vmem>>, vector<16x16x128xf32>
    %24 = vector.shape_cast %23 : vector<16x16x128xf32> to vector<256x128xf32>
    %c0_38 = arith.constant 0 : index
    %c512 = arith.constant 512 : index
    %25 = vector.load %arg10[%c0_38, %c512] : memref<256x1152xf32, #tpu.memory_space<vmem>>, vector<256x128xf32>
    tpu.vector_store %arg10[%c0_38, %c512], %24 {strides = array<i32>} : memref<256x1152xf32, #tpu.memory_space<vmem>>, vector<256x128xf32>,
    %c1_39 = arith.constant 1 : index
    %c2_40 = arith.constant 2 : index
    %c0_41 = arith.constant 0 : index
    %26 = vector.load %arg9[%c1_39, %c2_40, %c0_41] : memref<18x18x128xf32, #tpu.memory_space<vmem>>, vector<16x16x128xf32>
    %27 = vector.shape_cast %26 : vector<16x16x128xf32> to vector<256x128xf32>
    %c0_42 = arith.constant 0 : index
    %c640 = arith.constant 640 : index
    %28 = vector.load %arg10[%c0_42, %c640] : memref<256x1152xf32, #tpu.memory_space<vmem>>, vector<256x128xf32>
    tpu.vector_store %arg10[%c0_42, %c640], %27 {strides = array<i32>} : memref<256x1152xf32, #tpu.memory_space<vmem>>, vector<256x128xf32>,
    %c2_43 = arith.constant 2 : index
    %c0_44 = arith.constant 0 : index
    %c0_45 = arith.constant 0 : index
    %29 = vector.load %arg9[%c2_43, %c0_44, %c0_45] : memref<18x18x128xf32, #tpu.memory_space<vmem>>, vector<16x16x128xf32>
    %30 = vector.shape_cast %29 : vector<16x16x128xf32> to vector<256x128xf32>
    %c0_46 = arith.constant 0 : index
    %c768 = arith.constant 768 : index
    %31 = vector.load %arg10[%c0_46, %c768] : memref<256x1152xf32, #tpu.memory_space<vmem>>, vector<256x128xf32>
    tpu.vector_store %arg10[%c0_46, %c768], %30 {strides = array<i32>} : memref<256x1152xf32, #tpu.memory_space<vmem>>, vector<256x128xf32>,
    %c2_47 = arith.constant 2 : index
    %c1_48 = arith.constant 1 : index
    %c0_49 = arith.constant 0 : index
    %32 = vector.load %arg9[%c2_47, %c1_48, %c0_49] : memref<18x18x128xf32, #tpu.memory_space<vmem>>, vector<16x16x128xf32>
    %33 = vector.shape_cast %32 : vector<16x16x128xf32> to vector<256x128xf32>
    %c0_50 = arith.constant 0 : index
    %c896 = arith.constant 896 : index
    %34 = vector.load %arg10[%c0_50, %c896] : memref<256x1152xf32, #tpu.memory_space<vmem>>, vector<256x128xf32>
    tpu.vector_store %arg10[%c0_50, %c896], %33 {strides = array<i32>} : memref<256x1152xf32, #tpu.memory_space<vmem>>, vector<256x128xf32>,
    %c2_51 = arith.constant 2 : index
    %c2_52 = arith.constant 2 : index
    %c0_53 = arith.constant 0 : index
    %35 = vector.load %arg9[%c2_51, %c2_52, %c0_53] : memref<18x18x128xf32, #tpu.memory_space<vmem>>, vector<16x16x128xf32>
    %36 = vector.shape_cast %35 : vector<16x16x128xf32> to vector<256x128xf32>
    %c0_54 = arith.constant 0 : index
    %c1024 = arith.constant 1024 : index
    %37 = vector.load %arg10[%c0_54, %c1024] : memref<256x1152xf32, #tpu.memory_space<vmem>>, vector<256x128xf32>
    tpu.vector_store %arg10[%c0_54, %c1024], %36 {strides = array<i32>} : memref<256x1152xf32, #tpu.memory_space<vmem>>, vector<256x128xf32>,
    %c0_55 = arith.constant 0 : index
    %c0_56 = arith.constant 0 : index
    %38 = vector.load %arg10[%c0_55, %c0_56] : memref<256x1152xf32, #tpu.memory_space<vmem>>, vector<256x1152xf32>
    %c0_57 = arith.constant 0 : index
    %c0_58 = arith.constant 0 : index
    %39 = vector.load %arg2[%c0_57, %c0_58] : memref<1152x128xf32, #tpu.memory_space<vmem>>, vector<1152x128xf32>
    %cst_59 = arith.constant dense<0.000000e+00> : vector<256x128xf32>
    %40 = tpu.matmul %38, %39, %cst_59 {dimension_numbers = #tpu.dot_dimension_numbers<[1], [0], [0], [1], [0, 0, 1, 1], [], []>} : vector<256x1152xf32>, vector<1152x128xf32>, vector<256x128xf32> -> vector<256x128xf32>
    %c0_60 = arith.constant 0 : index
    %c0_61 = arith.constant 0 : index
    %41 = vector.load %arg3[%c0_60, %c0_61] : memref<1x128xf32, #tpu.memory_space<vmem>>, vector<1x128xf32>
    %42 = vector.broadcast %41 : vector<1x128xf32> to vector<256x128xf32>
    %43 = arith.mulf %40, %42 : vector<256x128xf32>
    %c0_62 = arith.constant 0 : index
    %c0_63 = arith.constant 0 : index
    %44 = vector.load %arg4[%c0_62, %c0_63] : memref<1x128xf32, #tpu.memory_space<vmem>>, vector<1x128xf32>
    %45 = vector.broadcast %44 : vector<1x128xf32> to vector<256x128xf32>
    %46 = arith.addf %43, %45 : vector<256x128xf32>
    %cst_64 = arith.constant 0.000000e+00 : f32
    %47 = vector.broadcast %cst_64 : f32 to vector<256x128xf32>
    %48 = arith.maximumf %46, %47 : vector<256x128xf32>
    %49 = vector.shape_cast %48 : vector<256x128xf32> to vector<16x16x128xf32>
    %c1_65 = arith.constant 1 : index
    %c1_66 = arith.constant 1 : index
    %c0_67 = arith.constant 0 : index
    %50 = vector.load %arg9[%c1_65, %c1_66, %c0_67] : memref<18x18x128xf32, #tpu.memory_space<vmem>>, vector<16x16x128xf32>
    tpu.vector_store %arg9[%c1_65, %c1_66, %c0_67], %49 {strides = array<i32>} : memref<18x18x128xf32, #tpu.memory_space<vmem>>, vector<16x16x128xf32>,
    %c0_68 = arith.constant 0 : index
    %c0_69 = arith.constant 0 : index
    %c0_70 = arith.constant 0 : index
    %51 = vector.load %arg9[%c0_68, %c0_69, %c0_70] : memref<18x18x128xf32, #tpu.memory_space<vmem>>, vector<16x16x128xf32>
    %52 = vector.shape_cast %51 : vector<16x16x128xf32> to vector<256x128xf32>
    %c0_71 = arith.constant 0 : index
    %c0_72 = arith.constant 0 : index
    %53 = vector.load %arg10[%c0_71, %c0_72] : memref<256x1152xf32, #tpu.memory_space<vmem>>, vector<256x128xf32>
    tpu.vector_store %arg10[%c0_71, %c0_72], %52 {strides = array<i32>} : memref<256x1152xf32, #tpu.memory_space<vmem>>, vector<256x128xf32>,
    %c0_73 = arith.constant 0 : index
    %c1_74 = arith.constant 1 : index
    %c0_75 = arith.constant 0 : index
    %54 = vector.load %arg9[%c0_73, %c1_74, %c0_75] : memref<18x18x128xf32, #tpu.memory_space<vmem>>, vector<16x16x128xf32>
    %55 = vector.shape_cast %54 : vector<16x16x128xf32> to vector<256x128xf32>
    %c0_76 = arith.constant 0 : index
    %c128_77 = arith.constant 128 : index
    %56 = vector.load %arg10[%c0_76, %c128_77] : memref<256x1152xf32, #tpu.memory_space<vmem>>, vector<256x128xf32>
    tpu.vector_store %arg10[%c0_76, %c128_77], %55 {strides = array<i32>} : memref<256x1152xf32, #tpu.memory_space<vmem>>, vector<256x128xf32>,
    %c0_78 = arith.constant 0 : index
    %c2_79 = arith.constant 2 : index
    %c0_80 = arith.constant 0 : index
    %57 = vector.load %arg9[%c0_78, %c2_79, %c0_80] : memref<18x18x128xf32, #tpu.memory_space<vmem>>, vector<16x16x128xf32>
    %58 = vector.shape_cast %57 : vector<16x16x128xf32> to vector<256x128xf32>
    %c0_81 = arith.constant 0 : index
    %c256_82 = arith.constant 256 : index
    %59 = vector.load %arg10[%c0_81, %c256_82] : memref<256x1152xf32, #tpu.memory_space<vmem>>, vector<256x128xf32>
    tpu.vector_store %arg10[%c0_81, %c256_82], %58 {strides = array<i32>} : memref<256x1152xf32, #tpu.memory_space<vmem>>, vector<256x128xf32>,
    %c1_83 = arith.constant 1 : index
    %c0_84 = arith.constant 0 : index
    %c0_85 = arith.constant 0 : index
    %60 = vector.load %arg9[%c1_83, %c0_84, %c0_85] : memref<18x18x128xf32, #tpu.memory_space<vmem>>, vector<16x16x128xf32>
    %61 = vector.shape_cast %60 : vector<16x16x128xf32> to vector<256x128xf32>
    %c0_86 = arith.constant 0 : index
    %c384_87 = arith.constant 384 : index
    %62 = vector.load %arg10[%c0_86, %c384_87] : memref<256x1152xf32, #tpu.memory_space<vmem>>, vector<256x128xf32>
    tpu.vector_store %arg10[%c0_86, %c384_87], %61 {strides = array<i32>} : memref<256x1152xf32, #tpu.memory_space<vmem>>, vector<256x128xf32>,
    %c1_88 = arith.constant 1 : index
    %c1_89 = arith.constant 1 : index
    %c0_90 = arith.constant 0 : index
    %63 = vector.load %arg9[%c1_88, %c1_89, %c0_90] : memref<18x18x128xf32, #tpu.memory_space<vmem>>, vector<16x16x128xf32>
    %64 = vector.shape_cast %63 : vector<16x16x128xf32> to vector<256x128xf32>
    %c0_91 = arith.constant 0 : index
    %c512_92 = arith.constant 512 : index
    %65 = vector.load %arg10[%c0_91, %c512_92] : memref<256x1152xf32, #tpu.memory_space<vmem>>, vector<256x128xf32>
    tpu.vector_store %arg10[%c0_91, %c512_92], %64 {strides = array<i32>} : memref<256x1152xf32, #tpu.memory_space<vmem>>, vector<256x128xf32>,
    %c1_93 = arith.constant 1 : index
    %c2_94 = arith.constant 2 : index
    %c0_95 = arith.constant 0 : index
    %66 = vector.load %arg9[%c1_93, %c2_94, %c0_95] : memref<18x18x128xf32, #tpu.memory_space<vmem>>, vector<16x16x128xf32>
    %67 = vector.shape_cast %66 : vector<16x16x128xf32> to vector<256x128xf32>
    %c0_96 = arith.constant 0 : index
    %c640_97 = arith.constant 640 : index
    %68 = vector.load %arg10[%c0_96, %c640_97] : memref<256x1152xf32, #tpu.memory_space<vmem>>, vector<256x128xf32>
    tpu.vector_store %arg10[%c0_96, %c640_97], %67 {strides = array<i32>} : memref<256x1152xf32, #tpu.memory_space<vmem>>, vector<256x128xf32>,
    %c2_98 = arith.constant 2 : index
    %c0_99 = arith.constant 0 : index
    %c0_100 = arith.constant 0 : index
    %69 = vector.load %arg9[%c2_98, %c0_99, %c0_100] : memref<18x18x128xf32, #tpu.memory_space<vmem>>, vector<16x16x128xf32>
    %70 = vector.shape_cast %69 : vector<16x16x128xf32> to vector<256x128xf32>
    %c0_101 = arith.constant 0 : index
    %c768_102 = arith.constant 768 : index
    %71 = vector.load %arg10[%c0_101, %c768_102] : memref<256x1152xf32, #tpu.memory_space<vmem>>, vector<256x128xf32>
    tpu.vector_store %arg10[%c0_101, %c768_102], %70 {strides = array<i32>} : memref<256x1152xf32, #tpu.memory_space<vmem>>, vector<256x128xf32>,
    %c2_103 = arith.constant 2 : index
    %c1_104 = arith.constant 1 : index
    %c0_105 = arith.constant 0 : index
    %72 = vector.load %arg9[%c2_103, %c1_104, %c0_105] : memref<18x18x128xf32, #tpu.memory_space<vmem>>, vector<16x16x128xf32>
    %73 = vector.shape_cast %72 : vector<16x16x128xf32> to vector<256x128xf32>
    %c0_106 = arith.constant 0 : index
    %c896_107 = arith.constant 896 : index
    %74 = vector.load %arg10[%c0_106, %c896_107] : memref<256x1152xf32, #tpu.memory_space<vmem>>, vector<256x128xf32>
    tpu.vector_store %arg10[%c0_106, %c896_107], %73 {strides = array<i32>} : memref<256x1152xf32, #tpu.memory_space<vmem>>, vector<256x128xf32>,
    %c2_108 = arith.constant 2 : index
    %c2_109 = arith.constant 2 : index
    %c0_110 = arith.constant 0 : index
    %75 = vector.load %arg9[%c2_108, %c2_109, %c0_110] : memref<18x18x128xf32, #tpu.memory_space<vmem>>, vector<16x16x128xf32>
    %76 = vector.shape_cast %75 : vector<16x16x128xf32> to vector<256x128xf32>
    %c0_111 = arith.constant 0 : index
    %c1024_112 = arith.constant 1024 : index
    %77 = vector.load %arg10[%c0_111, %c1024_112] : memref<256x1152xf32, #tpu.memory_space<vmem>>, vector<256x128xf32>
    tpu.vector_store %arg10[%c0_111, %c1024_112], %76 {strides = array<i32>} : memref<256x1152xf32, #tpu.memory_space<vmem>>, vector<256x128xf32>,
    %c0_113 = arith.constant 0 : index
    %c0_114 = arith.constant 0 : index
    %78 = vector.load %arg10[%c0_113, %c0_114] : memref<256x1152xf32, #tpu.memory_space<vmem>>, vector<256x1152xf32>
    %c0_115 = arith.constant 0 : index
    %c0_116 = arith.constant 0 : index
    %79 = vector.load %arg5[%c0_115, %c0_116] : memref<1152x128xf32, #tpu.memory_space<vmem>>, vector<1152x128xf32>
    %cst_117 = arith.constant dense<0.000000e+00> : vector<256x128xf32>
    %80 = tpu.matmul %78, %79, %cst_117 {dimension_numbers = #tpu.dot_dimension_numbers<[1], [0], [0], [1], [0, 0, 1, 1], [], []>} : vector<256x1152xf32>, vector<1152x128xf32>, vector<256x128xf32> -> vector<256x128xf32>
    %c0_118 = arith.constant 0 : index
    %c0_119 = arith.constant 0 : index
    %c0_120 = arith.constant 0 : index
    %c0_121 = arith.constant 0 : index
    %81 = vector.load %arg1[%c0_118, %c0_119, %c0_120, %c0_121] : memref<1x16x16x128xf32, #tpu.memory_space<vmem>>, vector<1x16x16x128xf32>
    %82 = vector.shape_cast %81 : vector<1x16x16x128xf32> to vector<16x16x128xf32>
    %83 = vector.shape_cast %82 : vector<16x16x128xf32> to vector<256x128xf32>
    %c0_122 = arith.constant 0 : index
    %c0_123 = arith.constant 0 : index
    %84 = vector.load %arg6[%c0_122, %c0_123] : memref<1x128xf32, #tpu.memory_space<vmem>>, vector<1x128xf32>
    %85 = vector.broadcast %84 : vector<1x128xf32> to vector<256x128xf32>
    %86 = arith.mulf %80, %85 : vector<256x128xf32>
    %c0_124 = arith.constant 0 : index
    %c0_125 = arith.constant 0 : index
    %87 = vector.load %arg7[%c0_124, %c0_125] : memref<1x128xf32, #tpu.memory_space<vmem>>, vector<1x128xf32>
    %88 = vector.broadcast %87 : vector<1x128xf32> to vector<256x128xf32>
    %89 = arith.addf %86, %88 : vector<256x128xf32>
    %90 = arith.addf %89, %83 : vector<256x128xf32>
    %cst_126 = arith.constant 0.000000e+00 : f32
    %91 = vector.broadcast %cst_126 : f32 to vector<256x128xf32>
    %92 = arith.maximumf %90, %91 : vector<256x128xf32>
    %93 = vector.shape_cast %92 : vector<256x128xf32> to vector<1x16x16x128xf32>
    %c0_127 = arith.constant 0 : index
    %c0_128 = arith.constant 0 : index
    %c0_129 = arith.constant 0 : index
    %c0_130 = arith.constant 0 : index
    %94 = vector.load %arg8[%c0_127, %c0_128, %c0_129, %c0_130] : memref<1x16x16x128xf32, #tpu.memory_space<vmem>>, vector<1x16x16x128xf32>
    tpu.vector_store %arg8[%c0_127, %c0_128, %c0_129, %c0_130], %93 {strides = array<i32>} : memref<1x16x16x128xf32, #tpu.memory_space<vmem>>, vector<1x16x16x128xf32>,
    return
  }
  func.func @transform_0(%arg0: i32) -> (i32, i32, i32, i32) {
    %c0_i32 = arith.constant 0 : i32
    %c0_i32_0 = arith.constant 0 : i32
    %c0_i32_1 = arith.constant 0 : i32
    %c0_i32_2 = arith.constant 0 : i32
    return %arg0, %c0_i32, %c0_i32_0, %c0_i32_1 : i32, i32, i32, i32
  }
  func.func @transform_1(%arg0: i32) -> (i32, i32) {
    %c0_i32 = arith.constant 0 : i32
    %c0_i32_0 = arith.constant 0 : i32
    %c0_i32_1 = arith.constant 0 : i32
    return %c0_i32, %c0_i32_0 : i32, i32
  }
  func.func @transform_2(%arg0: i32) -> (i32, i32) {
    %c0_i32 = arith.constant 0 : i32
    %c0_i32_0 = arith.constant 0 : i32
    %c0_i32_1 = arith.constant 0 : i32
    return %c0_i32, %c0_i32_0 : i32, i32
  }
  func.func @transform_3(%arg0: i32) -> (i32, i32) {
    %c0_i32 = arith.constant 0 : i32
    %c0_i32_0 = arith.constant 0 : i32
    %c0_i32_1 = arith.constant 0 : i32
    return %c0_i32, %c0_i32_0 : i32, i32
  }
  func.func @transform_4(%arg0: i32) -> (i32, i32) {
    %c0_i32 = arith.constant 0 : i32
    %c0_i32_0 = arith.constant 0 : i32
    %c0_i32_1 = arith.constant 0 : i32
    return %c0_i32, %c0_i32_0 : i32, i32
  }
  func.func @transform_5(%arg0: i32) -> (i32, i32) {
    %c0_i32 = arith.constant 0 : i32
    %c0_i32_0 = arith.constant 0 : i32
    %c0_i32_1 = arith.constant 0 : i32
    return %c0_i32, %c0_i32_0 : i32, i32
  }
  func.func @transform_6(%arg0: i32) -> (i32, i32) {
    %c0_i32 = arith.constant 0 : i32
    %c0_i32_0 = arith.constant 0 : i32
    %c0_i32_1 = arith.constant 0 : i32
    return %c0_i32, %c0_i32_0 : i32, i32
  }
  func.func @transform_7(%arg0: i32) -> (i32, i32, i32, i32) {
    %c0_i32 = arith.constant 0 : i32
    %c0_i32_0 = arith.constant 0 : i32
    %c0_i32_1 = arith.constant 0 : i32
    %c0_i32_2 = arith.constant 0 : i32
    return %arg0, %c0_i32, %c0_i32_0, %c0_i32_1 : i32, i32, i32, i32
  }
}

</mosaic_0001>

<bundles_post_ra>
// kernel: tpu_custom_call.1
= control target key start
LH: loop header
LB: loop body
LE: loop exit
PB: predicated region body
PF: predicated region fallthrough
CT: control target
= control target key end

     0   :  { %12 = vsyncpa [#allocation5], 0  ;;  %s8291_s0 = inlined_call_operand.hbm [shape: f32[2,16,16,128], index: 0, kind: input, shape index: {}]   ;;  %s8292_s1 = inlined_call_operand.hbm [shape: f32[1152,128], index: 1, kind: input, shape index: {}]   ;;  %s8293_s2 = inlined_call_operand.vmem [shape: f32[1,128], index: 2, kind: input, shape index: {}]   ;;  %s8294_s3 = inlined_call_operand.vmem [shape: f32[1,128], index: 3, kind: input, shape index: {}]   ;;  %s8295_s4 = inlined_call_operand.hbm [shape: f32[1152,128], index: 4, kind: input, shape index: {}]   ;;  %s8296_s5 = inlined_call_operand.vmem [shape: f32[1,128], index: 5, kind: input, shape index: {}]   ;;  %s8297_s6 = inlined_call_operand.vmem [shape: f32[1,128], index: 6, kind: input, shape index: {}]   ;;  %s8298_s7 = inlined_call_operand.hbm [shape: f32[2,16,16,128], index: 7, kind: output, shape index: {}]  }
   0x1   :  { %14 = vsyncpa [#allocation5 + $0x1], 0 }
   0x2   :  { %15 = vsyncpa [#allocation8], 0 }
   0x3   :  { %16 = vsyncpa [#allocation6], 0 }
   0x4   :  { %18 = vsyncpa [#allocation6 + $0x1], 0  ;;  %s6598_s24 = smov 0   ;;  %s6600_s25 = smov 0  }
   0x5   :  { %s6602_s26 = smov 0   ;;  %s6604_s27 = smov 0  }
   0x6 LB: > { %s6619_s28 = sadd.s32 4294967295, %s6546_s27   ;;  %s5155_s29 = sadd.s32 4294967294, %s6546_s27   ;;  %s6546_s27 = sphi %s6604_s27, %s8386_s27   ;;  %s6542_s26 = sphi %s6602_s26, %s8385_s26   ;;  %s6538_s25 = sphi %s6600_s25, %s8384_s25   ;;  %s6534_s24 = sphi %s6598_s24, %s8383_s24  }
   0x7   : > { %p44_p0 = scmp.ne.s32.totalorder %s6538_s25, %s6534_s24  ;;  %p8299_p1 = scmp.eq.s32.totalorder %s6619_s28, 0 }
   0x8   : > { %p200_p3 = scmp.eq.s32.totalorder %s5155_s29, 1  ;;  %p5156_p5 = scmp.ge.s32.totalorder %s6546_s27, 1 }
   0x9   : > { %p6628_p4 = por %p8299_p1, %p44_p0  ;;  %p207_p7 = scmp.lt.s32.totalorder %s6546_s27, 3 }
   0xa   : > { %p6633_p6 = por %p200_p3, %p44_p0  ;;  %s6548_s10 = smov [#allocation7]  }
   0xb   : > { %s8334_s30 = scalar_select %p6628_p4, 1, 0 }
   0xc   : > { %s8335_s8 = scalar_select %p6633_p6, 1, 0 }
   0xd   : > { %p6638_p8 = pnand %p5156_p5, %p207_p7  ;;  %s219_s11 = sshll.u32 %s6548_s10, 4  ;;  %s6642_s11 = int_to_ptr.vmem [resolvable:$true] %s219_s11 }
   0xe   : > { %s6549_s13 = smov [#allocation9]   ;;  %s6390_s17 = scalar_lea.hbm %s8292_s1, 18432 }
   0xf   : > { %p6295_p9 = pneg %p6638_p8  ;;  %s238_s14 = sshll.u32 %s6549_s13, 4  ;;  %s6653_s14 = int_to_ptr.vmem [resolvable:$true] %s238_s14 }
  0x10   : > { %p6391_p12 = scmp.ne.s32.totalorder %s8292_s1, %s6390_s17  ;;  %p6397_p5 = scmp.lt.u32.totalorder %s6390_s17, %s8292_s1 }
  0x11   : > { %p6649_p11 = pnand %p6295_p9, %p8299_p1 }
  0x13   : > { %p6392_p13 = pneg %p6649_p11 }
  0x15   : > { %p6393_p0 = pnand %p6392_p13, %p6391_p12 }
  0x17   : > { %p6394_p3 = pneg %p6393_p0 }
  0x19   : > { %p6399_p7 = pnand %p6397_p5, %p6394_p3 }
  0x1b   : > { %6402 = shalt.err (!%p6399_p7)
}
  0x1c   : > { %s6403_s22 = scalar_lea.vmem %s6642_s11, 18432  ;;  %p6411_p2 = scmp.lt.s32.totalorder %s6642_s11, %s6642_s11 }
  0x1d   : > { %p6404_p9 = scmp.ne.s32.totalorder %s6642_s11, %s6403_s22  ;;  %p6412_p12 = scmp.lt.s32.totalorder %s6403_s22, %s6403_s22 }
  0x1f   : > { %p6406_p10 = pnand %p6404_p9, %p6392_p13  ;;  %p6413_p0 = por %p6412_p12, %p6411_p2 }
  0x21   : > { %p6407_p1 = pneg %p6406_p10 }
  0x23   : > { %p6414_p6 = pnand %p6413_p0, %p6407_p1 }
  0x25   : > { %6417 = shalt.err (!%p6414_p6)
}
  0x26   : > { %s8300_s23 = smov 128   ;;  %s6551_s29 = smov 8  }
  0x27   : > { %6298 = dma.hbm_to_vmem [thread:$0]  (!%p6649_p11), %s8292_s1, 18432, %s6642_s11, [#allocation8], %s8300_s23, %s8300_s23, %s6551_s29  }
  0x28   : > { %s6418_s17 = scalar_lea.hbm %s8295_s4, 18432 }
  0x29   : > { %p6419_p1 = scmp.ne.s32.totalorder %s8295_s4, %s6418_s17  ;;  %p6425_p10 = scmp.lt.u32.totalorder %s6418_s17, %s8295_s4 }
  0x2b   : > { %p6421_p2 = pnand %p6419_p1, %p6392_p13 }
  0x2d   : > { %p6422_p6 = pneg %p6421_p2 }
  0x2f   : > { %p6427_p3 = pnand %p6425_p10, %p6422_p6 }
  0x31   : > { %6430 = shalt.err (!%p6427_p3)
}
  0x32   : > { %s6431_s11 = scalar_lea.vmem %s6653_s14, 18432  ;;  %p6439_p12 = scmp.lt.s32.totalorder %s6653_s14, %s6653_s14 }
  0x33   : > { %p6432_p5 = scmp.ne.s32.totalorder %s6653_s14, %s6431_s11  ;;  %p6440_p0 = scmp.lt.s32.totalorder %s6431_s11, %s6431_s11 }
  0x35   : > { %p6434_p7 = pnand %p6432_p5, %p6392_p13  ;;  %p6441_p1 = por %p6440_p0, %p6439_p12 }
  0x37   : > { %p6435_p9 = pneg %p6434_p7 }
  0x39   : > { %p6442_p2 = pnand %p6441_p1, %p6435_p9 }
  0x3b   : > { %6445 = shalt.err (!%p6442_p2)
}
  0x3c   : > { %6301 = dma.hbm_to_vmem [thread:$0]  (!%p6649_p11), %s8295_s4, 18432, %s6653_s14, [#allocation8], %s8300_s23, %s8300_s23, %s6551_s29  }
  0x3d   : > { %s6714_s12 = sadd.s32 1, %s6546_s27   ;;  %s31_s13 = sadd.s32 1, %s6542_s26 }
  0x3e   : > { %s28_s15 = ssub.s32 %s6546_s27, %s6714_s12  ;;  %p38_p13 = scmp.ne.s32.totalorder %s6542_s26, %s6538_s25 }
  0x3f   : > { %p29_p6 = scmp.eq.s32.totalorder %s28_s15, 0  ;;  %p39_p10 = scmp.eq.s32.totalorder %s6546_s27, 0 }
  0x40   : > { %p8338_p3 = scmp.eq.s32.totalorder %s6619_s28, 1  ;;  %p6312_p7 = scmp.lt.s32.totalorder %s6546_s27, 2 }
  0x41   : > { %s6730_s17 = scalar_select %p29_p6, %s6542_s26, %s31_s13  }
  0x42   : > { %p6724_p5 = por %p8338_p3, %p38_p13  ;;  %p40_p9 = por %p39_p10, %p38_p13 }
  0x43   : > { %s258_s18 = sand.u32 1, %s6542_s26   ;;  %s5177_s14 = sshll.u32 %s6546_s27, 12 }
  0x44   : > { %s8339_s16 = scalar_select %p6724_p5, 1, 0 }
  0x45   : > { %s5160_s19 = sshll.u32 %s258_s18, 8  ;;  %s6737_s11 = scalar_lea.hbm %s8291_s0, %s5177_s14 }
  0x46   : > { %s262_s22 = scalar_lea.vmem [#allocation4], %s5160_s19  ;;  %p6741_p11 = pnand %p6312_p7, %p40_p9 }
  0x47   : > { %s269_s10 = sshll.u32 %s262_s22, 4  ;;  %s6745_s15 = scalar_lea.sflag [#allocation5], %s258_s18  ;;  %s6739_s10 = int_to_ptr.vmem [resolvable:$true] %s269_s10 }
  0x48   : > { %s6446_s23 = scalar_lea.hbm %s6737_s11, 4096  ;;  %p6448_p0 = pneg %p6741_p11 }
  0x49   : > { %p6447_p12 = scmp.ne.s32.totalorder %s6737_s11, %s6446_s23  ;;  %s6451_s20 = scalar_lea.hbm %s8291_s0, 8192 }
  0x4a   : > { %p6452_p13 = scmp.lt.u32.totalorder %s6737_s11, %s8291_s0  ;;  %p6453_p6 = scmp.lt.u32.totalorder %s6451_s20, %s6446_s23 }
  0x4b   : > { %p6449_p1 = pnand %p6448_p0, %p6447_p12  ;;  %p6455_p3 = scmp.lt.u32.totalorder %s6446_s23, %s6737_s11 }
  0x4c   : > { %p6454_p10 = por %p6453_p6, %p6452_p13 }
  0x4d   : > { %p6450_p2 = pneg %p6449_p1 }
  0x4e   : > { %p6456_p7 = por %p6455_p3, %p6454_p10 }
  0x50   : > { %p6457_p9 = pnand %p6456_p7, %p6450_p2 }
  0x52   : > { %6460 = shalt.err (!%p6457_p9)
}
  0x53   : > { %s6461_s18 = scalar_lea.vmem %s6739_s10, 4096  ;;  %s6552_s19 = smov [#allocation4]  }
  0x54   : > { %p6462_p12 = scmp.ne.s32.totalorder %s6739_s10, %s6461_s18  ;;  %s6466_s14 = sshll.u32 %s6552_s19, 4  ;;  %s6467_s14 = int_to_ptr.vmem [resolvable:$false] %s6466_s14 }
  0x55   : > { %s6468_s21 = scalar_lea.vmem %s6467_s14, 8192  ;;  %p6469_p4 = scmp.lt.s32.totalorder %s6739_s10, %s6467_s14 }
  0x56   : > { %p6464_p1 = pnand %p6462_p12, %p6448_p0  ;;  %p6470_p13 = scmp.lt.s32.totalorder %s6468_s21, %s6461_s18 }
  0x58   : > { %p6465_p5 = pneg %p6464_p1  ;;  %p6471_p6 = por %p6470_p13, %p6469_p4 }
  0x5a   : > { %p6472_p10 = pnand %p6471_p6, %p6465_p5 }
  0x5c   : > { %6475 = shalt.err (!%p6472_p10)
}
  0x5d   : > { %s8341_s23 = smov 128   ;;  %281 = sbr.rel (%p6638_p8) target bundleno = 1540 (0x604), region = 48 }
  0x5e   : > { %6305 = dma.hbm_to_vmem [thread:$0]  (!%p6741_p11), %s6737_s11, 4096, %s6739_s10, %s6745_s15, %s8341_s23, %s8341_s23, %s6551_s29  }
  0x64   : > { %s6779_s20 = sand.u32 1, %s6538_s25   ;;  %p8342_p4 = scmp.ne.s32.totalorder %s8334_s30, 0 }
  0x65   : > { %s5164_s22 = sshll.u32 %s6779_s20, 8  ;;  %s284_s18 = scalar_lea.sflag [#allocation5], %s6779_s20 }
  0x66   : > { %s6785_s13 = scalar_lea.vmem [#allocation4], %s5164_s22 }
  0x67   : > { %6521 = dma.done.wait (%p8342_p4), %s284_s18, 4096  }
  0x68   : > { %6523 = vsyncadd (%p8342_p4), %s284_s18, 4294963200  ;;  %p8343_p5 = scmp.eq.s32.totalorder %s6619_s28, 0 }
  0x6a   : > { %6525 = dma.done.wait (%p8343_p5), [#allocation8], 36864   ;;  %p8344_p8 = pmov %p8343_p5 }
  0x6b   : > { %v8303_v0 = vmov 0.0|0.0   ;;  %v6554_v1 = vmov 0.0   ;;  %v1299_v2 = vld [vmem:[#allocation7] sm:$0xff]  ;;  %v1300_v3 = vld [vmem:[#allocation7 + $0x8] sm:$0xff]  ;;  %v1301_v4 = vld [vmem:[#allocation7 + $0x10] sm:$0xff]  ;;  %s8095_s21 = scalar_lea.vmem [#allocation10], %s5164_s22 }
  0x6c   : > { %6527 = vsyncadd (%p8344_p8), [#allocation8], 4294930432  ;;  %5435 = vmatprep.subr.bf16.mxu0 %v8303_v0  ;;  %326 = vst [vmem:[#allocation2] sm:$0xff] %v6554_v1  ;;  %v5436_v5 = vpack.c.bf16 %v1300_v3, %v1299_v2  ;;  %v1302_v6 = vld [vmem:[#allocation7 + $0x18] sm:$0xff]  ;;  %v1303_v8 = vld [vmem:[#allocation7 + $0x20] sm:$0xff]  ;;  %s5178_s23 = sshll.u32 %s6619_s28, 12 }
  0x6d   : > { %327 = vst [vmem:[#allocation2 + $0x8] sm:$0xff] %v6554_v1  ;;  %328 = vst [vmem:[#allocation2 + $0x10] sm:$0x3] %v6554_v1  ;;  %v5439_v7 = vpack.c.bf16 %v1302_v6, %v1301_v4  ;;  %v1304_v9 = vld [vmem:[#allocation7 + $0x28] sm:$0xff]  ;;  %v1305_v11 = vld [vmem:[#allocation7 + $0x30] sm:$0xff]  ;;  %s5063_s22 = sshll.u32 %s8095_s21, 4  ;;  %s8243_s9 = scalar_lea.hbm %s8298_s7, %s5178_s23  ;;  %s8245_s22 = int_to_ptr.vmem [resolvable:$true] %s5063_s22 }
  0x6e   : > { %330 = vst [vmem:[#allocation2 + $0x198] sm:$0xff] %v6554_v1  ;;  %331 = vst [vmem:[#allocation2 + $0x1a0] sm:$0xff] %v6554_v1  ;;  %5437 = vmatpush1.bf16.msra.mxu0 %v5436_v5  ;;  %v5442_v10 = vpack.c.bf16 %v1304_v9, %v1303_v8  ;;  %v1306_v12 = vld [vmem:[#allocation7 + $0x38] sm:$0xff]  ;;  %v1307_v15 = vld [vmem:[#allocation7 + $0x40] sm:$0xff]  ;;  %s5050_s28 = scalar_lea.sflag [#allocation6], %s6779_s20  ;;  %p8380_p0 = scmp.ne.s32.totalorder %s8339_s16, 0 }
  0x6f   : > { %332 = vst [vmem:[#allocation2 + $0x1a8] sm:$0x3] %v6554_v1  ;;  %334 = vst [vmem:[#allocation2 + $0x18] sm:$0x1] %v6554_v1  ;;  %5438 = vmatprep.subr.bf16.mxu0 %v8303_v0  ;;  %v5445_v14 = vpack.c.bf16 %v1306_v12, %v1305_v11  ;;  %v1308_v16 = vld [vmem:[#allocation7 + $0x48] sm:$0xff]  ;;  %v6842_v17 = vld [vmem:[%s6785_s13] sm:$0xff] }
  0x70   : > { %335 = vst [vmem:[#allocation2 + $0x30] sm:$0x1] %v6554_v1  ;;  %336 = vst [vmem:[#allocation2 + $0x48] sm:$0x1] %v6554_v1  ;;  %v6846_v18 = vld [vmem:[%s6785_s13 + $0x8] sm:$0xff]  ;;  %v6849_v19 = vld [vmem:[%s6785_s13 + $0x10] sm:$0xff]  ;;  %v5448_v21 = vpack.c.bf16 %v1308_v16, %v1307_v15 }
  0x71   : > { %337 = vst [vmem:[#allocation2 + $0x60] sm:$0x1] %v6554_v1  ;;  %338 = vst [vmem:[#allocation2 + $0x78] sm:$0x1] %v6554_v1  ;;  %v6854_v20 = vld [vmem:[%s6785_s13 + $0x18] sm:$0xff]  ;;  %v1309_v22 = vld [vmem:[#allocation7 + $0x50] sm:$0xff] }
  0x72   : > { %339 = vst [vmem:[#allocation2 + $0x90] sm:$0x1] %v6554_v1  ;;  %340 = vst [vmem:[#allocation2 + $0xa8] sm:$0x1] %v6554_v1  ;;  %5440 = vmatpush1.bf16.msra.mxu0 %v5439_v7  ;;  %v6858_v23 = vld [vmem:[%s6785_s13 + $0x20] sm:$0xff]  ;;  %v1310_v24 = vld [vmem:[#allocation7 + $0x58] sm:$0xff] }
  0x73   : > { %341 = vst [vmem:[#allocation2 + $0xc0] sm:$0x1] %v6554_v1  ;;  %342 = vst [vmem:[#allocation2 + $0xd8] sm:$0x1] %v6554_v1  ;;  %5441 = vmatprep.subr.bf16.mxu0 %v8303_v0  ;;  %v6863_v25 = vld [vmem:[%s6785_s13 + $0x28] sm:$0xff]  ;;  %v6866_v26 = vld [vmem:[%s6785_s13 + $0x30] sm:$0xff]  ;;  %v5451_v30 = vpack.c.bf16 %v1310_v24, %v1309_v22 }
  0x74   : > { %343 = vst [vmem:[#allocation2 + $0xf0] sm:$0x1] %v6554_v1  ;;  %344 = vst [vmem:[#allocation2 + $0x108] sm:$0x1] %v6554_v1  ;;  %v498_v13 = vld [vmem:[#allocation2 + $0x1] sm:$0xff]  ;;  %v6874_v28 = vld [vmem:[%s6785_s13 + $0x40] sm:$0xff] }
  0x75   : > { %345 = vst [vmem:[#allocation2 + $0x120] sm:$0x1] %v6554_v1  ;;  %346 = vst [vmem:[#allocation2 + $0x138] sm:$0x1] %v6554_v1  ;;  %1507 = vmatprep.mubr.f32.mxu0 %v498_v13  ;;  %v6871_v27 = vld [vmem:[%s6785_s13 + $0x38] sm:$0xff]  ;;  %v6879_v29 = vld [vmem:[%s6785_s13 + $0x48] sm:$0xff] }
  0x76   : > { %347 = vst [vmem:[#allocation2 + $0x150] sm:$0x1] %v6554_v1  ;;  %348 = vst [vmem:[#allocation2 + $0x168] sm:$0x1] %v6554_v1  ;;  %5443 = vmatpush1.bf16.msra.mxu0 %v5442_v10  ;;  %v1311_v31 = vld [vmem:[#allocation7 + $0x60] sm:$0xff]  ;;  %v6883_v32 = vld [vmem:[%s6785_s13 + $0x50] sm:$0xff] }
  0x77   : > { %349 = vst [vmem:[#allocation2 + $0x180] sm:$0x1] %v6554_v1  ;;  %352 = vst [vmem:[#allocation2 + $0x29] sm:$0x1] %v6554_v1  ;;  %5444 = vmatprep.subr.bf16.mxu0 %v8303_v0  ;;  %v1312_v33 = vld [vmem:[#allocation7 + $0x68] sm:$0xff]  ;;  %v6888_v34 = vld [vmem:[%s6785_s13 + $0x58] sm:$0xff] }
  0x78   : > { %353 = vst [vmem:[#allocation2 + $0x41] sm:$0x1] %v6554_v1  ;;  %354 = vst [vmem:[#allocation2 + $0x59] sm:$0x1] %v6554_v1  ;;  %v6891_v35 = vld [vmem:[%s6785_s13 + $0x60] sm:$0xff]  ;;  %v6896_v36 = vld [vmem:[%s6785_s13 + $0x68] sm:$0xff]  ;;  %v5454_v37 = vpack.c.bf16 %v1312_v33, %v1311_v31 }
  0x79   : > { %355 = vst [vmem:[#allocation2 + $0x71] sm:$0x1] %v6554_v1  ;;  %356 = vst [vmem:[#allocation2 + $0x89] sm:$0x1] %v6554_v1  ;;  %v6900_v38 = vld [vmem:[%s6785_s13 + $0x70] sm:$0xff]  ;;  %v1314_v40 = vld [vmem:[#allocation7 + $0x78] sm:$0xff] }
  0x7a   : > { %357 = vst [vmem:[#allocation2 + $0xa1] sm:$0x1] %v6554_v1  ;;  %358 = vst [vmem:[#allocation2 + $0xb9] sm:$0x1] %v6554_v1  ;;  %5446 = vmatpush1.bf16.msra.mxu0 %v5445_v14  ;;  %v1313_v39 = vld [vmem:[#allocation7 + $0x70] sm:$0xff]  ;;  %v6905_v41 = vld [vmem:[%s6785_s13 + $0x78] sm:$0xff] }
  0x7b   : > { %359 = vst [vmem:[#allocation2 + $0xd1] sm:$0x1] %v6554_v1  ;;  %360 = vst [vmem:[#allocation2 + $0xe9] sm:$0x1] %v6554_v1  ;;  %5447 = vmatprep.subr.bf16.mxu0 %v8303_v0  ;;  %v6909_v42 = vld [vmem:[%s6785_s13 + $0x80] sm:$0xff]  ;;  %v5457_v43 = vpack.c.bf16 %v1314_v40, %v1313_v39  ;;  %v6913_v44 = vld [vmem:[%s6785_s13 + $0x88] sm:$0xff] }
  0x7c   : > { %361 = vst [vmem:[#allocation2 + $0x101] sm:$0x1] %v6554_v1  ;;  %362 = vst [vmem:[#allocation2 + $0x119] sm:$0x1] %v6554_v1  ;;  %v1315_v45 = vld [vmem:[#allocation7 + $0x80] sm:$0xff]  ;;  %v1316_v46 = vld [vmem:[#allocation7 + $0x88] sm:$0xff] }
  0x7d   : > { %363 = vst [vmem:[#allocation2 + $0x131] sm:$0x1] %v6554_v1  ;;  %364 = vst [vmem:[#allocation2 + $0x149] sm:$0x1] %v6554_v1  ;;  %v6918_v47 = vld [vmem:[%s6785_s13 + $0x90] sm:$0xff]  ;;  %v6922_v48 = vld [vmem:[%s6785_s13 + $0x98] sm:$0xff]  ;;  %v5460_v50 = vpack.c.bf16 %v1316_v46, %v1315_v45 }
  0x7e   : > { %365 = vst [vmem:[#allocation2 + $0x161] sm:$0x1] %v6554_v1  ;;  %366 = vst [vmem:[#allocation2 + $0x179] sm:$0x1] %v6554_v1  ;;  %5449 = vmatpush1.bf16.msra.mxu0 %v5448_v21  ;;  %v6926_v49 = vld [vmem:[%s6785_s13 + $0xa0] sm:$0xff]  ;;  %v1317_v51 = vld [vmem:[#allocation7 + $0x90] sm:$0xff] }
  0x7f   : > { %367 = vst [vmem:[#allocation2 + $0x191] sm:$0x1] %v6554_v1  ;;  %333 = vst [vmem:[#allocation2] sm:$0x1] %v6554_v1  ;;  %5450 = vmatprep.subr.bf16.mxu0 %v8303_v0  ;;  %v6930_v52 = vld [vmem:[%s6785_s13 + $0xa8] sm:$0xff]  ;;  %v1318_v53 = vld [vmem:[#allocation7 + $0x98] sm:$0xff] }
  0x80   : > { %350 = vst [vmem:[#allocation2 + $0x198] sm:$0x1] %v6554_v1  ;;  %351 = vst [vmem:[#allocation2 + $0x11] sm:$0x1] %v6554_v1  ;;  %v6935_v54 = vld [vmem:[%s6785_s13 + $0xb0] sm:$0xff]  ;;  %v6938_v55 = vld [vmem:[%s6785_s13 + $0xb8] sm:$0xff]  ;;  %v5463_v57 = vpack.c.bf16 %v1318_v53, %v1317_v51 }
  0x81   : > { %368 = vst [vmem:[#allocation2 + $0x1a9] sm:$0x1] %v6554_v1  ;;  %402 = vst [vmem:[#allocation2 + $0x19] sm:$0xff] %v6842_v17  ;;  %v6943_v56 = vld [vmem:[%s6785_s13 + $0xc0] sm:$0xff]  ;;  %v1320_v59 = vld [vmem:[#allocation7 + $0xa8] sm:$0xff]  ;;  %s6555_s29 = smov [#allocation10]  }
  0x82   : > { %403 = vst [vmem:[#allocation2 + $0x21] sm:$0xff] %v6846_v18  ;;  %404 = vst [vmem:[#allocation2 + $0x31] sm:$0xff] %v6849_v19  ;;  %5452 = vmatpush1.bf16.msra.mxu0 %v5451_v30  ;;  %v1319_v58 = vld [vmem:[#allocation7 + $0xa0] sm:$0xff]  ;;  %v6948_v60 = vld [vmem:[%s6785_s13 + $0xc8] sm:$0xff]  ;;  %s6480_s11 = sshll.u32 %s6555_s29, 4  ;;  %s6481_s11 = int_to_ptr.vmem [resolvable:$false] %s6480_s11 }
  0x83   : > { %405 = vst [vmem:[#allocation2 + $0x39] sm:$0xff] %v6854_v20  ;;  %406 = vst [vmem:[#allocation2 + $0x49] sm:$0xff] %v6858_v23  ;;  %5453 = vmatprep.subr.bf16.mxu0 %v8303_v0  ;;  %v5466_v61 = vpack.c.bf16 %v1320_v59, %v1319_v58  ;;  %v1321_v62 = vld [vmem:[#allocation7 + $0xb0] sm:$0xff]  ;;  %v1322_v63 = vld [vmem:[#allocation7 + $0xb8] sm:$0xff]  ;;  %s6482_s10 = scalar_lea.vmem %s6481_s11, 8192  ;;  %p6483_p7 = scmp.lt.s32.totalorder %s8245_s22, %s6481_s11 }
  0x84   : > { %407 = vst [vmem:[#allocation2 + $0x51] sm:$0xff] %v6863_v25  ;;  %408 = vst [vmem:[#allocation2 + $0x61] sm:$0xff] %v6866_v26  ;;  %v6953_v2 = vld [vmem:[%s6785_s13 + $0xd0] sm:$0xff]  ;;  %v5469_v3 = vpack.c.bf16 %v1322_v63, %v1321_v62  ;;  %v1323_v4 = vld [vmem:[#allocation7 + $0xc0] sm:$0xff] }
  0x85   : > { %409 = vst [vmem:[#allocation2 + $0x69] sm:$0xff] %v6871_v27  ;;  %410 = vst [vmem:[#allocation2 + $0x79] sm:$0xff] %v6874_v28  ;;  %v1324_v5 = vld [vmem:[#allocation7 + $0xc8] sm:$0xff]  ;;  %v6958_v6 = vld [vmem:[%s6785_s13 + $0xd8] sm:$0xff] }
  0x86   : > { %411 = vst [vmem:[#allocation2 + $0x81] sm:$0xff] %v6879_v29  ;;  %412 = vst [vmem:[#allocation2 + $0x91] sm:$0xff] %v6883_v32  ;;  %5455 = vmatpush1.bf16.msra.mxu0 %v5454_v37  ;;  %v5472_v7 = vpack.c.bf16 %v1324_v5, %v1323_v4  ;;  %v1325_v8 = vld [vmem:[#allocation7 + $0xd0] sm:$0xff]  ;;  %v1326_v9 = vld [vmem:[#allocation7 + $0xd8] sm:$0xff] }
  0x87   : > { %413 = vst [vmem:[#allocation2 + $0x99] sm:$0xff] %v6888_v34  ;;  %414 = vst [vmem:[#allocation2 + $0xa9] sm:$0xff] %v6891_v35  ;;  %5456 = vmatprep.subr.bf16.mxu0 %v8303_v0  ;;  %v6963_v10 = vld [vmem:[%s6785_s13 + $0xe0] sm:$0xff]  ;;  %v5475_v11 = vpack.c.bf16 %v1326_v9, %v1325_v8  ;;  %v1328_v13 = vld [vmem:[#allocation7 + $0xe8] sm:$0xff] }
  0x88   : > { %415 = vst [vmem:[#allocation2 + $0xb1] sm:$0xff] %v6896_v36  ;;  %416 = vst [vmem:[#allocation2 + $0xc1] sm:$0xff] %v6900_v38  ;;  %v1327_v12 = vld [vmem:[#allocation7 + $0xe0] sm:$0xff]  ;;  %v6968_v14 = vld [vmem:[%s6785_s13 + $0xe8] sm:$0xff] }
  0x89   : > { %417 = vst [vmem:[#allocation2 + $0xc9] sm:$0xff] %v6905_v41  ;;  %418 = vst [vmem:[#allocation2 + $0xd9] sm:$0xff] %v6909_v42  ;;  %v5478_v15 = vpack.c.bf16 %v1328_v13, %v1327_v12  ;;  %v1329_v16 = vld [vmem:[#allocation7 + $0xf0] sm:$0xff]  ;;  %v1330_v21 = vld [vmem:[#allocation7 + $0xf8] sm:$0xff] }
  0x8a   : > { %419 = vst [vmem:[#allocation2 + $0xe1] sm:$0xff] %v6913_v44  ;;  %420 = vst [vmem:[#allocation2 + $0xf1] sm:$0xff] %v6918_v47  ;;  %5458 = vmatpush1.bf16.msra.mxu0 %v5457_v43  ;;  %v5481_v22 = vpack.c.bf16 %v1330_v21, %v1329_v16  ;;  %v1331_v24 = vld [vmem:[#allocation7 + $0x100] sm:$0xff]  ;;  %v1332_v30 = vld [vmem:[#allocation7 + $0x108] sm:$0xff] }
  0x8b   : > { %421 = vst [vmem:[#allocation2 + $0xf9] sm:$0xff] %v6922_v48  ;;  %422 = vst [vmem:[#allocation2 + $0x109] sm:$0xff] %v6926_v49  ;;  %5459 = vmatprep.subr.bf16.mxu0 %v8303_v0  ;;  %v434_v31 = vld [vmem:[#allocation2] sm:$0xff]  ;;  %v5484_v33 = vpack.c.bf16 %v1332_v30, %v1331_v24  ;;  %v499_v37 = vld [vmem:[#allocation2 + $0x9] sm:$0xff] }
  0x8c   : > { %423 = vst [vmem:[#allocation2 + $0x111] sm:$0xff] %v6930_v52  ;;  %424 = vst [vmem:[#allocation2 + $0x121] sm:$0xff] %v6935_v54  ;;  %v1333_v39 = vld [vmem:[#allocation7 + $0x110] sm:$0xff]  ;;  %v1334_v40 = vld [vmem:[#allocation7 + $0x118] sm:$0xff] }
  0x8d   : > { %425 = vst [vmem:[#allocation2 + $0x129] sm:$0xff] %v6938_v55  ;;  %426 = vst [vmem:[#allocation2 + $0x139] sm:$0xff] %v6943_v56  ;;  %v5487_v43 = vpack.c.bf16 %v1334_v40, %v1333_v39  ;;  %v1335_v45 = vld [vmem:[#allocation7 + $0x120] sm:$0xff]  ;;  %v1336_v46 = vld [vmem:[#allocation7 + $0x128] sm:$0xff] }
  0x8e   : > { %5461 = vmatpush1.bf16.msra.mxu0 %v5460_v50  ;;  %427 = vst [vmem:[#allocation2 + $0x141] sm:$0xff] %v6948_v60  ;;  %428 = vst [vmem:[#allocation2 + $0x151] sm:$0xff] %v6953_v2  ;;  %v6977_v50 = vld [vmem:[#allocation2 + $0x18] sm:$0xff]  ;;  %v5490_v51 = vpack.c.bf16 %v1336_v46, %v1335_v45  ;;  %v1337_v53 = vld [vmem:[#allocation7 + $0x130] sm:$0xff] }
  0x8f   : > { %5462 = vmatprep.subr.bf16.mxu0 %v8303_v0  ;;  %429 = vst [vmem:[#allocation2 + $0x159] sm:$0xff] %v6958_v6  ;;  %430 = vst [vmem:[#allocation2 + $0x169] sm:$0xff] %v6963_v10  ;;  %v6982_v58 = vld [vmem:[#allocation2 + $0x20] sm:$0xff]  ;;  %v6989_v63 = vld [vmem:[#allocation2 + $0x32] sm:$0xff] }
  0x90   : > { %431 = vst [vmem:[#allocation2 + $0x171] sm:$0xff] %v6968_v14  ;;  %5307 = vmatprep.mubr.f32.mxu1 %v6989_v63  ;;  %v6995_v4 = vld [vmem:[#allocation2 + $0x38] sm:$0xff]  ;;  %v1343_v5 = vld [vmem:[#allocation7 + $0x160] sm:$0xff]  ;;  %v7000_v8 = vld [vmem:[#allocation2 + $0x48] sm:$0xff] }
  0x91   : > { %v7005_v12 = vld [vmem:[#allocation2 + $0x50] sm:$0xff]  ;;  %v7010_v16 = vld [vmem:[#allocation2 + $0x60] sm:$0xff]  ;;  %v7015_v24 = vld [vmem:[#allocation2 + $0x68] sm:$0xff] }
  0x92   : > { %5464 = vmatpush1.bf16.msra.mxu0 %v5463_v57  ;;  %v1338_v57 = vld [vmem:[#allocation7 + $0x138] sm:$0xff]  ;;  %v1353_v39 = vld [vmem:[#allocation7 + $0x1b0] sm:$0xff]  ;;  %v1355_v45 = vld [vmem:[#allocation7 + $0x1c0] sm:$0xff] }
  0x93   : > { %5465 = vmatprep.subr.bf16.mxu0 %v8303_v0  ;;  %v5493_v59 = vpack.c.bf16 %v1338_v57, %v1337_v53  ;;  %v7025_v40 = vld [vmem:[#allocation2 + $0x80] sm:$0xff]  ;;  %v7030_v46 = vld [vmem:[#allocation2 + $0x90] sm:$0xff]  ;;  %v7035_v57 = vld [vmem:[#allocation2 + $0x98] sm:$0xff] }
  0x94   : > { %v1357_v53 = vld [vmem:[#allocation7 + $0x1d0] sm:$0xff] }
  0x96   : > { %5467 = vmatpush1.bf16.msra.mxu0 %v5466_v61  ;;  %v6987_v61 = vld [vmem:[#allocation2 + $0x30] sm:$0xff] }
  0x97   : > { %5468 = vmatprep.subr.bf16.mxu0 %v8303_v0 }
  0x9a   : > { %5470 = vmatpush1.bf16.msra.mxu0 %v5469_v3  ;;  %v1342_v3 = vld [vmem:[#allocation7 + $0x158] sm:$0xff] }
  0x9b   : > { %5471 = vmatprep.subr.bf16.mxu0 %v8303_v0 }
  0x9e   : > { %5473 = vmatpush1.bf16.msra.mxu0 %v5472_v7  ;;  %v1344_v7 = vld [vmem:[#allocation7 + $0x168] sm:$0xff] }
  0x9f   : > { %5474 = vmatprep.subr.bf16.mxu0 %v8303_v0  ;;  %v5502_v9 = vpack.c.bf16 %v1344_v7, %v1343_v5  ;;  %v7059_v5 = vld [vmem:[#allocation2 + $0xd8] sm:$0xff]  ;;  %v7067_v7 = vld [vmem:[#allocation2 + $0xf0] sm:$0xff] }
  0xa2   : > { %5476 = vmatpush1.bf16.msra.mxu0 %v5475_v11  ;;  %v1345_v11 = vld [vmem:[#allocation7 + $0x170] sm:$0xff] }
  0xa3   : > { %5477 = vmatprep.subr.bf16.mxu0 %v8303_v0 }
  0xa6   : > { %5479 = vmatpush1.bf16.msra.mxu0 %v5478_v15  ;;  %v1347_v15 = vld [vmem:[#allocation7 + $0x180] sm:$0xff] }
  0xa7   : > { %5480 = vmatprep.subr.bf16.mxu0 %v8303_v0 }
  0xaa   : > { %5482 = vmatpush1.bf16.msra.mxu0 %v5481_v22  ;;  %v1349_v22 = vld [vmem:[#allocation7 + $0x190] sm:$0xff] }
  0xab   : > { %5483 = vmatprep.subr.bf16.mxu0 %v8303_v0 }
  0xad   : > { %1508 = vmatmul.mubr.f32.vlgmr.msra.gmra.mrb[0].mxu0 %v434_v31  ;;  %v1351_v31 = vld [vmem:[#allocation7 + $0x1a0] sm:$0xff] }
  0xae   : > { %5485 = vmatpush1.bf16.msra.mxu0 %v5484_v33  ;;  %1512 = vmatprep.mubr.f32.mxu0 %v499_v37  ;;  %v7020_v33 = vld [vmem:[#allocation2 + $0x78] sm:$0xff] }
  0xaf   : > { %5486 = vmatprep.subr.bf16.mxu0 %v8303_v0 }
  0xb1   : > { %1513 = vmatmul.mubr.f32.gmra.mrb[2].mxu0 %v6554_v1  ;;  %v1339_v1 = vld [vmem:[#allocation7 + $0x140] sm:$0xff] }
  0xb2   : > { %1517 = vmatprep.mubr.f32.mxu0 %v6842_v17  ;;  %5488 = vmatpush1.bf16.msra.mxu0 %v5487_v43  ;;  %v1340_v17 = vld [vmem:[#allocation7 + $0x148] sm:$0xff] }
  0xb3   : > { %5489 = vmatprep.subr.bf16.mxu0 %v8303_v0  ;;  %v5496_v62 = vpack.c.bf16 %v1340_v17, %v1339_v1  ;;  %v1359_v1 = vld [vmem:[#allocation7 + $0x1e0] sm:$0xff]  ;;  %v7040_v17 = vld [vmem:[#allocation2 + $0xa8] sm:$0xff] }
  0xb5   : > { %1518 = vmatmul.mubr.f32.gmra.mrb[4].mxu0 %v6977_v50 }
  0xb6   : > { %1522 = vmatprep.mubr.f32.mxu0 %v6846_v18  ;;  %5491 = vmatpush1.bf16.msra.mxu0 %v5490_v51  ;;  %v1341_v18 = vld [vmem:[#allocation7 + $0x150] sm:$0xff] }
  0xb7   : > { %5492 = vmatprep.subr.bf16.mxu0 %v8303_v0 }
  0xb9   : > { %1523 = vmatmul.mubr.f32.gmra.mrb[6].mxu0 %v6982_v58 }
  0xba   : > { %1527 = vmatprep.mubr.f32.mxu0 %v6849_v19  ;;  %5494 = vmatpush1.bf16.msra.mxu0 %v5493_v59  ;;  %v5499_v19 = vpack.c.bf16 %v1342_v3, %v1341_v18  ;;  %v1361_v18 = vld [vmem:[#allocation7 + $0x1f0] sm:$0xff]  ;;  %v7045_v3 = vld [vmem:[#allocation2 + $0xb0] sm:$0xff] }
  0xbb   : > { %5495 = vmatprep.subr.bf16.mxu0 %v8303_v0 }
  0xbd   : > { %1528 = vmatmul.mubr.f32.gmra.mrb[8].mxu0 %v6987_v61 }
  0xbe   : > { %1532 = vmatprep.mubr.f32.mxu0 %v6854_v20  ;;  %5497 = vmatpush1.bf16.msra.mxu0 %v5496_v62  ;;  %v1346_v20 = vld [vmem:[#allocation7 + $0x178] sm:$0xff] }
  0xbf   : > { %5498 = vmatprep.subr.bf16.mxu0 %v8303_v0  ;;  %v5505_v13 = vpack.c.bf16 %v1346_v20, %v1345_v11  ;;  %v1363_v11 = vld [vmem:[#allocation7 + $0x200] sm:$0xff]  ;;  %v562_v20 = vld [vmem:[#allocation2 + $0x2] sm:$0xff] }
  0xc1   : > { %1533 = vmatmul.mubr.f32.gmra.mrb[10].mxu0 %v6995_v4 }
  0xc2   : > { %1537 = vmatprep.mubr.f32.mxu0 %v6858_v23  ;;  %5500 = vmatpush1.bf16.msra.mxu0 %v5499_v19  ;;  %v1348_v23 = vld [vmem:[#allocation7 + $0x188] sm:$0xff] }
  0xc3   : > { %5501 = vmatprep.subr.bf16.mxu0 %v8303_v0  ;;  %v5508_v21 = vpack.c.bf16 %v1348_v23, %v1347_v15  ;;  %v1365_v15 = vld [vmem:[#allocation7 + $0x210] sm:$0xff]  ;;  %v1366_v23 = vld [vmem:[#allocation7 + $0x218] sm:$0xff] }
  0xc5   : > { %1538 = vmatmul.mubr.f32.gmra.mrb[12].mxu0 %v7000_v8 }
  0xc6   : > { %1542 = vmatprep.mubr.f32.mxu0 %v6863_v25  ;;  %5503 = vmatpush1.bf16.msra.mxu0 %v5502_v9  ;;  %v1350_v25 = vld [vmem:[#allocation7 + $0x198] sm:$0xff] }
  0xc7   : > { %5504 = vmatprep.subr.bf16.mxu0 %v8303_v0  ;;  %v5511_v30 = vpack.c.bf16 %v1350_v25, %v1349_v22  ;;  %v7110_v9 = vld [vmem:[%s6785_s13 + $0xf8] sm:$0xff]  ;;  %v1368_v22 = vld [vmem:[#allocation7 + $0x228] sm:$0xff] }
  0xc8   : > { %433 = vst [vmem:[#allocation2 + $0x189] sm:$0xff] %v7110_v9  ;;  %v7126_v25 = vld [vmem:[#allocation2 + $0x1a] sm:$0xff] }
  0xc9   : > { %1543 = vmatmul.mubr.f32.gmra.mrb[14].mxu0 %v7005_v12 }
  0xca   : > { %1547 = vmatprep.mubr.f32.mxu0 %v6866_v26  ;;  %5506 = vmatpush1.bf16.msra.mxu0 %v5505_v13  ;;  %v1352_v26 = vld [vmem:[#allocation7 + $0x1a8] sm:$0xff] }
  0xcb   : > { %5507 = vmatprep.subr.bf16.mxu0 %v8303_v0  ;;  %v5514_v37 = vpack.c.bf16 %v1352_v26, %v1351_v31  ;;  %v1370_v31 = vld [vmem:[#allocation7 + $0x238] sm:$0xff] }
  0xcd   : > { %1548 = vmatmul.mubr.f32.gmra.mrb[16].mxu0 %v7010_v16 }
  0xce   : > { %1552 = vmatprep.mubr.f32.mxu0 %v6871_v27  ;;  %5509 = vmatpush1.bf16.msra.mxu0 %v5508_v21  ;;  %v1354_v27 = vld [vmem:[#allocation7 + $0x1b8] sm:$0xff]  ;;  %v5535_v21 = vpack.c.bf16 %v1366_v23, %v1365_v15  ;;  %v1385_v15 = vld [vmem:[#allocation7 + $0x2b0] sm:$0xff] }
  0xcf   : > { %5510 = vmatprep.subr.bf16.mxu0 %v8303_v0  ;;  %v5517_v43 = vpack.c.bf16 %v1354_v27, %v1353_v39  ;;  %v1373_v27 = vld [vmem:[#allocation7 + $0x250] sm:$0xff] }
  0xd0   : > { %v7169_v23 = vld [vmem:[#allocation2 + $0x82] sm:$0xff] }
  0xd1   : > { %1553 = vmatmul.mubr.f32.gmra.mrb[18].mxu0 %v7015_v24 }
  0xd2   : > { %1557 = vmatprep.mubr.f32.mxu0 %v6874_v28  ;;  %5512 = vmatpush1.bf16.msra.mxu0 %v5511_v30  ;;  %v1356_v28 = vld [vmem:[#allocation7 + $0x1c8] sm:$0xff]  ;;  %v1369_v30 = vld [vmem:[#allocation7 + $0x230] sm:$0xff] }
  0xd3   : > { %5513 = vmatprep.subr.bf16.mxu0 %v8303_v0  ;;  %v5520_v51 = vpack.c.bf16 %v1356_v28, %v1355_v45  ;;  %v5541_v26 = vpack.c.bf16 %v1370_v31, %v1369_v30  ;;  %v1375_v28 = vld [vmem:[#allocation7 + $0x260] sm:$0xff]  ;;  %v7179_v30 = vld [vmem:[#allocation2 + $0x9a] sm:$0xff] }
  0xd5   : > { %1558 = vmatmul.mubr.f32.gmra.mrb[20].mxu0 %v7020_v33 }
  0xd6   : > { %1562 = vmatprep.mubr.f32.mxu0 %v6879_v29  ;;  %5515 = vmatpush1.bf16.msra.mxu0 %v5514_v37  ;;  %v1358_v29 = vld [vmem:[#allocation7 + $0x1d8] sm:$0xff]  ;;  %v1371_v37 = vld [vmem:[#allocation7 + $0x240] sm:$0xff] }
  0xd7   : > { %5516 = vmatprep.subr.bf16.mxu0 %v8303_v0  ;;  %v5523_v59 = vpack.c.bf16 %v1358_v29, %v1357_v53  ;;  %v1377_v29 = vld [vmem:[#allocation7 + $0x270] sm:$0xff] }
  0xd9   : > { %1563 = vmatmul.mubr.f32.gmra.mrb[22].mxu0 %v7025_v40 }
  0xda   : > { %1567 = vmatprep.mubr.f32.mxu0 %v6883_v32  ;;  %5518 = vmatpush1.bf16.msra.mxu0 %v5517_v43  ;;  %v1360_v32 = vld [vmem:[#allocation7 + $0x1e8] sm:$0xff]  ;;  %v1374_v43 = vld [vmem:[#allocation7 + $0x258] sm:$0xff] }
  0xdb   : > { %5519 = vmatprep.subr.bf16.mxu0 %v8303_v0  ;;  %v5526_v62 = vpack.c.bf16 %v1360_v32, %v1359_v1  ;;  %v5547_v45 = vpack.c.bf16 %v1374_v43, %v1373_v27  ;;  %v1379_v32 = vld [vmem:[#allocation7 + $0x280] sm:$0xff] }
  0xdc   : > { %v7189_v27 = vld [vmem:[#allocation2 + $0xb2] sm:$0xff] }
  0xdd   : > { %1568 = vmatmul.mubr.f32.gmra.mrb[24].mxu0 %v7030_v46 }
  0xde   : > { %1572 = vmatprep.mubr.f32.mxu0 %v6888_v34  ;;  %5521 = vmatpush1.bf16.msra.mxu0 %v5520_v51  ;;  %v1362_v34 = vld [vmem:[#allocation7 + $0x1f8] sm:$0xff]  ;;  %v1376_v51 = vld [vmem:[#allocation7 + $0x268] sm:$0xff] }
  0xdf   : > { %5522 = vmatprep.subr.bf16.mxu0 %v8303_v0  ;;  %v5529_v19 = vpack.c.bf16 %v1362_v34, %v1361_v18  ;;  %v5550_v53 = vpack.c.bf16 %v1376_v51, %v1375_v28  ;;  %v1381_v34 = vld [vmem:[#allocation7 + $0x290] sm:$0xff]  ;;  %v7211_v28 = vld [vmem:[#allocation2 + $0xf2] sm:$0xff] }
  0xe0   : > { %v1428_v51 = vld [vmem:[#allocation7 + $0x408] sm:$0xff] }
  0xe1   : > { %1573 = vmatmul.mubr.f32.gmra.mrb[26].mxu0 %v7035_v57 }
  0xe2   : > { %1577 = vmatprep.mubr.f32.mxu0 %v6891_v35  ;;  %5524 = vmatpush1.bf16.msra.mxu0 %v5523_v59  ;;  %v7050_v35 = vld [vmem:[#allocation2 + $0xc0] sm:$0xff]  ;;  %v7149_v59 = vld [vmem:[#allocation2 + $0x52] sm:$0xff] }
  0xe3   : > { %5525 = vmatprep.subr.bf16.mxu0 %v8303_v0 }
  0xe5   : > { %1578 = vmatmul.mubr.f32.gmra.mrb[28].mxu0 %v7040_v17 }
  0xe6   : > { %1582 = vmatprep.mubr.f32.mxu0 %v6896_v36  ;;  %5527 = vmatpush1.bf16.msra.mxu0 %v5526_v62  ;;  %v7055_v36 = vld [vmem:[#allocation2 + $0xc8] sm:$0xff] }
  0xe7   : > { %5528 = vmatprep.subr.bf16.mxu0 %v8303_v0  ;;  %v7154_v62 = vld [vmem:[#allocation2 + $0x62] sm:$0xff] }
  0xe9   : > { %1583 = vmatmul.mubr.f32.gmra.mrb[30].mxu0 %v7045_v3 }
  0xea   : > { %1587 = vmatprep.mubr.f32.mxu0 %v6900_v38  ;;  %5530 = vmatpush1.bf16.msra.mxu0 %v5529_v19  ;;  %v7063_v38 = vld [vmem:[#allocation2 + $0xe0] sm:$0xff]  ;;  %v7159_v19 = vld [vmem:[#allocation2 + $0x6a] sm:$0xff] }
  0xeb   : > { %5531 = vmatprep.subr.bf16.mxu0 %v8303_v0 }
  0xed   : > { %1588 = vmatmul.mubr.f32.gmra.mrb[32].mxu0 %v7050_v35 }
  0xee   : > { %1592 = vmatprep.mubr.f32.mxu0 %v6905_v41  ;;  %v7071_v41 = vld [vmem:[#allocation2 + $0xf8] sm:$0xff] }
  0xf1   : > { %1593 = vmatmul.mubr.f32.gmra.mrb[34].mxu0 %v7055_v36 }
  0xf2   : > { %1597 = vmatprep.mubr.f32.mxu0 %v6909_v42  ;;  %v7075_v42 = vld [vmem:[#allocation2 + $0x108] sm:$0xff] }
  0xf5   : > { %1598 = vmatmul.mubr.f32.gmra.mrb[36].mxu0 %v7059_v5 }
  0xf6   : > { %1602 = vmatprep.mubr.f32.mxu0 %v6913_v44  ;;  %v7079_v44 = vld [vmem:[#allocation2 + $0x110] sm:$0xff] }
  0xf9   : > { %1603 = vmatmul.mubr.f32.gmra.mrb[38].mxu0 %v7063_v38 }
  0xfa   : > { %1607 = vmatprep.mubr.f32.mxu0 %v6918_v47  ;;  %v7083_v47 = vld [vmem:[#allocation2 + $0x120] sm:$0xff] }
  0xfd   : > { %1608 = vmatmul.mubr.f32.gmra.mrb[40].mxu0 %v7067_v7 }
  0xfe   : > { %1612 = vmatprep.mubr.f32.mxu0 %v6922_v48  ;;  %v7087_v48 = vld [vmem:[#allocation2 + $0x128] sm:$0xff] }
 0x101   : > { %1613 = vmatmul.mubr.f32.gmra.mrb[42].mxu0 %v7071_v41 }
 0x102   : > { %1617 = vmatprep.mubr.f32.mxu0 %v6926_v49  ;;  %v7091_v49 = vld [vmem:[#allocation2 + $0x138] sm:$0xff] }
 0x105   : > { %1618 = vmatmul.mubr.f32.gmra.mrb[44].mxu0 %v7075_v42 }
 0x106   : > { %1622 = vmatprep.mubr.f32.mxu0 %v6930_v52  ;;  %v7095_v52 = vld [vmem:[#allocation2 + $0x140] sm:$0xff] }
 0x109   : > { %1623 = vmatmul.mubr.f32.gmra.mrb[46].mxu0 %v7079_v44 }
 0x10a   : > { %1627 = vmatprep.mubr.f32.mxu0 %v6935_v54  ;;  %v7099_v54 = vld [vmem:[#allocation2 + $0x150] sm:$0xff] }
 0x10d   : > { %1628 = vmatmul.mubr.f32.gmra.mrb[48].mxu0 %v7083_v47 }
 0x10e   : > { %1632 = vmatprep.mubr.f32.mxu0 %v6938_v55  ;;  %v7102_v55 = vld [vmem:[%s6785_s13 + $0xf0] sm:$0xff] }
 0x10f   : > { %432 = vst [vmem:[#allocation2 + $0x181] sm:$0xff] %v7102_v55 }
 0x111   : > { %1633 = vmatmul.mubr.f32.gmra.mrb[50].mxu0 %v7087_v48 }
 0x112   : > { %1637 = vmatprep.mubr.f32.mxu0 %v6943_v56  ;;  %v7107_v56 = vld [vmem:[#allocation2 + $0x158] sm:$0xff] }
 0x115   : > { %1638 = vmatmul.mubr.f32.gmra.mrb[52].mxu0 %v7091_v49 }
 0x116   : > { %1642 = vmatprep.mubr.f32.mxu0 %v6948_v60  ;;  %v7115_v60 = vld [vmem:[#allocation2 + $0x168] sm:$0xff] }
 0x119   : > { %1643 = vmatmul.mubr.f32.gmra.mrb[54].mxu0 %v7095_v52 }
 0x11a   : > { %1647 = vmatprep.mubr.f32.mxu0 %v6953_v2  ;;  %v7119_v2 = vld [vmem:[#allocation2 + $0x170] sm:$0xff] }
 0x11d   : > { %1648 = vmatmul.mubr.f32.gmra.mrb[56].mxu0 %v7099_v54 }
 0x11e   : > { %1652 = vmatprep.mubr.f32.mxu0 %v6958_v6  ;;  %v1364_v6 = vld [vmem:[#allocation7 + $0x208] sm:$0xff] }
 0x11f   : > { %v5532_v13 = vpack.c.bf16 %v1364_v6, %v1363_v11  ;;  %v1383_v6 = vld [vmem:[#allocation7 + $0x2a0] sm:$0xff] }
 0x121   : > { %1653 = vmatmul.mubr.f32.gmra.mrb[58].mxu0 %v7107_v56 }
 0x122   : > { %1657 = vmatprep.mubr.f32.mxu0 %v6963_v10  ;;  %v563_v10 = vld [vmem:[#allocation2 + $0xa] sm:$0xff] }
 0x125   : > { %1658 = vmatmul.mubr.f32.gmra.mrb[60].mxu0 %v7115_v60 }
 0x126   : > { %1662 = vmatprep.mubr.f32.mxu0 %v6968_v14  ;;  %v1367_v14 = vld [vmem:[#allocation7 + $0x220] sm:$0xff] }
 0x129   : > { %1663 = vmatmul.mubr.f32.gmra.mrb[62].mxu0 %v7119_v2 }
 0x12a   : > { %1732 = vmatprep.mubr.f32.mxu0 %v6977_v50  ;;  %v5538_v50 = vpack.c.bf16 %v1368_v22, %v1367_v14  ;;  %v7174_v14 = vld [vmem:[#allocation2 + $0x92] sm:$0xff] }
 0x12d   : > { %1733 = vmatmul.mubr.f32.vlgmr.msra.gmra.mrb[0].mxu0 %v562_v20  ;;  %v7164_v20 = vld [vmem:[#allocation2 + $0x7a] sm:$0xff] }
 0x12e   : > { %5533 = vmatpush1.bf16.msra.mxu0 %v5532_v13  ;;  %1737 = vmatprep.mubr.f32.mxu0 %v6982_v58  ;;  %v7131_v58 = vld [vmem:[#allocation2 + $0x22] sm:$0xff] }
 0x12f   : > { %5534 = vmatprep.subr.bf16.mxu0 %v8303_v0 }
 0x131   : > { %1738 = vmatmul.mubr.f32.gmra.mrb[2].mxu0 %v563_v10 }
 0x132   : > { %1742 = vmatprep.mubr.f32.mxu0 %v6987_v61  ;;  %5536 = vmatpush1.bf16.msra.mxu0 %v5535_v21  ;;  %v1372_v61 = vld [vmem:[#allocation7 + $0x248] sm:$0xff]  ;;  %v1387_v21 = vld [vmem:[#allocation7 + $0x2c0] sm:$0xff] }
 0x133   : > { %5537 = vmatprep.subr.bf16.mxu0 %v8303_v0  ;;  %v5544_v39 = vpack.c.bf16 %v1372_v61, %v1371_v37  ;;  %v7184_v37 = vld [vmem:[#allocation2 + $0xaa] sm:$0xff] }
 0x135   : > { %1743 = vmatmul.mubr.f32.gmra.mrb[4].mxu0 %v7126_v25 }
 0x136   : > { %1747 = vmatprep.mubr.f32.mxu0 %v6995_v4  ;;  %5539 = vmatpush1.bf16.msra.mxu0 %v5538_v50  ;;  %v7139_v4 = vld [vmem:[#allocation2 + $0x3a] sm:$0xff] }
 0x137   : > { %5540 = vmatprep.subr.bf16.mxu0 %v8303_v0  ;;  %v1389_v50 = vld [vmem:[#allocation7 + $0x2d0] sm:$0xff] }
 0x139   : > { %1748 = vmatmul.mubr.f32.gmra.mrb[6].mxu0 %v7131_v58 }
 0x13a   : > { %1752 = vmatprep.mubr.f32.mxu0 %v7000_v8  ;;  %5542 = vmatpush1.bf16.msra.mxu0 %v5541_v26  ;;  %v7144_v8 = vld [vmem:[#allocation2 + $0x4a] sm:$0xff] }
 0x13b   : > { %5543 = vmatprep.subr.bf16.mxu0 %v8303_v0  ;;  %v1391_v26 = vld [vmem:[#allocation7 + $0x2e0] sm:$0xff] }
 0x13d   : > { %1753 = vmatmul.mubr.f32.gmra.mrb[8].mxu0 %v6989_v63 }
 0x13e   : > { %1757 = vmatprep.mubr.f32.mxu0 %v7005_v12  ;;  %5545 = vmatpush1.bf16.msra.mxu0 %v5544_v39  ;;  %v1378_v12 = vld [vmem:[#allocation7 + $0x278] sm:$0xff]  ;;  %v1393_v39 = vld [vmem:[#allocation7 + $0x2f0] sm:$0xff] }
 0x13f   : > { %5546 = vmatprep.subr.bf16.mxu0 %v8303_v0  ;;  %v5553_v1 = vpack.c.bf16 %v1378_v12, %v1377_v29  ;;  %v1430_v29 = vld [vmem:[#allocation7 + $0x418] sm:$0xff] }
 0x141   : > { %1758 = vmatmul.mubr.f32.gmra.mrb[10].mxu0 %v7139_v4 }
 0x142   : > { %1762 = vmatprep.mubr.f32.mxu0 %v7010_v16  ;;  %5548 = vmatpush1.bf16.msra.mxu0 %v5547_v45  ;;  %v1380_v16 = vld [vmem:[#allocation7 + $0x288] sm:$0xff] }
 0x143   : > { %5549 = vmatprep.subr.bf16.mxu0 %v8303_v0  ;;  %v5556_v18 = vpack.c.bf16 %v1380_v16, %v1379_v32  ;;  %v7203_v45 = vld [vmem:[#allocation2 + $0xda] sm:$0xff] }
 0x144   : > { %v1432_v32 = vld [vmem:[#allocation7 + $0x428] sm:$0xff] }
 0x145   : > { %1763 = vmatmul.mubr.f32.gmra.mrb[12].mxu0 %v7144_v8  ;;  %v7235_v16 = vld [vmem:[#allocation2 + $0x13a] sm:$0xff] }
 0x146   : > { %1767 = vmatprep.mubr.f32.mxu0 %v7015_v24  ;;  %5551 = vmatpush1.bf16.msra.mxu0 %v5550_v53  ;;  %v1382_v24 = vld [vmem:[#allocation7 + $0x298] sm:$0xff] }
 0x147   : > { %5552 = vmatprep.subr.bf16.mxu0 %v8303_v0  ;;  %v5559_v11 = vpack.c.bf16 %v1382_v24, %v1381_v34  ;;  %v1434_v34 = vld [vmem:[#allocation7 + $0x438] sm:$0xff] }
 0x148   : > { %v7239_v24 = vld [vmem:[#allocation2 + $0x142] sm:$0xff] }
 0x149   : > { %1768 = vmatmul.mubr.f32.gmra.mrb[14].mxu0 %v7149_v59 }
 0x14a   : > { %1772 = vmatprep.mubr.f32.mxu0 %v7020_v33  ;;  %5554 = vmatpush1.bf16.msra.mxu0 %v5553_v1  ;;  %v1384_v33 = vld [vmem:[#allocation7 + $0x2a8] sm:$0xff]  ;;  %v1431_v1 = vld [vmem:[#allocation7 + $0x420] sm:$0xff] }
 0x14b   : > { %5555 = vmatprep.subr.bf16.mxu0 %v8303_v0  ;;  %v5562_v13 = vpack.c.bf16 %v1384_v33, %v1383_v6  ;;  %v1436_v6 = vld [vmem:[#allocation7 + $0x448] sm:$0xff] }
 0x14c   : > { %v7243_v33 = vld [vmem:[#allocation2 + $0x152] sm:$0xff] }
 0x14d   : > { %1773 = vmatmul.mubr.f32.gmra.mrb[16].mxu0 %v7154_v62 }
 0x14e   : > { %1777 = vmatprep.mubr.f32.mxu0 %v7025_v40  ;;  %5557 = vmatpush1.bf16.msra.mxu0 %v5556_v18  ;;  %v1386_v40 = vld [vmem:[#allocation7 + $0x2b8] sm:$0xff]  ;;  %v1433_v18 = vld [vmem:[#allocation7 + $0x430] sm:$0xff] }
 0x14f   : > { %5558 = vmatprep.subr.bf16.mxu0 %v8303_v0  ;;  %v5565_v10 = vpack.c.bf16 %v1386_v40, %v1385_v15  ;;  %v1438_v15 = vld [vmem:[#allocation7 + $0x458] sm:$0xff]  ;;  %v7247_v40 = vld [vmem:[#allocation2 + $0x15a] sm:$0xff] }
 0x151   : > { %1778 = vmatmul.mubr.f32.gmra.mrb[18].mxu0 %v7159_v19 }
 0x152   : > { %1782 = vmatprep.mubr.f32.mxu0 %v7030_v46  ;;  %5560 = vmatpush1.bf16.msra.mxu0 %v5559_v11  ;;  %v1388_v46 = vld [vmem:[#allocation7 + $0x2c8] sm:$0xff]  ;;  %v1435_v11 = vld [vmem:[#allocation7 + $0x440] sm:$0xff] }
 0x153   : > { %5561 = vmatprep.subr.bf16.mxu0 %v8303_v0  ;;  %v5568_v22 = vpack.c.bf16 %v1388_v46, %v1387_v21  ;;  %v1439_v21 = vld [vmem:[#allocation7 + $0x460] sm:$0xff]  ;;  %v1440_v46 = vld [vmem:[#allocation7 + $0x468] sm:$0xff] }
 0x155   : > { %1783 = vmatmul.mubr.f32.gmra.mrb[20].mxu0 %v7164_v20 }
 0x156   : > { %1787 = vmatprep.mubr.f32.mxu0 %v7035_v57  ;;  %5563 = vmatpush1.bf16.msra.mxu0 %v5562_v13  ;;  %v1390_v57 = vld [vmem:[#allocation7 + $0x2d8] sm:$0xff]  ;;  %v1437_v13 = vld [vmem:[#allocation7 + $0x450] sm:$0xff] }
 0x157   : > { %5564 = vmatprep.subr.bf16.mxu0 %v8303_v0  ;;  %v5571_v31 = vpack.c.bf16 %v1390_v57, %v1389_v50  ;;  %v7255_v50 = vld [vmem:[#allocation2 + $0x188] sm:$0xff] }
 0x158   : > { %v1442_v57 = vld [vmem:[#allocation7 + $0x478] sm:$0xff] }
 0x159   : > { %1788 = vmatmul.mubr.f32.gmra.mrb[22].mxu0 %v7169_v23 }
 0x15a   : > { %1792 = vmatprep.mubr.f32.mxu0 %v7040_v17  ;;  %5566 = vmatpush1.bf16.msra.mxu0 %v5565_v10  ;;  %v1392_v17 = vld [vmem:[#allocation7 + $0x2e8] sm:$0xff]  ;;  %v7249_v10 = vld [vmem:[#allocation2 + $0x180] sm:$0xff] }
 0x15b   : > { %5567 = vmatprep.subr.bf16.mxu0 %v8303_v0  ;;  %v5574_v61 = vpack.c.bf16 %v1392_v17, %v1391_v26  ;;  %v7259_v26 = vld [vmem:[#allocation2 + $0x172] sm:$0xff] }
 0x15c   : > { %v1395_v17 = vld [vmem:[#allocation7 + $0x300] sm:$0xff] }
 0x15d   : > { %1793 = vmatmul.mubr.f32.gmra.mrb[24].mxu0 %v7174_v14 }
 0x15e   : > { %1797 = vmatprep.mubr.f32.mxu0 %v7045_v3  ;;  %5569 = vmatpush1.bf16.msra.mxu0 %v5568_v22  ;;  %v1394_v3 = vld [vmem:[#allocation7 + $0x2f8] sm:$0xff] }
 0x15f   : > { %5570 = vmatprep.subr.bf16.mxu0 %v8303_v0  ;;  %v5577_v43 = vpack.c.bf16 %v1394_v3, %v1393_v39  ;;  %v7253_v22 = vld [vmem:[#allocation2 + $0x16a] sm:$0xff]  ;;  %v1397_v3 = vld [vmem:[#allocation7 + $0x310] sm:$0xff] }
 0x161   : > { %1798 = vmatmul.mubr.f32.gmra.mrb[26].mxu0 %v7179_v30 }
 0x162   : > { %1802 = vmatprep.mubr.f32.mxu0 %v7050_v35  ;;  %5572 = vmatpush1.bf16.msra.mxu0 %v5571_v31  ;;  %v7194_v35 = vld [vmem:[#allocation2 + $0xc2] sm:$0xff] }
 0x163   : > { %5573 = vmatprep.subr.bf16.mxu0 %v8303_v0 }
 0x165   : > { %1803 = vmatmul.mubr.f32.gmra.mrb[28].mxu0 %v7184_v37 }
 0x166   : > { %1807 = vmatprep.mubr.f32.mxu0 %v7055_v36  ;;  %5575 = vmatpush1.bf16.msra.mxu0 %v5574_v61  ;;  %v7199_v36 = vld [vmem:[#allocation2 + $0xca] sm:$0xff]  ;;  %v1396_v61 = vld [vmem:[#allocation7 + $0x308] sm:$0xff] }
 0x167   : > { %5576 = vmatprep.subr.bf16.mxu0 %v8303_v0  ;;  %v5580_v39 = vpack.c.bf16 %v1396_v61, %v1395_v17  ;;  %v6364_v17 = vld [vmem:[#allocation2 + $0x79] sm:$0xff] }
 0x169   : > { %1808 = vmatmul.mubr.f32.gmra.mrb[30].mxu0 %v7189_v27 }
 0x16a   : > { %1812 = vmatprep.mubr.f32.mxu0 %v7059_v5  ;;  %5578 = vmatpush1.bf16.msra.mxu0 %v5577_v43  ;;  %v7207_v5 = vld [vmem:[#allocation2 + $0xe2] sm:$0xff] }
 0x16b   : > { %5579 = vmatprep.subr.bf16.mxu0 %v8303_v0  ;;  %v1398_v43 = vld [vmem:[#allocation7 + $0x318] sm:$0xff] }
 0x16d   : > { %1813 = vmatmul.mubr.f32.gmra.mrb[32].mxu0 %v7194_v35 }
 0x16e   : > { %1817 = vmatprep.mubr.f32.mxu0 %v7063_v38  ;;  %v7215_v38 = vld [vmem:[#allocation2 + $0xfa] sm:$0xff] }
 0x171   : > { %1818 = vmatmul.mubr.f32.gmra.mrb[34].mxu0 %v7199_v36 }
 0x172   : > { %1822 = vmatprep.mubr.f32.mxu0 %v7067_v7  ;;  %v7219_v7 = vld [vmem:[#allocation2 + $0x10a] sm:$0xff] }
 0x175   : > { %1823 = vmatmul.mubr.f32.gmra.mrb[36].mxu0 %v7203_v45 }
 0x176   : > { %1827 = vmatprep.mubr.f32.mxu0 %v7071_v41  ;;  %v7223_v41 = vld [vmem:[#allocation2 + $0x112] sm:$0xff] }
 0x179   : > { %1828 = vmatmul.mubr.f32.gmra.mrb[38].mxu0 %v7207_v5 }
 0x17a   : > { %1832 = vmatprep.mubr.f32.mxu0 %v7075_v42  ;;  %v1427_v42 = vld [vmem:[#allocation7 + $0x400] sm:$0xff] }
 0x17b   : > { %v5627_v53 = vpack.c.bf16 %v1428_v51, %v1427_v42  ;;  %v6356_v42 = vld [vmem:[#allocation2 + $0x19] sm:$0xff]  ;;  %v5583_v51 = vpack.c.bf16 %v1398_v43, %v1397_v3  ;;  %v6365_v3 = vld [vmem:[#allocation2 + $0x81] sm:$0xff] }
 0x17d   : > { %1833 = vmatmul.mubr.f32.gmra.mrb[40].mxu0 %v7211_v28  ;;  %5628 = vmatprep.subr.bf16.mxu1 %v5627_v53 }
 0x17e   : > { %1837 = vmatprep.mubr.f32.mxu0 %v7079_v44  ;;  %v7227_v44 = vld [vmem:[#allocation2 + $0x122] sm:$0xff]  ;;  %5630 = vmatpush3.bf16.msra.mxu1 %v5627_v53  ;;  %v1399_v53 = vld [vmem:[#allocation7 + $0x320] sm:$0xff] }
 0x181   : > { %1838 = vmatmul.mubr.f32.gmra.mrb[42].mxu0 %v7215_v38 }
 0x182   : > { %1842 = vmatprep.mubr.f32.mxu0 %v7083_v47  ;;  %v1429_v47 = vld [vmem:[#allocation7 + $0x410] sm:$0xff] }
 0x183   : > { %v5631_v12 = vpack.c.bf16 %v1430_v29, %v1429_v47  ;;  %v1400_v47 = vld [vmem:[#allocation7 + $0x328] sm:$0xff] }
 0x184   : > { %v5586_v29 = vpack.c.bf16 %v1400_v47, %v1399_v53  ;;  %v1419_v47 = vld [vmem:[#allocation7 + $0x3c0] sm:$0xff] }
 0x185   : > { %1843 = vmatmul.mubr.f32.gmra.mrb[44].mxu0 %v7219_v7  ;;  %5632 = vmatprep.subr.bf16.mxu1 %v5631_v12 }
 0x186   : > { %1847 = vmatprep.mubr.f32.mxu0 %v7087_v48  ;;  %v7231_v48 = vld [vmem:[#allocation2 + $0x12a] sm:$0xff]  ;;  %5634 = vmatpush3.bf16.msra.mxu1 %v5631_v12  ;;  %v1401_v12 = vld [vmem:[#allocation7 + $0x330] sm:$0xff] }
 0x189   : > { %1848 = vmatmul.mubr.f32.gmra.mrb[46].mxu0 %v7223_v41 }
 0x18a   : > { %1852 = vmatprep.mubr.f32.mxu0 %v7091_v49  ;;  %v5635_v49 = vpack.c.bf16 %v1432_v32, %v1431_v1  ;;  %v1402_v1 = vld [vmem:[#allocation7 + $0x338] sm:$0xff] }
 0x18b   : > { %v5589_v32 = vpack.c.bf16 %v1402_v1, %v1401_v12  ;;  %v1421_v12 = vld [vmem:[#allocation7 + $0x3d0] sm:$0xff]  ;;  %v6368_v1 = vld [vmem:[#allocation2 + $0xa9] sm:$0xff] }
 0x18c   : > { %5636 = vmatprep.subr.bf16.mxu1 %v5635_v49 }
 0x18d   : > { %1853 = vmatmul.mubr.f32.gmra.mrb[48].mxu0 %v7227_v44  ;;  %5638 = vmatpush3.bf16.msra.mxu1 %v5635_v49  ;;  %v1403_v49 = vld [vmem:[#allocation7 + $0x340] sm:$0xff] }
 0x18e   : > { %1857 = vmatprep.mubr.f32.mxu0 %v7095_v52  ;;  %v5639_v52 = vpack.c.bf16 %v1434_v34, %v1433_v18  ;;  %v6359_v18 = vld [vmem:[#allocation2 + $0x39] sm:$0xff] }
 0x190   : > { %5640 = vmatprep.subr.bf16.mxu1 %v5639_v52 }
 0x191   : > { %1858 = vmatmul.mubr.f32.gmra.mrb[50].mxu0 %v7231_v48  ;;  %5642 = vmatpush3.bf16.msra.mxu1 %v5639_v52  ;;  %v1405_v52 = vld [vmem:[#allocation7 + $0x350] sm:$0xff] }
 0x192   : > { %1862 = vmatprep.mubr.f32.mxu0 %v7099_v54  ;;  %v5643_v54 = vpack.c.bf16 %v1436_v6, %v1435_v11  ;;  %v6360_v11 = vld [vmem:[#allocation2 + $0x49] sm:$0xff] }
 0x194   : > { %5644 = vmatprep.subr.bf16.mxu1 %v5643_v54 }
 0x195   : > { %1863 = vmatmul.mubr.f32.gmra.mrb[52].mxu0 %v7235_v16  ;;  %5646 = vmatpush3.bf16.msra.mxu1 %v5643_v54  ;;  %v1407_v54 = vld [vmem:[#allocation7 + $0x360] sm:$0xff] }
 0x196   : > { %1867 = vmatprep.mubr.f32.mxu0 %v7107_v56  ;;  %v5647_v56 = vpack.c.bf16 %v1438_v15, %v1437_v13  ;;  %v6361_v13 = vld [vmem:[#allocation2 + $0x51] sm:$0xff] }
 0x198   : > { %5648 = vmatprep.subr.bf16.mxu1 %v5647_v56 }
 0x199   : > { %1868 = vmatmul.mubr.f32.gmra.mrb[54].mxu0 %v7239_v24  ;;  %5650 = vmatpush3.bf16.msra.mxu1 %v5647_v56  ;;  %v1409_v56 = vld [vmem:[#allocation7 + $0x370] sm:$0xff] }
 0x19a   : > { %1872 = vmatprep.mubr.f32.mxu0 %v7115_v60  ;;  %v5651_v60 = vpack.c.bf16 %v1440_v46, %v1439_v21  ;;  %v6362_v21 = vld [vmem:[#allocation2 + $0x61] sm:$0xff] }
 0x19c   : > { %5652 = vmatprep.subr.bf16.mxu1 %v5651_v60 }
 0x19d   : > { %1873 = vmatmul.mubr.f32.gmra.mrb[56].mxu0 %v7243_v33  ;;  %5654 = vmatpush3.bf16.msra.mxu1 %v5651_v60  ;;  %v1411_v60 = vld [vmem:[#allocation7 + $0x380] sm:$0xff] }
 0x19e   : > { %1877 = vmatprep.mubr.f32.mxu0 %v7119_v2  ;;  %v1441_v2 = vld [vmem:[#allocation7 + $0x470] sm:$0xff] }
 0x19f   : > { %v5655_v31 = vpack.c.bf16 %v1442_v57, %v1441_v2  ;;  %v6363_v2 = vld [vmem:[#allocation2 + $0x69] sm:$0xff] }
 0x1a1   : > { %1878 = vmatmul.mubr.f32.gmra.mrb[58].mxu0 %v7247_v40  ;;  %5656 = vmatprep.subr.bf16.mxu1 %v5655_v31 }
 0x1a2   : > { %1882 = vmatprep.mubr.f32.mxu0 %v7249_v10  ;;  %5658 = vmatpush3.bf16.msra.mxu1 %v5655_v31  ;;  %v1413_v31 = vld [vmem:[#allocation7 + $0x390] sm:$0xff] }
 0x1a3   : > { %5659 = vmatprep.subr.bf16.mxu1 %v8303_v0 }
 0x1a5   : > { %1883 = vmatmul.mubr.f32.gmra.mrb[60].mxu0 %v7253_v22  ;;  %5308 = vmatmul.mubr.f32.vlgmr.msra.gmra.mrb[0].mxu1 %v7139_v4 }
 0x1a6   : > { %1887 = vmatprep.mubr.f32.mxu0 %v7255_v50  ;;  %5310 = vmatprep.mubr.f32.mxu1 %v7144_v8 }
 0x1a9   : > { %1888 = vmatmul.mubr.f32.gmra.mrb[62].mxu0 %v7259_v26  ;;  %5311 = vmatmul.mubr.f32.gmra.mrb[2].mxu1 %v7149_v59 }
 0x1aa   : > { %1957 = vmatprep.mubr.f32.mxu0 %v7126_v25  ;;  %5313 = vmatprep.mubr.f32.mxu1 %v7154_v62  ;;  %v6357_v25 = vld [vmem:[#allocation2 + $0x21] sm:$0xff] }
 0x1ad   : > { %1958 = vmatmul.mubr.f32.vlgmr.msra.gmra.mrb[0].mxu0 %v6356_v42  ;;  %5314 = vmatmul.mubr.f32.gmra.mrb[4].mxu1 %v7159_v19  ;;  %v1417_v42 = vld [vmem:[#allocation7 + $0x3b0] sm:$0xff] }
 0x1ae   : > { %5581 = vmatpush1.bf16.msra.mxu0 %v5580_v39  ;;  %1962 = vmatprep.mubr.f32.mxu0 %v7131_v58  ;;  %v6358_v58 = vld [vmem:[#allocation2 + $0x31] sm:$0xff] }
 0x1af   : > { %5582 = vmatprep.subr.bf16.mxu0 %v8303_v0  ;;  %5316 = vmatprep.mubr.f32.mxu1 %v7164_v20  ;;  %v1415_v39 = vld [vmem:[#allocation7 + $0x3a0] sm:$0xff] }
 0x1b1   : > { %1963 = vmatmul.mubr.f32.gmra.mrb[2].mxu0 %v6357_v25  ;;  %5317 = vmatmul.mubr.f32.gmra.mrb[6].mxu1 %v7169_v23  ;;  %v6367_v25 = vld [vmem:[#allocation2 + $0x99] sm:$0xff] }
 0x1b2   : > { %1967 = vmatprep.mubr.f32.mxu0 %v6989_v63  ;;  %5584 = vmatpush1.bf16.msra.mxu0 %v5583_v51  ;;  %v1404_v63 = vld [vmem:[#allocation7 + $0x348] sm:$0xff] }
 0x1b3   : > { %5585 = vmatprep.subr.bf16.mxu0 %v8303_v0  ;;  %5319 = vmatprep.mubr.f32.mxu1 %v7174_v14  ;;  %v5592_v34 = vpack.c.bf16 %v1404_v63, %v1403_v49  ;;  %v6366_v51 = vld [vmem:[#allocation2 + $0x91] sm:$0xff]  ;;  %v7316_v49 = vld [vmem:[#allocation2 + $0x182] sm:$0xff] }
 0x1b4   : > { %v6369_v63 = vld [vmem:[#allocation2 + $0xb1] sm:$0xff] }
 0x1b5   : > { %1968 = vmatmul.mubr.f32.gmra.mrb[4].mxu0 %v6358_v58  ;;  %5320 = vmatmul.mubr.f32.gmra.mrb[8].mxu1 %v7179_v30 }
 0x1b6   : > { %1972 = vmatprep.mubr.f32.mxu0 %v7139_v4  ;;  %5587 = vmatpush1.bf16.msra.mxu0 %v5586_v29  ;;  %v1406_v4 = vld [vmem:[#allocation7 + $0x358] sm:$0xff] }
 0x1b7   : > { %5588 = vmatprep.subr.bf16.mxu0 %v8303_v0  ;;  %5322 = vmatprep.mubr.f32.mxu1 %v7184_v37  ;;  %v5595_v6 = vpack.c.bf16 %v1406_v4, %v1405_v52  ;;  %v1426_v52 = vld [vmem:[#allocation7 + $0x3f8] sm:$0xff] }
 0x1b8   : > { %v6370_v4 = vld [vmem:[#allocation2 + $0xc1] sm:$0xff] }
 0x1b9   : > { %1973 = vmatmul.mubr.f32.gmra.mrb[6].mxu0 %v6359_v18  ;;  %5323 = vmatmul.mubr.f32.gmra.mrb[10].mxu1 %v7189_v27 }
 0x1ba   : > { %1977 = vmatprep.mubr.f32.mxu0 %v7144_v8  ;;  %5590 = vmatpush1.bf16.msra.mxu0 %v5589_v32  ;;  %v1408_v8 = vld [vmem:[#allocation7 + $0x368] sm:$0xff]  ;;  %v1423_v32 = vld [vmem:[#allocation7 + $0x3e0] sm:$0xff] }
 0x1bb   : > { %5591 = vmatprep.subr.bf16.mxu0 %v8303_v0  ;;  %5325 = vmatprep.mubr.f32.mxu1 %v7194_v35  ;;  %v5598_v15 = vpack.c.bf16 %v1408_v8, %v1407_v54  ;;  %v6373_v54 = vld [vmem:[#allocation2 + $0xe1] sm:$0xff]  ;;  %v6374_v8 = vld [vmem:[#allocation2 + $0xf1] sm:$0xff] }
 0x1bd   : > { %1978 = vmatmul.mubr.f32.gmra.mrb[8].mxu0 %v6360_v11  ;;  %5326 = vmatmul.mubr.f32.gmra.mrb[12].mxu1 %v7199_v36 }
 0x1be   : > { %1982 = vmatprep.mubr.f32.mxu0 %v7149_v59  ;;  %5593 = vmatpush1.bf16.msra.mxu0 %v5592_v34  ;;  %v1410_v59 = vld [vmem:[#allocation7 + $0x378] sm:$0xff] }
 0x1bf   : > { %5594 = vmatprep.subr.bf16.mxu0 %v8303_v0  ;;  %5328 = vmatprep.mubr.f32.mxu1 %v7203_v45  ;;  %v5601_v46 = vpack.c.bf16 %v1410_v59, %v1409_v56  ;;  %v785_v34 = vld [vmem:[#allocation2 + $0x18a] sm:$0xff]  ;;  %v3576_v56 = vld [vmem:[#allocation9 + $0x10] sm:$0xff] }
 0x1c0   : > { %v819_v59 = vld [vmem:[#allocation2 + $0x30] sm:$0xff] }
 0x1c1   : > { %1983 = vmatmul.mubr.f32.gmra.mrb[10].mxu0 %v6361_v13  ;;  %5329 = vmatmul.mubr.f32.gmra.mrb[14].mxu1 %v7207_v5  ;;  %v6376_v13 = vld [vmem:[#allocation2 + $0x109] sm:$0xff] }
 0x1c2   : > { %1987 = vmatprep.mubr.f32.mxu0 %v7154_v62  ;;  %5596 = vmatpush1.bf16.msra.mxu0 %v5595_v6  ;;  %v1412_v62 = vld [vmem:[#allocation7 + $0x388] sm:$0xff]  ;;  %v6371_v6 = vld [vmem:[#allocation2 + $0xc9] sm:$0xff] }
 0x1c3   : > { %5597 = vmatprep.subr.bf16.mxu0 %v8303_v0  ;;  %5331 = vmatprep.mubr.f32.mxu1 %v7211_v28  ;;  %v5604_v57 = vpack.c.bf16 %v1412_v62, %v1411_v60  ;;  %v3578_v62 = vld [vmem:[#allocation9 + $0x20] sm:$0xff] }
 0x1c5   : > { %1988 = vmatmul.mubr.f32.gmra.mrb[12].mxu0 %v6362_v21  ;;  %5332 = vmatmul.mubr.f32.gmra.mrb[16].mxu1 %v7215_v38  ;;  %v3577_v21 = vld [vmem:[#allocation9 + $0x18] sm:$0xff] }
 0x1c6   : > { %1992 = vmatprep.mubr.f32.mxu0 %v7159_v19  ;;  %5599 = vmatpush1.bf16.msra.mxu0 %v5598_v15  ;;  %v1414_v19 = vld [vmem:[#allocation7 + $0x398] sm:$0xff]  ;;  %v977_v15 = vld [vmem:[#allocation2 + $0x19a] sm:$0xff]  ;;  %v5663_v60 = vpack.c.bf16 %v3577_v21, %v3576_v56  ;;  %v830_v56 = vld [vmem:[#allocation2 + $0xb0] sm:$0xff] }
 0x1c7   : > { %5600 = vmatprep.subr.bf16.mxu0 %v8303_v0  ;;  %5334 = vmatprep.mubr.f32.mxu1 %v7219_v7  ;;  %v5607_v61 = vpack.c.bf16 %v1414_v19, %v1413_v31  ;;  %v3580_v31 = vld [vmem:[#allocation9 + $0x30] sm:$0xff]  ;;  %v3581_v19 = vld [vmem:[#allocation9 + $0x38] sm:$0xff] }
 0x1c8   : > { %v3600_v21 = vld [vmem:[#allocation9 + $0xd0] sm:$0xff] }
 0x1c9   : > { %1993 = vmatmul.mubr.f32.gmra.mrb[14].mxu0 %v6363_v2  ;;  %5335 = vmatmul.mubr.f32.gmra.mrb[18].mxu1 %v7223_v41  ;;  %v3579_v2 = vld [vmem:[#allocation9 + $0x28] sm:$0xff] }
 0x1ca   : > { %1997 = vmatprep.mubr.f32.mxu0 %v7164_v20  ;;  %5602 = vmatpush1.bf16.msra.mxu0 %v5601_v46  ;;  %v1416_v20 = vld [vmem:[#allocation7 + $0x3a8] sm:$0xff] }
 0x1cb   : > { %5603 = vmatprep.subr.bf16.mxu0 %v8303_v0  ;;  %5337 = vmatprep.mubr.f32.mxu1 %v7227_v44  ;;  %v5610_v43 = vpack.c.bf16 %v1416_v20, %v1415_v39  ;;  %v884_v46 = vld [vmem:[#allocation2 + $0x39] sm:$0xff]  ;;  %v886_v20 = vld [vmem:[#allocation2 + $0x51] sm:$0xff] }
 0x1cc   : > { %v3703_v39 = vld [vmem:[#allocation9 + $0x408] sm:$0xff] }
 0x1cd   : > { %1998 = vmatmul.mubr.f32.gmra.mrb[16].mxu0 %v6364_v17  ;;  %5338 = vmatmul.mubr.f32.gmra.mrb[20].mxu1 %v7231_v48  ;;  %v3702_v17 = vld [vmem:[#allocation9 + $0x400] sm:$0xff] }
 0x1ce   : > { %2002 = vmatprep.mubr.f32.mxu0 %v7169_v23  ;;  %5605 = vmatpush1.bf16.msra.mxu0 %v5604_v57  ;;  %v1418_v23 = vld [vmem:[#allocation7 + $0x3b8] sm:$0xff] }
 0x1cf   : > { %5606 = vmatprep.subr.bf16.mxu0 %v8303_v0  ;;  %5340 = vmatprep.mubr.f32.mxu1 %v7235_v16  ;;  %v5613_v53 = vpack.c.bf16 %v1418_v23, %v1417_v42  ;;  %v885_v57 = vld [vmem:[#allocation2 + $0x49] sm:$0xff]  ;;  %v3583_v23 = vld [vmem:[#allocation9 + $0x48] sm:$0xff] }
 0x1d0   : > { %v3582_v42 = vld [vmem:[#allocation9 + $0x40] sm:$0xff] }
 0x1d1   : > { %2003 = vmatmul.mubr.f32.gmra.mrb[18].mxu0 %v6365_v3  ;;  %5341 = vmatmul.mubr.f32.gmra.mrb[22].mxu1 %v7239_v24  ;;  %v7343_v3 = vpack.c.bf16 %v3703_v39, %v3702_v17  ;;  %v899_v17 = vld [vmem:[#allocation2 + $0xf1] sm:$0xff]  ;;  %v900_v39 = vld [vmem:[#allocation2 + $0xf9] sm:$0xff] }
 0x1d2   : > { %2007 = vmatprep.mubr.f32.mxu0 %v7174_v14  ;;  %5608 = vmatpush1.bf16.msra.mxu0 %v5607_v61  ;;  %v1420_v14 = vld [vmem:[#allocation7 + $0x3c8] sm:$0xff]  ;;  %v821_v61 = vld [vmem:[#allocation2 + $0x48] sm:$0xff] }
 0x1d3   : > { %5609 = vmatprep.subr.bf16.mxu0 %v8303_v0  ;;  %5343 = vmatprep.mubr.f32.mxu1 %v7243_v33  ;;  %v5616_v29 = vpack.c.bf16 %v1420_v14, %v1419_v47  ;;  %8345 = vst [vmem:[#allocation14_spill] sm:$0xff] %v7343_v3  ;;  %v5672_v47 = vpack.c.bf16 %v3583_v23, %v3582_v42  ;;  %v3584_v14 = vld [vmem:[#allocation9 + $0x50] sm:$0xff]  ;;  %v837_v42 = vld [vmem:[#allocation2 + $0x108] sm:$0xff]  ;;  %v902_v23 = vld [vmem:[#allocation2 + $0x111] sm:$0xff] }
 0x1d5   : > { %2008 = vmatmul.mubr.f32.gmra.mrb[20].mxu0 %v6366_v51  ;;  %5344 = vmatmul.mubr.f32.gmra.mrb[24].mxu1 %v7247_v40  ;;  %v822_v51 = vld [vmem:[#allocation2 + $0x50] sm:$0xff] }
 0x1d6   : > { %2012 = vmatprep.mubr.f32.mxu0 %v7179_v30  ;;  %5611 = vmatpush1.bf16.msra.mxu0 %v5610_v43  ;;  %v1422_v30 = vld [vmem:[#allocation7 + $0x3d8] sm:$0xff]  ;;  %v5669_v43 = vpack.c.bf16 %v3581_v19, %v3580_v31  ;;  %v834_v19 = vld [vmem:[#allocation2 + $0xe0] sm:$0xff] }
 0x1d7   : > { %5612 = vmatprep.subr.bf16.mxu0 %v8303_v0  ;;  %5346 = vmatprep.mubr.f32.mxu1 %v7253_v22  ;;  %v5619_v58 = vpack.c.bf16 %v1422_v30, %v1421_v12  ;;  %v888_v12 = vld [vmem:[#allocation2 + $0x69] sm:$0xff]  ;;  %v898_v31 = vld [vmem:[#allocation2 + $0xe1] sm:$0xff] }
 0x1d9   : > { %2013 = vmatmul.mubr.f32.gmra.mrb[22].mxu0 %v6367_v25  ;;  %5347 = vmatmul.mubr.f32.gmra.mrb[26].mxu1 %v7259_v26  ;;  %v3585_v25 = vld [vmem:[#allocation9 + $0x58] sm:$0xff] }
 0x1da   : > { %2017 = vmatprep.mubr.f32.mxu0 %v7184_v37  ;;  %5614 = vmatpush1.bf16.msra.mxu0 %v5613_v53  ;;  %v1424_v37 = vld [vmem:[#allocation7 + $0x3e8] sm:$0xff]  ;;  %v887_v53 = vld [vmem:[#allocation2 + $0x61] sm:$0xff]  ;;  %v5675_v30 = vpack.c.bf16 %v3585_v25, %v3584_v14  ;;  %v3602_v14 = vld [vmem:[#allocation9 + $0xe0] sm:$0xff] }
 0x1db   : > { %5615 = vmatprep.subr.bf16.mxu0 %v8303_v0  ;;  %5349 = vmatprep.mubr.f32.mxu1 %v7316_v49  ;;  %v5622_v18 = vpack.c.bf16 %v1424_v37, %v1423_v32  ;;  %v824_v32 = vld [vmem:[#allocation2 + $0x68] sm:$0xff]  ;;  %v889_v37 = vld [vmem:[#allocation2 + $0x79] sm:$0xff] }
 0x1dc   : > { %v3603_v25 = vld [vmem:[#allocation9 + $0xe8] sm:$0xff] }
 0x1dd   : > { %2018 = vmatmul.mubr.f32.gmra.mrb[24].mxu0 %v6368_v1  ;;  %5350 = vmatmul.mubr.f32.gmra.mrb[28].mxu1 %v785_v34  ;;  %v3586_v1 = vld [vmem:[#allocation9 + $0x60] sm:$0xff] }
 0x1de   : > { %2022 = vmatprep.mubr.f32.mxu0 %v7189_v27  ;;  %5617 = vmatpush1.bf16.msra.mxu0 %v5616_v29  ;;  %v1425_v27 = vld [vmem:[#allocation7 + $0x3f0] sm:$0xff] }
 0x1df   : > { %5618 = vmatprep.subr.bf16.mxu0 %v8303_v0  ;;  %v5625_v11 = vpack.c.bf16 %v1426_v52, %v1425_v27  ;;  %5352 = vmatprep.mubr.f32.mxu1 %v977_v15  ;;  %v823_v29 = vld [vmem:[#allocation2 + $0x60] sm:$0xff]  ;;  %v829_v15 = vld [vmem:[#allocation2 + $0xa8] sm:$0xff] }
 0x1e0   : > { %v890_v27 = vld [vmem:[#allocation2 + $0x81] sm:$0xff] }
 0x1e1   : > { %2023 = vmatmul.mubr.f32.gmra.mrb[26].mxu0 %v6369_v63  ;;  %v3588_v63 = vld [vmem:[#allocation9 + $0x70] sm:$0xff] }
 0x1e2   : > { %2027 = vmatprep.mubr.f32.mxu0 %v7194_v35  ;;  %5620 = vmatpush1.bf16.msra.mxu0 %v5619_v58  ;;  %v6372_v35 = vld [vmem:[#allocation2 + $0xd9] sm:$0xff] }
 0x1e3   : > { %5621 = vmatprep.subr.bf16.mxu0 %v8303_v0  ;;  %v3587_v58 = vld [vmem:[#allocation9 + $0x68] sm:$0xff] }
 0x1e5   : > { %2028 = vmatmul.mubr.f32.gmra.mrb[28].mxu0 %v6370_v4  ;;  %v3590_v4 = vld [vmem:[#allocation9 + $0x80] sm:$0xff] }
 0x1e6   : > { %2032 = vmatprep.mubr.f32.mxu0 %v7199_v36  ;;  %5623 = vmatpush1.bf16.msra.mxu0 %v5622_v18  ;;  %v6375_v36 = vld [vmem:[#allocation2 + $0xf9] sm:$0xff]  ;;  %v3589_v18 = vld [vmem:[#allocation9 + $0x78] sm:$0xff] }
 0x1e7   : > { %5624 = vmatprep.subr.bf16.mxu0 %v8303_v0  ;;  %v5681_v52 = vpack.c.bf16 %v3589_v18, %v3588_v63  ;;  %v3704_v63 = vld [vmem:[#allocation9 + $0x410] sm:$0xff]  ;;  %v3705_v18 = vld [vmem:[#allocation9 + $0x418] sm:$0xff] }
 0x1e9   : > { %2033 = vmatmul.mubr.f32.gmra.mrb[30].mxu0 %v6371_v6  ;;  %v826_v6 = vld [vmem:[#allocation2 + $0x80] sm:$0xff] }
 0x1ea   : > { %2037 = vmatprep.mubr.f32.mxu0 %v7203_v45  ;;  %5626 = vmatpush1.bf16.msra.mxu0 %v5625_v11  ;;  %v6377_v45 = vld [vmem:[#allocation2 + $0x111] sm:$0xff] }
 0x1eb   : > { %5852 = vmatprep.subr.bf16.mxu0 %v7343_v3  ;;  %v3591_v11 = vld [vmem:[#allocation9 + $0x88] sm:$0xff] }
 0x1ed   : > { %2038 = vmatmul.mubr.f32.gmra.mrb[32].mxu0 %v6372_v35  ;;  %v891_v35 = vld [vmem:[#allocation2 + $0x91] sm:$0xff] }
 0x1ee   : > { %2042 = vmatprep.mubr.f32.mxu0 %v7207_v5  ;;  %v6378_v5 = vld [vmem:[#allocation2 + $0x121] sm:$0xff] }
 0x1f1   : > { %2043 = vmatmul.mubr.f32.gmra.mrb[34].mxu0 %v6373_v54  ;;  %v5684_v54 = vpack.c.bf16 %v3591_v11, %v3590_v4  ;;  %v2774_v4 = vld [vmem:[#allocation2 + $0x1] sm:$0xff] }
 0x1f2   : > { %2047 = vmatprep.mubr.f32.mxu0 %v7211_v28  ;;  %v6379_v28 = vld [vmem:[#allocation2 + $0x129] sm:$0xff]  ;;  %v906_v11 = vld [vmem:[#allocation2 + $0x141] sm:$0xff] }
 0x1f5   : > { %2048 = vmatmul.mubr.f32.gmra.mrb[36].mxu0 %v6374_v8  ;;  %v3592_v8 = vld [vmem:[#allocation9 + $0x90] sm:$0xff] }
 0x1f6   : > { %2052 = vmatprep.mubr.f32.mxu0 %v7215_v38  ;;  %v6380_v38 = vld [vmem:[#allocation2 + $0x139] sm:$0xff] }
 0x1f9   : > { %2053 = vmatmul.mubr.f32.gmra.mrb[38].mxu0 %v6375_v36  ;;  %v3593_v36 = vld [vmem:[#allocation9 + $0x98] sm:$0xff] }
 0x1fa   : > { %2057 = vmatprep.mubr.f32.mxu0 %v7219_v7  ;;  %v6381_v7 = vld [vmem:[#allocation2 + $0x141] sm:$0xff] }
 0x1fd   : > { %2058 = vmatmul.mubr.f32.gmra.mrb[40].mxu0 %v6376_v13  ;;  %v827_v13 = vld [vmem:[#allocation2 + $0x90] sm:$0xff] }
 0x1fe   : > { %2062 = vmatprep.mubr.f32.mxu0 %v7223_v41  ;;  %v6382_v41 = vld [vmem:[#allocation2 + $0x151] sm:$0xff] }
 0x201   : > { %2063 = vmatmul.mubr.f32.gmra.mrb[42].mxu0 %v6377_v45  ;;  %v892_v45 = vld [vmem:[#allocation2 + $0x99] sm:$0xff] }
 0x202   : > { %2067 = vmatprep.mubr.f32.mxu0 %v7227_v44  ;;  %v6383_v44 = vld [vmem:[#allocation2 + $0x159] sm:$0xff] }
 0x205   : > { %2068 = vmatmul.mubr.f32.gmra.mrb[44].mxu0 %v6378_v5  ;;  %v5687_v5 = vpack.c.bf16 %v3593_v36, %v3592_v8  ;;  %v2710_v8 = vld [vmem:[#allocation2] sm:$0xff] }
 0x206   : > { %2072 = vmatprep.mubr.f32.mxu0 %v7231_v48  ;;  %v6384_v48 = vld [vmem:[#allocation2 + $0x169] sm:$0xff]  ;;  %v842_v36 = vld [vmem:[#allocation2 + $0x140] sm:$0xff] }
 0x209   : > { %2073 = vmatmul.mubr.f32.gmra.mrb[46].mxu0 %v6379_v28  ;;  %v3594_v28 = vld [vmem:[#allocation9 + $0xa0] sm:$0xff] }
 0x20a   : > { %2077 = vmatprep.mubr.f32.mxu0 %v7235_v16  ;;  %v6385_v16 = vld [vmem:[#allocation2 + $0x171] sm:$0xff] }
 0x20d   : > { %2078 = vmatmul.mubr.f32.gmra.mrb[48].mxu0 %v6380_v38  ;;  %v3595_v38 = vld [vmem:[#allocation9 + $0xa8] sm:$0xff] }
 0x20e   : > { %2082 = vmatprep.mubr.f32.mxu0 %v7239_v24  ;;  %v978_v24 = vld [vmem:[#allocation2 + $0x1a2] sm:$0xff] }
 0x20f   : > { %5353 = vmatmul.mubr.f32.gmra.mrb[30].mxu1 %v978_v24  ;;  %v894_v24 = vld [vmem:[#allocation2 + $0xb1] sm:$0xff] }
 0x210   : > { %3782 = vmatprep.mubr.f32.mxu1 %v2774_v4 }
 0x211   : > { %2083 = vmatmul.mubr.f32.gmra.mrb[50].mxu0 %v6381_v7  ;;  %v828_v7 = vld [vmem:[#allocation2 + $0x98] sm:$0xff] }
 0x212   : > { %2087 = vmatprep.mubr.f32.mxu0 %v7243_v33  ;;  %v883_v33 = vld [vmem:[#allocation2 + $0x31] sm:$0xff] }
 0x215   : > { %2088 = vmatmul.mubr.f32.gmra.mrb[52].mxu0 %v6382_v41  ;;  %v893_v41 = vld [vmem:[#allocation2 + $0xa9] sm:$0xff] }
 0x216   : > { %2092 = vmatprep.mubr.f32.mxu0 %v7247_v40  ;;  %v3574_v40 = vld [vmem:[#allocation9] sm:$0xff] }
 0x219   : > { %2093 = vmatmul.mubr.f32.gmra.mrb[54].mxu0 %v6383_v44  ;;  %v5690_v44 = vpack.c.bf16 %v3595_v38, %v3594_v28  ;;  %v3708_v38 = vld [vmem:[#allocation9 + $0x430] sm:$0xff] }
 0x21a   : > { %2097 = vmatprep.mubr.f32.mxu0 %v7253_v22  ;;  %v3575_v22 = vld [vmem:[#allocation9 + $0x8] sm:$0xff] }
 0x21d   : > { %2098 = vmatmul.mubr.f32.gmra.mrb[56].mxu0 %v6384_v48  ;;  %v3596_v48 = vld [vmem:[#allocation9 + $0xb0] sm:$0xff] }
 0x21e   : > { %2102 = vmatprep.mubr.f32.mxu0 %v7259_v26  ;;  %v5660_v26 = vpack.c.bf16 %v3575_v22, %v3574_v40  ;;  %v3598_v40 = vld [vmem:[#allocation9 + $0xc0] sm:$0xff]  ;;  %v3599_v22 = vld [vmem:[#allocation9 + $0xc8] sm:$0xff] }
 0x220   : > { %5661 = vmatpush1.bf16.msra.mxu1 %v5660_v26  ;;  %v5696_v26 = vpack.c.bf16 %v3599_v22, %v3598_v40  ;;  %v844_v40 = vld [vmem:[#allocation2 + $0x158] sm:$0xff] }
 0x221   : > { %2103 = vmatmul.mubr.f32.gmra.mrb[58].mxu0 %v6385_v16  ;;  %5662 = vmatprep.subr.bf16.mxu1 %v8303_v0  ;;  %v3597_v16 = vld [vmem:[#allocation9 + $0xb8] sm:$0xff] }
 0x222   : > { %2107 = vmatprep.mubr.f32.mxu0 %v7316_v49  ;;  %v5678_v49 = vpack.c.bf16 %v3587_v58, %v3586_v1  ;;  %v3604_v58 = vld [vmem:[#allocation9 + $0xf0] sm:$0xff] }
 0x224   : > { %5664 = vmatpush1.bf16.msra.mxu1 %v5663_v60  ;;  %v831_v60 = vld [vmem:[#allocation2 + $0xc0] sm:$0xff] }
 0x225   : > { %2108 = vmatmul.mubr.f32.gmra.mrb[60].mxu0 %v7102_v55  ;;  %v820_v55 = vld [vmem:[#allocation2 + $0x38] sm:$0xff]  ;;  %5665 = vmatprep.subr.bf16.mxu1 %v8303_v0 }
 0x226   : > { %2112 = vmatprep.mubr.f32.mxu0 %v785_v34  ;;  %v825_v34 = vld [vmem:[#allocation2 + $0x78] sm:$0xff] }
 0x229   : > { %2113 = vmatmul.mubr.f32.gmra.mrb[62].mxu0 %v7110_v9  ;;  %v5666_v9 = vpack.c.bf16 %v3579_v2, %v3578_v62  ;;  %v896_v62 = vld [vmem:[#allocation2 + $0xc9] sm:$0xff] }
 0x22a   : > { %2182 = vmatprep.mubr.f32.mxu0 %v883_v33  ;;  %v5693_v33 = vpack.c.bf16 %v3597_v16, %v3596_v48  ;;  %v843_v48 = vld [vmem:[#allocation2 + $0x150] sm:$0xff]  ;;  %v908_v16 = vld [vmem:[#allocation2 + $0x159] sm:$0xff] }
 0x22b   : > { %5667 = vmatpush1.bf16.msra.mxu1 %v5666_v9  ;;  %v833_v9 = vld [vmem:[#allocation2 + $0xd8] sm:$0xff] }
 0x22c   : > { %5668 = vmatprep.subr.bf16.mxu1 %v8303_v0 }
 0x22d   : > { %2183 = vmatmul.mubr.f32.vlgmr.msra.gmra.mrb[0].mxu0 %v819_v59  ;;  %v895_v59 = vld [vmem:[#allocation2 + $0xc1] sm:$0xff] }
 0x22e   : > { %2187 = vmatprep.mubr.f32.mxu0 %v884_v46  ;;  %5854 = vmatpush3.bf16.msra.mxu0 %v7343_v3  ;;  %v3601_v46 = vld [vmem:[#allocation9 + $0xd8] sm:$0xff] }
 0x22f   : > { %5670 = vmatpush1.bf16.msra.mxu1 %v5669_v43  ;;  %v5699_v2 = vpack.c.bf16 %v3601_v46, %v3600_v21  ;;  %v901_v43 = vld [vmem:[#allocation2 + $0x109] sm:$0xff] }
 0x230   : > { %5671 = vmatprep.subr.bf16.mxu1 %v8303_v0  ;;  %v3713_v21 = vld [vmem:[#allocation9 + $0x458] sm:$0xff] }
 0x231   : > { %2188 = vmatmul.mubr.f32.gmra.mrb[2].mxu0 %v820_v55  ;;  %v832_v55 = vld [vmem:[#allocation2 + $0xc8] sm:$0xff] }
 0x232   : > { %2192 = vmatprep.mubr.f32.mxu0 %v885_v57  ;;  %v897_v57 = vld [vmem:[#allocation2 + $0xd9] sm:$0xff] }
 0x233   : > { %5673 = vmatpush1.bf16.msra.mxu1 %v5672_v47  ;;  %v839_v47 = vld [vmem:[#allocation2 + $0x120] sm:$0xff] }
 0x234   : > { %5674 = vmatprep.subr.bf16.mxu1 %v8303_v0 }
 0x235   : > { %2193 = vmatmul.mubr.f32.gmra.mrb[4].mxu0 %v821_v61  ;;  %v835_v61 = vld [vmem:[#allocation2 + $0xf0] sm:$0xff] }
 0x236   : > { %2197 = vmatprep.mubr.f32.mxu0 %v886_v20  ;;  %v836_v20 = vld [vmem:[#allocation2 + $0xf8] sm:$0xff] }
 0x237   : > { %5676 = vmatpush1.bf16.msra.mxu1 %v5675_v30  ;;  %v840_v30 = vld [vmem:[#allocation2 + $0x128] sm:$0xff] }
 0x238   : > { %5677 = vmatprep.subr.bf16.mxu1 %v8303_v0 }
 0x239   : > { %2198 = vmatmul.mubr.f32.gmra.mrb[6].mxu0 %v822_v51  ;;  %v838_v51 = vld [vmem:[#allocation2 + $0x110] sm:$0xff] }
 0x23a   : > { %2202 = vmatprep.mubr.f32.mxu0 %v887_v53  ;;  %v903_v53 = vld [vmem:[#allocation2 + $0x121] sm:$0xff] }
 0x23b   : > { %5679 = vmatpush1.bf16.msra.mxu1 %v5678_v49 }
 0x23c   : > { %5680 = vmatprep.subr.bf16.mxu1 %v8303_v0 }
 0x23d   : > { %2203 = vmatmul.mubr.f32.gmra.mrb[8].mxu0 %v823_v29  ;;  %v904_v29 = vld [vmem:[#allocation2 + $0x129] sm:$0xff] }
 0x23e   : > { %2207 = vmatprep.mubr.f32.mxu0 %v888_v12  ;;  %v5702_v12 = vpack.c.bf16 %v3603_v25, %v3602_v14  ;;  %v6388_v14 = vld [vmem:[#allocation2 + $0x189] sm:$0xff] }
 0x23f   : > { %5682 = vmatpush1.bf16.msra.mxu1 %v5681_v52  ;;  %v841_v52 = vld [vmem:[#allocation2 + $0x138] sm:$0xff] }
 0x240   : > { %5683 = vmatprep.subr.bf16.mxu1 %v8303_v0 }
 0x241   : > { %2208 = vmatmul.mubr.f32.gmra.mrb[10].mxu0 %v824_v32  ;;  %v3605_v32 = vld [vmem:[#allocation9 + $0xf8] sm:$0xff] }
 0x242   : > { %2212 = vmatprep.mubr.f32.mxu0 %v889_v37  ;;  %v905_v37 = vld [vmem:[#allocation2 + $0x139] sm:$0xff] }
 0x243   : > { %5685 = vmatpush1.bf16.msra.mxu1 %v5684_v54 }
 0x244   : > { %5686 = vmatprep.subr.bf16.mxu1 %v8303_v0 }
 0x245   : > { %2213 = vmatmul.mubr.f32.gmra.mrb[12].mxu0 %v825_v34  ;;  %v5705_v34 = vpack.c.bf16 %v3605_v32, %v3604_v58  ;;  %v3611_v58 = vld [vmem:[#allocation9 + $0x128] sm:$0xff] }
 0x246   : > { %2217 = vmatprep.mubr.f32.mxu0 %v890_v27  ;;  %v7364_v27 = vpack.c.bf16 %v3705_v18, %v3704_v63  ;;  %v849_v32 = vld [vmem:[#allocation2 + $0x198] sm:$0xff]  ;;  %v914_v63 = vld [vmem:[#allocation2 + $0x1a1] sm:$0xff] }
 0x247   : > { %5688 = vmatpush1.bf16.msra.mxu1 %v5687_v5  ;;  %v907_v5 = vld [vmem:[#allocation2 + $0x151] sm:$0xff] }
 0x248   : > { %5689 = vmatprep.subr.bf16.mxu1 %v8303_v0  ;;  %8346 = vst [vmem:[#allocation15_spill] sm:$0xff] %v7364_v27  ;;  %5856 = vmatprep.subr.bf16.mxu0 %v7364_v27 }
 0x249   : > { %2218 = vmatmul.mubr.f32.gmra.mrb[14].mxu0 %v826_v6  ;;  %v3706_v6 = vld [vmem:[#allocation9 + $0x420] sm:$0xff] }
 0x24a   : > { %2222 = vmatprep.mubr.f32.mxu0 %v891_v35  ;;  %5858 = vmatpush3.bf16.msra.mxu0 %v7364_v27  ;;  %v3707_v35 = vld [vmem:[#allocation9 + $0x428] sm:$0xff] }
 0x24b   : > { %5691 = vmatpush1.bf16.msra.mxu1 %v5690_v44  ;;  %v7368_v54 = vpack.c.bf16 %v3707_v35, %v3706_v6  ;;  %v7379_v44 = vld [vmem:[#allocation2 + $0x8] sm:$0xff]  ;;  %v3614_v6 = vld [vmem:[#allocation9 + $0x140] sm:$0xff]  ;;  %v3615_v35 = vld [vmem:[#allocation9 + $0x148] sm:$0xff] }
 0x24c   : > { %5692 = vmatprep.subr.bf16.mxu1 %v8303_v0 }
 0x24d   : > { %2223 = vmatmul.mubr.f32.gmra.mrb[16].mxu0 %v827_v13  ;;  %8347 = vst [vmem:[#allocation16_spill] sm:$0xff] %v7368_v54  ;;  %5860 = vmatprep.subr.bf16.mxu0 %v7368_v54 }
 0x24e   : > { %2227 = vmatprep.mubr.f32.mxu0 %v892_v45  ;;  %v2775_v45 = vld [vmem:[#allocation2 + $0x9] sm:$0xff]  ;;  %5862 = vmatpush3.bf16.msra.mxu0 %v7368_v54 }
 0x24f   : > { %5694 = vmatpush1.bf16.msra.mxu1 %v5693_v33 }
 0x250   : > { %5695 = vmatprep.subr.bf16.mxu1 %v8303_v0 }
 0x251   : > { %2228 = vmatmul.mubr.f32.gmra.mrb[18].mxu0 %v828_v7  ;;  %v3709_v7 = vld [vmem:[#allocation9 + $0x438] sm:$0xff] }
 0x252   : > { %2232 = vmatprep.mubr.f32.mxu0 %v893_v41  ;;  %v7377_v41 = vpack.c.bf16 %v3709_v7, %v3708_v38  ;;  %v3617_v38 = vld [vmem:[#allocation9 + $0x158] sm:$0xff] }
 0x253   : > { %5697 = vmatpush1.bf16.msra.mxu1 %v5696_v26  ;;  %v3712_v26 = vld [vmem:[#allocation9 + $0x450] sm:$0xff] }
 0x254   : > { %5698 = vmatprep.subr.bf16.mxu1 %v8303_v0  ;;  %8348 = vst [vmem:[#allocation17_spill] sm:$0xff] %v7377_v41  ;;  %5864 = vmatprep.subr.bf16.mxu0 %v7377_v41  ;;  %v7392_v46 = vpack.c.bf16 %v3713_v21, %v3712_v26  ;;  %v3620_v26 = vld [vmem:[#allocation9 + $0x170] sm:$0xff]  ;;  %v3621_v21 = vld [vmem:[#allocation9 + $0x178] sm:$0xff] }
 0x255   : > { %2233 = vmatmul.mubr.f32.gmra.mrb[20].mxu0 %v829_v15  ;;  %v3710_v15 = vld [vmem:[#allocation9 + $0x440] sm:$0xff] }
 0x256   : > { %2237 = vmatprep.mubr.f32.mxu0 %v894_v24  ;;  %5866 = vmatpush3.bf16.msra.mxu0 %v7377_v41  ;;  %v3711_v24 = vld [vmem:[#allocation9 + $0x448] sm:$0xff]  ;;  %8350 = vst [vmem:[#allocation19_spill] sm:$0xff] %v7392_v46 }
 0x257   : > { %5700 = vmatpush1.bf16.msra.mxu1 %v5699_v2  ;;  %v7384_v33 = vpack.c.bf16 %v3711_v24, %v3710_v15  ;;  %v845_v2 = vld [vmem:[#allocation2 + $0x168] sm:$0xff]  ;;  %v3619_v15 = vld [vmem:[#allocation9 + $0x168] sm:$0xff] }
 0x258   : > { %5701 = vmatprep.subr.bf16.mxu1 %v8303_v0 }
 0x259   : > { %2238 = vmatmul.mubr.f32.gmra.mrb[22].mxu0 %v830_v56  ;;  %8349 = vst [vmem:[#allocation18_spill] sm:$0xff] %v7384_v33  ;;  %5868 = vmatprep.subr.bf16.mxu0 %v7384_v33  ;;  %v909_v56 = vld [vmem:[#allocation2 + $0x169] sm:$0xff] }
 0x25a   : > { %2242 = vmatprep.mubr.f32.mxu0 %v895_v59  ;;  %5870 = vmatpush3.bf16.msra.mxu0 %v7384_v33 }
 0x25b   : > { %5703 = vmatpush1.bf16.msra.mxu1 %v5702_v12  ;;  %5872 = vmatprep.subr.bf16.mxu0 %v7392_v46 }
 0x25c   : > { %5704 = vmatprep.subr.bf16.mxu1 %v8303_v0 }
 0x25d   : > { %2243 = vmatmul.mubr.f32.gmra.mrb[24].mxu0 %v831_v60  ;;  %v3606_v60 = vld [vmem:[#allocation9 + $0x100] sm:$0xff] }
 0x25e   : > { %2247 = vmatprep.mubr.f32.mxu0 %v896_v62  ;;  %v3607_v62 = vld [vmem:[#allocation9 + $0x108] sm:$0xff]  ;;  %5874 = vmatpush3.bf16.msra.mxu0 %v7392_v46 }
 0x25f   : > { %5706 = vmatpush1.bf16.msra.mxu1 %v5705_v34  ;;  %v3612_v34 = vld [vmem:[#allocation9 + $0x130] sm:$0xff] }
 0x260   : > { %5707 = vmatprep.subr.bf16.mxu1 %v8303_v0 }
 0x261   : > { %2248 = vmatmul.mubr.f32.gmra.mrb[26].mxu0 %v832_v55  ;;  %v5708_v55 = vpack.c.bf16 %v3607_v62, %v3606_v60  ;;  %v5729_v60 = vpack.c.bf16 %v3621_v21, %v3620_v26  ;;  %v7476_v21 = vld [vmem:[%s8293_s2] ss:$0 sm:$0xff] }
 0x262   : > { %2252 = vmatprep.mubr.f32.mxu0 %v897_v57  ;;  %3783 = vmatmul.mubr.f32.vlgmr.msra.gmra.mrb[32].mxu1 %v2710_v8  ;;  %v910_v57 = vld [vmem:[#allocation2 + $0x171] sm:$0xff]  ;;  %v5720_v8 = vpack.c.bf16 %v3615_v35, %v3614_v6 }
 0x263   : > { %3787 = vmatprep.mubr.f32.mxu1 %v2775_v45  ;;  %5709 = vmatpush1.bf16.msra.mxu1 %v5708_v55  ;;  %v3622_v55 = vld [vmem:[#allocation9 + $0x180] sm:$0xff]  ;;  %v3631_v6 = vld [vmem:[#allocation9 + $0x1c8] sm:$0xff] }
 0x264   : > { %5710 = vmatprep.subr.bf16.mxu1 %v8303_v0 }
 0x265   : > { %2253 = vmatmul.mubr.f32.gmra.mrb[28].mxu0 %v833_v9  ;;  %v3714_v9 = vld [vmem:[#allocation9 + $0x460] sm:$0xff] }
 0x266   : > { %2257 = vmatprep.mubr.f32.mxu0 %v898_v31  ;;  %3788 = vmatmul.mubr.f32.gmra.mrb[34].mxu1 %v7379_v44  ;;  %v3715_v31 = vld [vmem:[#allocation9 + $0x468] sm:$0xff] }
 0x269   : > { %2258 = vmatmul.mubr.f32.gmra.mrb[30].mxu0 %v834_v19  ;;  %v7396_v19 = vpack.c.bf16 %v3715_v31, %v3714_v9 }
 0x26a   : > { %2262 = vmatprep.mubr.f32.mxu0 %v899_v17  ;;  %v846_v17 = vld [vmem:[#allocation2 + $0x170] sm:$0xff] }
 0x26b   : > { %8351 = vst [vmem:[#allocation20_spill] sm:$0xff] %v7396_v19  ;;  %5876 = vmatprep.subr.bf16.mxu0 %v7396_v19 }
 0x26c   : > { %5878 = vmatpush3.bf16.msra.mxu0 %v7396_v19 }
 0x26d   : > { %2263 = vmatmul.mubr.f32.gmra.mrb[32].mxu0 %v835_v61 }
 0x26e   : > { %2267 = vmatprep.mubr.f32.mxu0 %v900_v39 }
 0x271   : > { %2268 = vmatmul.mubr.f32.gmra.mrb[34].mxu0 %v836_v20  ;;  %v3716_v20 = vld [vmem:[#allocation9 + $0x470] sm:$0xff] }
 0x272   : > { %2272 = vmatprep.mubr.f32.mxu0 %v901_v43  ;;  %v3717_v43 = vld [vmem:[#allocation9 + $0x478] sm:$0xff] }
 0x275   : > { %2273 = vmatmul.mubr.f32.gmra.mrb[36].mxu0 %v837_v42  ;;  %v7405_v42 = vpack.c.bf16 %v3717_v43, %v3716_v20  ;;  %v3624_v20 = vld [vmem:[#allocation9 + $0x190] sm:$0xff]  ;;  %v3625_v43 = vld [vmem:[#allocation9 + $0x198] sm:$0xff] }
 0x276   : > { %2277 = vmatprep.mubr.f32.mxu0 %v902_v23  ;;  %v3608_v23 = vld [vmem:[#allocation9 + $0x110] sm:$0xff] }
 0x277   : > { %8352 = vst [vmem:[#allocation21_spill] sm:$0xff] %v7405_v42  ;;  %5880 = vmatprep.subr.bf16.mxu0 %v7405_v42 }
 0x278   : > { %v7359_v1 = vpop.f32.mrb[0].mxu1  ;;  %5882 = vmatpush3.bf16.msra.mxu0 %v7405_v42 }
 0x279   : > { %2278 = vmatmul.mubr.f32.gmra.mrb[38].mxu0 %v838_v51  ;;  %v7362_v49 = vpop.f32.mrb[1].mxu1  ;;  %v3609_v51 = vld [vmem:[#allocation9 + $0x118] sm:$0xff] }
 0x27a   : > { %2282 = vmatprep.mubr.f32.mxu0 %v903_v53  ;;  %v6387_v53 = vld [vmem:[#allocation2 + $0x181] sm:$0xff] }
 0x27c   : > { %v7372_v13 = vpop.f32.mrb[2].mxu1 }
 0x27d   : > { %2283 = vmatmul.mubr.f32.gmra.mrb[40].mxu0 %v839_v47  ;;  %v7375_v28 = vpop.f32.mrb[3].mxu1  ;;  %v5711_v47 = vpack.c.bf16 %v3609_v51, %v3608_v23  ;;  %v5735_v23 = vpack.c.bf16 %v3625_v43, %v3624_v20  ;;  %v3636_v43 = vld [vmem:[#allocation9 + $0x1f0] sm:$0xff] }
 0x27e   : > { %2287 = vmatprep.mubr.f32.mxu0 %v904_v29  ;;  %v913_v29 = vld [vmem:[#allocation2 + $0x199] sm:$0xff] }
 0x27f   : > { %5712 = vmatpush1.bf16.msra.mxu1 %v5711_v47  ;;  %v3626_v47 = vld [vmem:[#allocation9 + $0x1a0] sm:$0xff] }
 0x280   : > { %v7387_v22 = vpop.f32.mrb[4].mxu1  ;;  %5713 = vmatprep.subr.bf16.mxu1 %v8303_v0 }
 0x281   : > { %2288 = vmatmul.mubr.f32.gmra.mrb[42].mxu0 %v840_v30  ;;  %v7390_v59 = vpop.f32.mrb[5].mxu1  ;;  %v3610_v30 = vld [vmem:[#allocation9 + $0x120] sm:$0xff] }
 0x282   : > { %2292 = vmatprep.mubr.f32.mxu0 %v905_v37  ;;  %v5714_v37 = vpack.c.bf16 %v3611_v58, %v3610_v30 }
 0x284   : > { %v7400_v61 = vpop.f32.mrb[6].mxu1  ;;  %5715 = vmatpush1.bf16.msra.mxu1 %v5714_v37  ;;  %v3629_v37 = vld [vmem:[#allocation9 + $0x1b8] sm:$0xff] }
 0x285   : > { %2293 = vmatmul.mubr.f32.gmra.mrb[44].mxu0 %v841_v52  ;;  %v7403_v39 = vpop.f32.mrb[7].mxu1  ;;  %5716 = vmatprep.subr.bf16.mxu1 %v8303_v0  ;;  %v3613_v52 = vld [vmem:[#allocation9 + $0x138] sm:$0xff] }
 0x286   : > { %2297 = vmatprep.mubr.f32.mxu0 %v906_v11 }
 0x288   : > { %v7411_v25 = vpop.f32.mrb[8].mxu1 }
 0x289   : > { %2298 = vmatmul.mubr.f32.gmra.mrb[46].mxu0 %v842_v36  ;;  %v7413_v12 = vpop.f32.mrb[9].mxu1 }
 0x28a   : > { %2302 = vmatprep.mubr.f32.mxu0 %v907_v5  ;;  %v3616_v5 = vld [vmem:[#allocation9 + $0x150] sm:$0xff] }
 0x28b   : > { %v5723_v7 = vpack.c.bf16 %v3617_v38, %v3616_v5  ;;  %v3632_v38 = vld [vmem:[#allocation9 + $0x1d0] sm:$0xff] }
 0x28d   : > { %2303 = vmatmul.mubr.f32.gmra.mrb[48].mxu0 %v843_v48 }
 0x28e   : > { %2307 = vmatprep.mubr.f32.mxu0 %v908_v16  ;;  %v3618_v16 = vld [vmem:[#allocation9 + $0x160] sm:$0xff] }
 0x28f   : > { %v5726_v24 = vpack.c.bf16 %v3619_v15, %v3618_v16  ;;  %v3634_v15 = vld [vmem:[#allocation9 + $0x1e0] sm:$0xff] }
 0x291   : > { %2308 = vmatmul.mubr.f32.gmra.mrb[50].mxu0 %v844_v40 }
 0x292   : > { %2312 = vmatprep.mubr.f32.mxu0 %v909_v56 }
 0x295   : > { %2313 = vmatmul.mubr.f32.gmra.mrb[52].mxu0 %v845_v2 }
 0x296   : > { %2317 = vmatprep.mubr.f32.mxu0 %v910_v57  ;;  %v3623_v57 = vld [vmem:[#allocation9 + $0x188] sm:$0xff] }
 0x297   : > { %v5732_v9 = vpack.c.bf16 %v3623_v57, %v3622_v55 }
 0x299   : > { %2318 = vmatmul.mubr.f32.gmra.mrb[54].mxu0 %v846_v17 }
 0x29a   : > { %2322 = vmatprep.mubr.f32.mxu0 %v6387_v53 }
 0x29d   : > { %2323 = vmatmul.mubr.f32.gmra.mrb[56].mxu0 %v7249_v10  ;;  %v7417_v10 = vpop.f32.mrb[10].mxu1 }
 0x29e   : > { %2327 = vmatprep.mubr.f32.mxu0 %v6388_v14  ;;  %v7419_v18 = vpop.f32.mrb[11].mxu1  ;;  %v3627_v14 = vld [vmem:[#allocation9 + $0x1a8] sm:$0xff] }
 0x29f   : > { %v7423_v4 = vpop.f32.mrb[12].mxu1 }
 0x2a0   : > { %v7425_v11 = vpop.f32.mrb[13].mxu1 }
 0x2a1   : > { %2328 = vmatmul.mubr.f32.gmra.mrb[58].mxu0 %v7255_v50  ;;  %v5717_v50 = vpack.c.bf16 %v3613_v52, %v3612_v34  ;;  %v7428_v36 = vpop.f32.mrb[14].mxu1 }
 0x2a2   : > { %2332 = vmatprep.mubr.f32.mxu0 %v913_v29  ;;  %v7430_v45 = vpop.f32.mrb[15].mxu1  ;;  %v5738_v29 = vpack.c.bf16 %v3627_v14, %v3626_v47 }
 0x2a3   : > { %5718 = vmatpush1.bf16.msra.mxu1 %v5717_v50  ;;  %v3630_v50 = vld [vmem:[#allocation9 + $0x1c0] sm:$0xff] }
 0x2a4   : > { %5719 = vmatprep.subr.bf16.mxu1 %v8303_v0  ;;  %v5744_v35 = vpack.c.bf16 %v3631_v6, %v3630_v50 }
 0x2a5   : > { %2333 = vmatmul.mubr.f32.gmra.mrb[60].mxu0 %v849_v32  ;;  %v3628_v32 = vld [vmem:[#allocation9 + $0x1b0] sm:$0xff] }
 0x2a6   : > { %2337 = vmatprep.mubr.f32.mxu0 %v914_v63  ;;  %v5741_v63 = vpack.c.bf16 %v3629_v37, %v3628_v32 }
 0x2a7   : > { %5721 = vmatpush1.bf16.msra.mxu1 %v5720_v8 }
 0x2a8   : > { %5722 = vmatprep.subr.bf16.mxu1 %v8303_v0 }
 0x2a9   : > { %2338 = vmatmul.mubr.f32.gmra.mrb[62].mxu0 %v7379_v44  ;;  %v7433_v44 = vpop.f32.mrb[16].mxu1 }
 0x2aa   : > { %v7435_v48 = vpop.f32.mrb[17].mxu1 }
 0x2ab   : > { %5724 = vmatpush1.bf16.msra.mxu1 %v5723_v7  ;;  %v7438_v40 = vpop.f32.mrb[18].mxu1  ;;  %v3633_v7 = vld [vmem:[#allocation9 + $0x1d8] sm:$0xff] }
 0x2ac   : > { %5725 = vmatprep.subr.bf16.mxu1 %v8303_v0  ;;  %v7440_v56 = vpop.f32.mrb[19].mxu1  ;;  %v5747_v16 = vpack.c.bf16 %v3633_v7, %v3632_v38 }
 0x2ad   : > { %v7443_v62 = vpop.f32.mrb[20].mxu1 }
 0x2ae   : > { %v7445_v2 = vpop.f32.mrb[21].mxu1 }
 0x2af   : > { %5727 = vmatpush1.bf16.msra.mxu1 %v5726_v24  ;;  %v7448_v31 = vpop.f32.mrb[22].mxu1  ;;  %v3635_v24 = vld [vmem:[#allocation9 + $0x1e8] sm:$0xff] }
 0x2b0   : > { %5728 = vmatprep.subr.bf16.mxu1 %v8303_v0  ;;  %v7450_v17 = vpop.f32.mrb[23].mxu1 }
 0x2b1   : > { %v7453_v51 = vpop.f32.mrb[24].mxu1 }
 0x2b2   : > { %v7455_v53 = vpop.f32.mrb[25].mxu1 }
 0x2b3   : > { %5730 = vmatpush1.bf16.msra.mxu1 %v5729_v60  ;;  %v7458_v30 = vpop.f32.mrb[26].mxu1  ;;  %v5750_v60 = vpack.c.bf16 %v3635_v24, %v3634_v15 }
 0x2b4   : > { %5731 = vmatprep.subr.bf16.mxu1 %v8303_v0  ;;  %v7460_v58 = vpop.f32.mrb[27].mxu1 }
 0x2b5   : > { %v7463_v34 = vpop.f32.mrb[28].mxu1 }
 0x2b6   : > { %v7465_v52 = vpop.f32.mrb[29].mxu1 }
 0x2b7   : > { %5733 = vmatpush1.bf16.msra.mxu1 %v5732_v9  ;;  %v7482_v9 = vld [vmem:[%s8294_s3] ss:$0 sm:$0xff] }
 0x2b8   : > { %5734 = vmatprep.subr.bf16.mxu1 %v8303_v0 }
 0x2bb   : > { %5736 = vmatpush1.bf16.msra.mxu1 %v5735_v23  ;;  %v3637_v23 = vld [vmem:[#allocation9 + $0x1f8] sm:$0xff] }
 0x2bc   : > { %5737 = vmatprep.subr.bf16.mxu1 %v8303_v0  ;;  %v5753_v14 = vpack.c.bf16 %v3637_v23, %v3636_v43 }
 0x2bf   : > { %5739 = vmatpush1.bf16.msra.mxu1 %v5738_v29 }
 0x2c0   : > { %5740 = vmatprep.subr.bf16.mxu1 %v8303_v0 }
 0x2c3   : > { %5742 = vmatpush1.bf16.msra.mxu1 %v5741_v63 }
 0x2c4   : > { %5743 = vmatprep.subr.bf16.mxu1 %v8303_v0 }
 0x2c7   : > { %5745 = vmatpush1.bf16.msra.mxu1 %v5744_v35 }
 0x2c8   : > { %5746 = vmatprep.subr.bf16.mxu1 %v8303_v0 }
 0x2cb   : > { %5748 = vmatpush1.bf16.msra.mxu1 %v5747_v16 }
 0x2cc   : > { %5749 = vmatprep.subr.bf16.mxu1 %v8303_v0 }
 0x2cf   : > { %5751 = vmatpush1.bf16.msra.mxu1 %v5750_v60 }
 0x2d0   : > { %5752 = vmatprep.subr.bf16.mxu1 %v8303_v0 }
 0x2d3   : > { %5754 = vmatpush1.bf16.msra.mxu1 %v5753_v14 }
 0x2d4   : > { %5755 = vmatprep.subr.bf16.mxu1 %v8303_v0 }
 0x2e2   : > { %v7468_v8 = vpop.f32.mrb[30].mxu1 }
 0x2e3   : > { %v7470_v5 = vpop.f32.mrb[31].mxu1 }
 0x300   : > { %v2184_v26 = vpop.f32.mrb[0].mxu0 }
 0x301   : > { %v2410_v55 = vadd.f32 %v7362_v49, %v2184_v26  ;;  %v2186_v57 = vpop.f32.mrb[1].mxu0 }
 0x303   : > { %v2575_v20 = vmul.f32 %v7476_v21, %v2410_v55 }
 0x304   : > { %v2189_v47 = vpop.f32.mrb[2].mxu0 }
 0x305   : > { %v2614_v29 = vadd.f32 %v7482_v9, %v2575_v20  ;;  %v2415_v32 = vadd.f32 %v7359_v1, %v2189_v47  ;;  %v2191_v49 = vpop.f32.mrb[3].mxu0 }
 0x307   : > { %v2646_v37 = vmax.f32 %v2614_v29, 0.0  ;;  %v2576_v63 = vmul.f32 %v7476_v21, %v2415_v32 }
 0x308   : > { %v2194_v50 = vpop.f32.mrb[4].mxu0 }
 0x309   : > { %2678 = vst [vmem:[#allocation2 + $0x19] sm:$0xff] %v2646_v37  ;;  %v2615_v6 = vadd.f32 %v7482_v9, %v2576_v63  ;;  %v2420_v35 = vadd.f32 %v7375_v28, %v2194_v50  ;;  %v2196_v38 = vpop.f32.mrb[5].mxu0  ;;  %3792 = vmatprep.mubr.f32.mxu1 %v2646_v37 }
 0x30b   : > { %v2647_v7 = vmax.f32 %v2615_v6, 0.0  ;;  %v2577_v16 = vmul.f32 %v7476_v21, %v2420_v35 }
 0x30c   : > { %v2199_v15 = vpop.f32.mrb[6].mxu0 }
 0x30d   : > { %2679 = vst [vmem:[#allocation2 + $0x21] sm:$0xff] %v2647_v7  ;;  %v2616_v1 = vadd.f32 %v7482_v9, %v2577_v16  ;;  %v2425_v24 = vadd.f32 %v7372_v13, %v2199_v15  ;;  %v2201_v26 = vpop.f32.mrb[7].mxu0 }
 0x30f   : > { %v2648_v60 = vmax.f32 %v2616_v1, 0.0  ;;  %v2578_v55 = vmul.f32 %v7476_v21, %v2425_v24 }
 0x310   : > { %v2204_v57 = vpop.f32.mrb[8].mxu0  ;;  %v7496_v20 = vld [vmem:[#allocation2 + $0x18] sm:$0xff] }
 0x311   : > { %2680 = vst [vmem:[#allocation2 + $0x31] sm:$0xff] %v2648_v60  ;;  %v2617_v28 = vadd.f32 %v7482_v9, %v2578_v55  ;;  %v2430_v43 = vadd.f32 %v7390_v59, %v2204_v57  ;;  %v2206_v23 = vpop.f32.mrb[9].mxu0  ;;  %3793 = vmatmul.mubr.f32.gmra.mrb[36].mxu1 %v7496_v20 }
 0x312   : > { %3797 = vmatprep.mubr.f32.mxu1 %v2647_v7 }
 0x313   : > { %v2649_v47 = vmax.f32 %v2617_v28, 0.0  ;;  %v2579_v14 = vmul.f32 %v7476_v21, %v2430_v43 }
 0x314   : > { %v2209_v13 = vpop.f32.mrb[10].mxu0  ;;  %v7502_v29 = vld [vmem:[#allocation2 + $0x20] sm:$0xff] }
 0x315   : > { %2681 = vst [vmem:[#allocation2 + $0x39] sm:$0xff] %v2649_v47  ;;  %v2618_v32 = vadd.f32 %v7482_v9, %v2579_v14  ;;  %v2435_v49 = vadd.f32 %v7387_v22, %v2209_v13  ;;  %v2211_v37 = vpop.f32.mrb[11].mxu0  ;;  %3798 = vmatmul.mubr.f32.gmra.mrb[38].mxu1 %v7502_v29 }
 0x316   : > { %3802 = vmatprep.mubr.f32.mxu1 %v2648_v60 }
 0x317   : > { %v2650_v59 = vmax.f32 %v2618_v32, 0.0  ;;  %v2580_v63 = vmul.f32 %v7476_v21, %v2435_v49 }
 0x318   : > { %v2214_v50 = vpop.f32.mrb[12].mxu0  ;;  %v7508_v6 = vld [vmem:[#allocation2 + $0x30] sm:$0xff] }
 0x319   : > { %2682 = vst [vmem:[#allocation2 + $0x49] sm:$0xff] %v2650_v59  ;;  %v2619_v35 = vadd.f32 %v7482_v9, %v2580_v63  ;;  %v2440_v38 = vadd.f32 %v7403_v39, %v2214_v50  ;;  %v2216_v7 = vpop.f32.mrb[13].mxu0  ;;  %3803 = vmatmul.mubr.f32.gmra.mrb[40].mxu1 %v7508_v6 }
 0x31a   : > { %3807 = vmatprep.mubr.f32.mxu1 %v2649_v47 }
 0x31b   : > { %v2651_v22 = vmax.f32 %v2619_v35, 0.0  ;;  %v2581_v16 = vmul.f32 %v7476_v21, %v2440_v38 }
 0x31c   : > { %v2219_v15 = vpop.f32.mrb[14].mxu0  ;;  %v7514_v1 = vld [vmem:[#allocation2 + $0x32] sm:$0xff]  ;;  %v7518_v26 = vld [vmem:[#allocation2 + $0x3a] sm:$0xff] }
 0x31d   : > { %v7516_v24 = vld [vmem:[#allocation2 + $0x38] sm:$0xff]  ;;  %2683 = vst [vmem:[#allocation2 + $0x51] sm:$0xff] %v2651_v22  ;;  %v2620_v60 = vadd.f32 %v7482_v9, %v2581_v16  ;;  %v2445_v55 = vadd.f32 %v7400_v61, %v2219_v15  ;;  %v2221_v39 = vpop.f32.mrb[15].mxu0  ;;  %5387 = vmatprep.mubr.f32.mxu0 %v7514_v1 }
 0x31e   : > { %3808 = vmatmul.mubr.f32.gmra.mrb[42].mxu1 %v7516_v24  ;;  %5388 = vmatmul.mubr.f32.vlgmr.msra.gmra.mrb[64].mxu0 %v7518_v26 }
 0x31f   : > { %3812 = vmatprep.mubr.f32.mxu1 %v2650_v59  ;;  %v2652_v57 = vmax.f32 %v2620_v60, 0.0  ;;  %v2582_v28 = vmul.f32 %v7476_v21, %v2445_v55 }
 0x320   : > { %v2224_v43 = vpop.f32.mrb[16].mxu0  ;;  %v7526_v23 = vld [vmem:[#allocation2 + $0x48] sm:$0xff] }
 0x321   : > { %2684 = vst [vmem:[#allocation2 + $0x61] sm:$0xff] %v2652_v57  ;;  %v2621_v47 = vadd.f32 %v7482_v9, %v2582_v28  ;;  %v2450_v14 = vadd.f32 %v7413_v12, %v2224_v43  ;;  %v2226_v61 = vpop.f32.mrb[17].mxu0 }
 0x322   : > { %3813 = vmatmul.mubr.f32.gmra.mrb[44].mxu1 %v7526_v23 }
 0x323   : > { %3817 = vmatprep.mubr.f32.mxu1 %v2651_v22  ;;  %v2653_v13 = vmax.f32 %v2621_v47, 0.0  ;;  %v2583_v32 = vmul.f32 %v7476_v21, %v2450_v14 }
 0x324   : > { %v2229_v49 = vpop.f32.mrb[18].mxu0  ;;  %v7532_v37 = vld [vmem:[#allocation2 + $0x4a] sm:$0xff]  ;;  %v7536_v63 = vld [vmem:[#allocation2 + $0x52] sm:$0xff] }
 0x325   : > { %v7534_v59 = vld [vmem:[#allocation2 + $0x50] sm:$0xff]  ;;  %2685 = vst [vmem:[#allocation2 + $0x69] sm:$0xff] %v2653_v13  ;;  %v2622_v50 = vadd.f32 %v7482_v9, %v2583_v32  ;;  %v2455_v35 = vadd.f32 %v7411_v25, %v2229_v49  ;;  %v2231_v12 = vpop.f32.mrb[19].mxu0  ;;  %5390 = vmatprep.mubr.f32.mxu0 %v7532_v37 }
 0x326   : > { %3818 = vmatmul.mubr.f32.gmra.mrb[46].mxu1 %v7534_v59  ;;  %5391 = vmatmul.mubr.f32.gmra.mrb[66].mxu0 %v7536_v63 }
 0x327   : > { %3822 = vmatprep.mubr.f32.mxu1 %v2652_v57  ;;  %v2654_v38 = vmax.f32 %v2622_v50, 0.0  ;;  %v2584_v7 = vmul.f32 %v7476_v21, %v2455_v35 }
 0x328   : > { %v2234_v22 = vpop.f32.mrb[20].mxu0  ;;  %v7544_v16 = vld [vmem:[#allocation2 + $0x60] sm:$0xff] }
 0x329   : > { %2686 = vst [vmem:[#allocation2 + $0x79] sm:$0xff] %v2654_v38  ;;  %v2623_v15 = vadd.f32 %v7482_v9, %v2584_v7  ;;  %v2460_v60 = vadd.f32 %v7419_v18, %v2234_v22  ;;  %v2236_v25 = vpop.f32.mrb[21].mxu0 }
 0x32a   : > { %3823 = vmatmul.mubr.f32.gmra.mrb[48].mxu1 %v7544_v16 }
 0x32b   : > { %3827 = vmatprep.mubr.f32.mxu1 %v2653_v13  ;;  %v2655_v55 = vmax.f32 %v2623_v15, 0.0  ;;  %v2585_v39 = vmul.f32 %v7476_v21, %v2460_v60 }
 0x32c   : > { %v2239_v28 = vpop.f32.mrb[22].mxu0  ;;  %v7550_v57 = vld [vmem:[#allocation2 + $0x62] sm:$0xff]  ;;  %v7554_v47 = vld [vmem:[#allocation2 + $0x6a] sm:$0xff] }
 0x32d   : > { %v7552_v43 = vld [vmem:[#allocation2 + $0x68] sm:$0xff]  ;;  %2687 = vst [vmem:[#allocation2 + $0x81] sm:$0xff] %v2655_v55  ;;  %v2624_v14 = vadd.f32 %v7482_v9, %v2585_v39  ;;  %v2465_v61 = vadd.f32 %v7417_v10, %v2239_v28  ;;  %v2241_v18 = vpop.f32.mrb[23].mxu0  ;;  %5393 = vmatprep.mubr.f32.mxu0 %v7550_v57 }
 0x32e   : > { %3828 = vmatmul.mubr.f32.gmra.mrb[50].mxu1 %v7552_v43  ;;  %5394 = vmatmul.mubr.f32.gmra.mrb[68].mxu0 %v7554_v47 }
 0x32f   : > { %3832 = vmatprep.mubr.f32.mxu1 %v2654_v38  ;;  %v2656_v13 = vmax.f32 %v2624_v14, 0.0  ;;  %v2586_v32 = vmul.f32 %v7476_v21, %v2465_v61 }
 0x330   : > { %v2244_v49 = vpop.f32.mrb[24].mxu0  ;;  %v7562_v50 = vld [vmem:[#allocation2 + $0x78] sm:$0xff] }
 0x331   : > { %2688 = vst [vmem:[#allocation2 + $0x91] sm:$0xff] %v2656_v13  ;;  %v2625_v35 = vadd.f32 %v7482_v9, %v2586_v32  ;;  %v2470_v12 = vadd.f32 %v7425_v11, %v2244_v49  ;;  %v2246_v10 = vpop.f32.mrb[25].mxu0 }
 0x332   : > { %3833 = vmatmul.mubr.f32.gmra.mrb[52].mxu1 %v7562_v50 }
 0x333   : > { %3837 = vmatprep.mubr.f32.mxu1 %v2655_v55  ;;  %v2657_v7 = vmax.f32 %v2625_v35, 0.0  ;;  %v2587_v22 = vmul.f32 %v7476_v21, %v2470_v12 }
 0x334   : > { %v2249_v15 = vpop.f32.mrb[26].mxu0  ;;  %v7568_v38 = vld [vmem:[#allocation2 + $0x7a] sm:$0xff]  ;;  %v7572_v25 = vld [vmem:[#allocation2 + $0x82] sm:$0xff] }
 0x335   : > { %v7570_v60 = vld [vmem:[#allocation2 + $0x80] sm:$0xff]  ;;  %2689 = vst [vmem:[#allocation2 + $0x99] sm:$0xff] %v2657_v7  ;;  %v2626_v39 = vadd.f32 %v7482_v9, %v2587_v22  ;;  %v2475_v28 = vadd.f32 %v7423_v4, %v2249_v15  ;;  %v2251_v11 = vpop.f32.mrb[27].mxu0  ;;  %5396 = vmatprep.mubr.f32.mxu0 %v7568_v38 }
 0x336   : > { %3838 = vmatmul.mubr.f32.gmra.mrb[54].mxu1 %v7570_v60  ;;  %5397 = vmatmul.mubr.f32.gmra.mrb[70].mxu0 %v7572_v25 }
 0x337   : > { %3842 = vmatprep.mubr.f32.mxu1 %v2656_v13  ;;  %v2658_v55 = vmax.f32 %v2626_v39, 0.0  ;;  %v2588_v14 = vmul.f32 %v7476_v21, %v2475_v28 }
 0x338   : > { %v2254_v61 = vpop.f32.mrb[28].mxu0  ;;  %v7580_v18 = vld [vmem:[#allocation2 + $0x90] sm:$0xff] }
 0x339   : > { %2690 = vst [vmem:[#allocation2 + $0xa9] sm:$0xff] %v2658_v55  ;;  %v2627_v32 = vadd.f32 %v7482_v9, %v2588_v14  ;;  %v2480_v49 = vadd.f32 %v7430_v45, %v2254_v61  ;;  %v2256_v4 = vpop.f32.mrb[29].mxu0 }
 0x33a   : > { %3843 = vmatmul.mubr.f32.gmra.mrb[56].mxu1 %v7580_v18 }
 0x33b   : > { %3847 = vmatprep.mubr.f32.mxu1 %v2657_v7  ;;  %v2659_v35 = vmax.f32 %v2627_v32, 0.0  ;;  %v2589_v12 = vmul.f32 %v7476_v21, %v2480_v49 }
 0x33c   : > { %v2259_v10 = vpop.f32.mrb[30].mxu0  ;;  %v7586_v13 = vld [vmem:[#allocation2 + $0x92] sm:$0xff]  ;;  %v7590_v15 = vld [vmem:[#allocation2 + $0x9a] sm:$0xff] }
 0x33d   : > { %v7588_v22 = vld [vmem:[#allocation2 + $0x98] sm:$0xff]  ;;  %2691 = vst [vmem:[#allocation2 + $0xb1] sm:$0xff] %v2659_v35  ;;  %v2628_v39 = vadd.f32 %v7482_v9, %v2589_v12  ;;  %v2485_v28 = vadd.f32 %v7428_v36, %v2259_v10  ;;  %v2261_v45 = vpop.f32.mrb[31].mxu0  ;;  %5399 = vmatprep.mubr.f32.mxu0 %v7586_v13 }
 0x33e   : > { %3848 = vmatmul.mubr.f32.gmra.mrb[58].mxu1 %v7588_v22  ;;  %5400 = vmatmul.mubr.f32.gmra.mrb[72].mxu0 %v7590_v15 }
 0x33f   : > { %3852 = vmatprep.mubr.f32.mxu1 %v2658_v55  ;;  %v2660_v7 = vmax.f32 %v2628_v39, 0.0  ;;  %v2590_v11 = vmul.f32 %v7476_v21, %v2485_v28 }
 0x340   : > { %v2264_v14 = vpop.f32.mrb[32].mxu0  ;;  %v7598_v61 = vld [vmem:[#allocation2 + $0xa8] sm:$0xff] }
 0x341   : > { %2692 = vst [vmem:[#allocation2 + $0xc1] sm:$0xff] %v2660_v7  ;;  %v2629_v32 = vadd.f32 %v7482_v9, %v2590_v11  ;;  %v2490_v49 = vadd.f32 %v7435_v48, %v2264_v14  ;;  %v2266_v36 = vpop.f32.mrb[33].mxu0 }
 0x342   : > { %3853 = vmatmul.mubr.f32.gmra.mrb[60].mxu1 %v7598_v61 }
 0x343   : > { %3857 = vmatprep.mubr.f32.mxu1 %v2659_v35  ;;  %v2661_v4 = vmax.f32 %v2629_v32, 0.0  ;;  %v2591_v12 = vmul.f32 %v7476_v21, %v2490_v49 }
 0x344   : > { %v2269_v10 = vpop.f32.mrb[34].mxu0  ;;  %v7604_v55 = vld [vmem:[#allocation2 + $0xaa] sm:$0xff]  ;;  %v7608_v28 = vld [vmem:[#allocation2 + $0xb2] sm:$0xff] }
 0x345   : > { %v7606_v39 = vld [vmem:[#allocation2 + $0xb0] sm:$0xff]  ;;  %2693 = vst [vmem:[#allocation2 + $0xc9] sm:$0xff] %v2661_v4  ;;  %v2630_v45 = vadd.f32 %v7482_v9, %v2591_v12  ;;  %v2495_v11 = vadd.f32 %v7433_v44, %v2269_v10  ;;  %v2271_v48 = vpop.f32.mrb[35].mxu0  ;;  %5402 = vmatprep.mubr.f32.mxu0 %v7604_v55 }
 0x346   : > { %3858 = vmatmul.mubr.f32.gmra.mrb[62].mxu1 %v7606_v39  ;;  %5403 = vmatmul.mubr.f32.gmra.mrb[74].mxu0 %v7608_v28 }
 0x347   : > { %3862 = vmatprep.mubr.f32.mxu1 %v2660_v7  ;;  %v2662_v35 = vmax.f32 %v2630_v45, 0.0  ;;  %v2592_v14 = vmul.f32 %v7476_v21, %v2495_v11 }
 0x348   : > { %v2274_v32 = vpop.f32.mrb[36].mxu0  ;;  %v7616_v49 = vld [vmem:[#allocation2 + $0xc0] sm:$0xff] }
 0x349   : > { %2694 = vst [vmem:[#allocation2 + $0xd9] sm:$0xff] %v2662_v35  ;;  %v2631_v36 = vadd.f32 %v7482_v9, %v2592_v14  ;;  %v2500_v12 = vadd.f32 %v7440_v56, %v2274_v32  ;;  %v2276_v44 = vpop.f32.mrb[37].mxu0 }
 0x34a   : > { %3863 = vmatmul.mubr.f32.gmra.mrb[64].mxu1 %v7616_v49 }
 0x34b   : > { %3867 = vmatprep.mubr.f32.mxu1 %v2661_v4  ;;  %v2663_v10 = vmax.f32 %v2631_v36, 0.0  ;;  %v2593_v48 = vmul.f32 %v7476_v21, %v2500_v12 }
 0x34c   : > { %v2279_v0 = vpop.f32.mrb[38].mxu0  ;;  %v7622_v7 = vld [vmem:[#allocation2 + $0xc2] sm:$0xff]  ;;  %v7626_v11 = vld [vmem:[#allocation2 + $0xca] sm:$0xff] }
 0x34d   : > { %v7624_v45 = vld [vmem:[#allocation2 + $0xc8] sm:$0xff]  ;;  %2695 = vst [vmem:[#allocation2 + $0xe1] sm:$0xff] %v2663_v10  ;;  %v2632_v42 = vadd.f32 %v7482_v9, %v2593_v48  ;;  %v2505_v14 = vadd.f32 %v7438_v40, %v2279_v0  ;;  %v2281_v56 = vpop.f32.mrb[39].mxu0  ;;  %5405 = vmatprep.mubr.f32.mxu0 %v7622_v7 }
 0x34e   : > { %3868 = vmatmul.mubr.f32.gmra.mrb[66].mxu1 %v7624_v45  ;;  %5406 = vmatmul.mubr.f32.gmra.mrb[76].mxu0 %v7626_v11 }
 0x34f   : > { %3872 = vmatprep.mubr.f32.mxu1 %v2662_v35  ;;  %v2664_v4 = vmax.f32 %v2632_v42, 0.0  ;;  %v2594_v32 = vmul.f32 %v7476_v21, %v2505_v14 }
 0x350   : > { %v2284_v36 = vpop.f32.mrb[40].mxu0  ;;  %v7634_v12 = vld [vmem:[#allocation2 + $0xd8] sm:$0xff] }
 0x351   : > { %2696 = vst [vmem:[#allocation2 + $0xf1] sm:$0xff] %v2664_v4  ;;  %v2633_v44 = vadd.f32 %v7482_v9, %v2594_v32  ;;  %v2510_v48 = vadd.f32 %v7445_v2, %v2284_v36  ;;  %v2286_v0 = vpop.f32.mrb[41].mxu0 }
 0x352   : > { %3873 = vmatmul.mubr.f32.gmra.mrb[68].mxu1 %v7634_v12 }
 0x353   : > { %3877 = vmatprep.mubr.f32.mxu1 %v2663_v10  ;;  %v2665_v40 = vmax.f32 %v2633_v44, 0.0  ;;  %v2595_v56 = vmul.f32 %v7476_v21, %v2510_v48 }
 0x354   : > { %v2289_v19 = vpop.f32.mrb[42].mxu0  ;;  %v7640_v35 = vld [vmem:[#allocation2 + $0xda] sm:$0xff]  ;;  %v7644_v14 = vld [vmem:[#allocation2 + $0xe2] sm:$0xff] }
 0x355   : > { %v7642_v42 = vld [vmem:[#allocation2 + $0xe0] sm:$0xff]  ;;  %2697 = vst [vmem:[#allocation2 + $0xf9] sm:$0xff] %v2665_v40  ;;  %v2634_v46 = vadd.f32 %v7482_v9, %v2595_v56  ;;  %v2515_v32 = vadd.f32 %v7443_v62, %v2289_v19  ;;  %v2291_v2 = vpop.f32.mrb[43].mxu0  ;;  %5408 = vmatprep.mubr.f32.mxu0 %v7640_v35 }
 0x356   : > { %3878 = vmatmul.mubr.f32.gmra.mrb[70].mxu1 %v7642_v42  ;;  %5409 = vmatmul.mubr.f32.gmra.mrb[78].mxu0 %v7644_v14 }
 0x357   : > { %3882 = vmatprep.mubr.f32.mxu1 %v2664_v4  ;;  %v2666_v10 = vmax.f32 %v2634_v46, 0.0  ;;  %v2596_v36 = vmul.f32 %v7476_v21, %v2515_v32 }
 0x358   : > { %v2294_v44 = vpop.f32.mrb[44].mxu0  ;;  %v7652_v48 = vld [vmem:[#allocation2 + $0xf0] sm:$0xff] }
 0x359   : > { %2698 = vst [vmem:[#allocation2 + $0x109] sm:$0xff] %v2666_v10  ;;  %v2635_v0 = vadd.f32 %v7482_v9, %v2596_v36  ;;  %v2520_v56 = vadd.f32 %v7450_v17, %v2294_v44  ;;  %v2296_v19 = vpop.f32.mrb[45].mxu0 }
 0x35a   : > { %3883 = vmatmul.mubr.f32.gmra.mrb[72].mxu1 %v7652_v48 }
 0x35b   : > { %3887 = vmatprep.mubr.f32.mxu1 %v2665_v40  ;;  %v2667_v62 = vmax.f32 %v2635_v0, 0.0  ;;  %v2597_v2 = vmul.f32 %v7476_v21, %v2520_v56 }
 0x35c   : > { %v2299_v33 = vpop.f32.mrb[46].mxu0  ;;  %v7658_v4 = vld [vmem:[#allocation2 + $0xf2] sm:$0xff]  ;;  %v7662_v32 = vld [vmem:[#allocation2 + $0xfa] sm:$0xff] }
 0x35d   : > { %v7660_v46 = vld [vmem:[#allocation2 + $0xf8] sm:$0xff]  ;;  %2699 = vst [vmem:[#allocation2 + $0x111] sm:$0xff] %v2667_v62  ;;  %v2636_v41 = vadd.f32 %v7482_v9, %v2597_v2  ;;  %v2525_v36 = vadd.f32 %v7448_v31, %v2299_v33  ;;  %v2301_v17 = vpop.f32.mrb[47].mxu0  ;;  %5411 = vmatprep.mubr.f32.mxu0 %v7658_v4 }
 0x35e   : > { %3888 = vmatmul.mubr.f32.gmra.mrb[74].mxu1 %v7660_v46  ;;  %5412 = vmatmul.mubr.f32.gmra.mrb[80].mxu0 %v7662_v32 }
 0x35f   : > { %3892 = vmatprep.mubr.f32.mxu1 %v2666_v10  ;;  %v2668_v40 = vmax.f32 %v2636_v41, 0.0  ;;  %v2598_v44 = vmul.f32 %v7476_v21, %v2525_v36 }
 0x360   : > { %v2304_v0 = vpop.f32.mrb[48].mxu0  ;;  %v7670_v56 = vld [vmem:[#allocation2 + $0x108] sm:$0xff] }
 0x361   : > { %2700 = vst [vmem:[#allocation2 + $0x121] sm:$0xff] %v2668_v40  ;;  %v2637_v19 = vadd.f32 %v7482_v9, %v2598_v44  ;;  %v2530_v2 = vadd.f32 %v7455_v53, %v2304_v0  ;;  %v2306_v33 = vpop.f32.mrb[49].mxu0 }
 0x362   : > { %3893 = vmatmul.mubr.f32.gmra.mrb[76].mxu1 %v7670_v56 }
 0x363   : > { %3897 = vmatprep.mubr.f32.mxu1 %v2667_v62  ;;  %v2669_v31 = vmax.f32 %v2637_v19, 0.0  ;;  %v2599_v17 = vmul.f32 %v7476_v21, %v2530_v2 }
 0x364   : > { %v2309_v54 = vpop.f32.mrb[50].mxu0  ;;  %v7676_v10 = vld [vmem:[#allocation2 + $0x10a] sm:$0xff]  ;;  %v7680_v36 = vld [vmem:[#allocation2 + $0x112] sm:$0xff] }
 0x365   : > { %v7678_v41 = vld [vmem:[#allocation2 + $0x110] sm:$0xff]  ;;  %8353 = vst [vmem:[#allocation22_spill] sm:$0xff] %v7680_v36  ;;  %2701 = vst [vmem:[#allocation2 + $0x129] sm:$0xff] %v2669_v31  ;;  %v2638_v27 = vadd.f32 %v7482_v9, %v2599_v17  ;;  %v2535_v44 = vadd.f32 %v7453_v51, %v2309_v54  ;;  %v2311_v53 = vpop.f32.mrb[51].mxu0  ;;  %5414 = vmatprep.mubr.f32.mxu0 %v7676_v10 }
 0x366   : > { %3898 = vmatmul.mubr.f32.gmra.mrb[78].mxu1 %v7678_v41  ;;  %5415 = vmatmul.mubr.f32.gmra.mrb[82].mxu0 %v7680_v36 }
 0x367   : > { %3902 = vmatprep.mubr.f32.mxu1 %v2668_v40  ;;  %v2670_v62 = vmax.f32 %v2638_v27, 0.0  ;;  %v2600_v0 = vmul.f32 %v7476_v21, %v2535_v44 }
 0x368   : > { %v2314_v19 = vpop.f32.mrb[52].mxu0  ;;  %v7688_v2 = vld [vmem:[#allocation2 + $0x120] sm:$0xff] }
 0x369   : > { %2702 = vst [vmem:[#allocation2 + $0x139] sm:$0xff] %v2670_v62  ;;  %v2639_v33 = vadd.f32 %v7482_v9, %v2600_v0  ;;  %v2540_v17 = vadd.f32 %v7460_v58, %v2314_v19  ;;  %v2316_v54 = vpop.f32.mrb[53].mxu0 }
 0x36a   : > { %3903 = vmatmul.mubr.f32.gmra.mrb[80].mxu1 %v7688_v2 }
 0x36b   : > { %3907 = vmatprep.mubr.f32.mxu1 %v2669_v31  ;;  %v2671_v51 = vmax.f32 %v2639_v33, 0.0  ;;  %v2601_v53 = vmul.f32 %v7476_v21, %v2540_v17 }
 0x36c   : > { %v2319_v3 = vpop.f32.mrb[54].mxu0  ;;  %v7694_v40 = vld [vmem:[#allocation2 + $0x122] sm:$0xff]  ;;  %v7698_v44 = vld [vmem:[#allocation2 + $0x12a] sm:$0xff] }
 0x36d   : > { %v7696_v27 = vld [vmem:[#allocation2 + $0x128] sm:$0xff]  ;;  %8354 = vst [vmem:[#allocation23_spill] sm:$0xff] %v7698_v44  ;;  %2703 = vst [vmem:[#allocation2 + $0x141] sm:$0xff] %v2671_v51  ;;  %v2640_v36 = vadd.f32 %v7482_v9, %v2601_v53  ;;  %v2545_v0 = vadd.f32 %v7458_v30, %v2319_v3  ;;  %v2321_v58 = vpop.f32.mrb[55].mxu0  ;;  %5417 = vmatprep.mubr.f32.mxu0 %v7694_v40 }
 0x36e   : > { %3908 = vmatmul.mubr.f32.gmra.mrb[82].mxu1 %v7696_v27  ;;  %5418 = vmatmul.mubr.f32.gmra.mrb[84].mxu0 %v7698_v44 }
 0x36f   : > { %3912 = vmatprep.mubr.f32.mxu1 %v2670_v62  ;;  %v7705_v31 = vmax.f32 %v2640_v36, 0.0  ;;  %v2602_v19 = vmul.f32 %v7476_v21, %v2545_v0 }
 0x370   : > { %v2324_v33 = vpop.f32.mrb[56].mxu0  ;;  %v7708_v17 = vld [vmem:[#allocation2 + $0x138] sm:$0xff] }
 0x371   : > { %8355 = vst [vmem:[#allocation24_spill] sm:$0xff] %v7705_v31  ;;  %2704 = vst [vmem:[#allocation2 + $0x151] sm:$0xff] %v7705_v31  ;;  %v2641_v54 = vadd.f32 %v7482_v9, %v2602_v19  ;;  %v2550_v3 = vadd.f32 %v7465_v52, %v2324_v33  ;;  %v2326_v30 = vpop.f32.mrb[57].mxu0 }
 0x372   : > { %3913 = vmatmul.mubr.f32.gmra.mrb[84].mxu1 %v7708_v17 }
 0x373   : > { %3917 = vmatprep.mubr.f32.mxu1 %v2671_v51  ;;  %v7714_v53 = vmax.f32 %v2641_v54, 0.0  ;;  %v2603_v36 = vmul.f32 %v7476_v21, %v2550_v3 }
 0x374   : > { %v2329_v62 = vpop.f32.mrb[58].mxu0  ;;  %v7717_v58 = vld [vmem:[#allocation2 + $0x13a] sm:$0xff]  ;;  %v7721_v44 = vld [vmem:[#allocation2 + $0x142] sm:$0xff] }
 0x375   : > { %8356 = vst [vmem:[#allocation25_spill] sm:$0xff] %v7714_v53  ;;  %v7719_v0 = vld [vmem:[#allocation2 + $0x140] sm:$0xff]  ;;  %8357 = vst [vmem:[#allocation26_spill] sm:$0xff] %v7721_v44  ;;  %v2642_v19 = vadd.f32 %v7482_v9, %v2603_v36  ;;  %v2555_v52 = vadd.f32 %v7463_v34, %v2329_v62  ;;  %v2331_v33 = vpop.f32.mrb[59].mxu0  ;;  %5420 = vmatprep.mubr.f32.mxu0 %v7717_v58 }
 0x376   : > { %2705 = vst [vmem:[#allocation2 + $0x159] sm:$0xff] %v7714_v53  ;;  %3918 = vmatmul.mubr.f32.gmra.mrb[86].mxu1 %v7719_v0  ;;  %5421 = vmatmul.mubr.f32.gmra.mrb[86].mxu0 %v7721_v44 }
 0x377   : > { %3922 = vmatprep.mubr.f32.mxu1 %v7705_v31  ;;  %v7730_v51 = vmax.f32 %v2642_v19, 0.0  ;;  %v2604_v54 = vmul.f32 %v7476_v21, %v2555_v52 }
 0x378   : > { %v2334_v3 = vpop.f32.mrb[60].mxu0  ;;  %v7733_v30 = vld [vmem:[#allocation2 + $0x150] sm:$0xff] }
 0x379   : > { %8358 = vst [vmem:[#allocation27_spill] sm:$0xff] %v7730_v51  ;;  %2706 = vst [vmem:[#allocation2 + $0x169] sm:$0xff] %v7730_v51  ;;  %v2643_v34 = vadd.f32 %v7482_v9, %v2604_v54  ;;  %v2560_v36 = vadd.f32 %v7470_v5, %v2334_v3  ;;  %v2336_v62 = vpop.f32.mrb[61].mxu0 }
 0x37a   : > { %3923 = vmatmul.mubr.f32.gmra.mrb[88].mxu1 %v7733_v30 }
 0x37b   : > { %3927 = vmatprep.mubr.f32.mxu1 %v7714_v53  ;;  %v7740_v33 = vmax.f32 %v2643_v34, 0.0  ;;  %v2605_v19 = vmul.f32 %v7476_v21, %v2560_v36  ;;  %v3643_v53 = vld [vmem:[#allocation9 + $0x228] sm:$0xff] }
 0x37c   : > { %v2339_v31 = vpop.f32.mrb[62].mxu0 }
 0x37d   : > { %8359 = vst [vmem:[#allocation28_spill] sm:$0xff] %v7740_v33  ;;  %v7743_v52 = vld [vmem:[#allocation2 + $0x158] sm:$0xff]  ;;  %2707 = vst [vmem:[#allocation2 + $0x171] sm:$0xff] %v7740_v33  ;;  %v7747_v44 = vadd.f32 %v7482_v9, %v2605_v19  ;;  %v2565_v54 = vadd.f32 %v7468_v8, %v2339_v31  ;;  %v2341_v5 = vpop.f32.mrb[63].mxu0  ;;  %v3638_v31 = vld [vmem:[#allocation9 + $0x200] sm:$0xff] }
 0x37e   : > { %3928 = vmatmul.mubr.f32.gmra.mrb[90].mxu1 %v7743_v52  ;;  %v3639_v19 = vld [vmem:[#allocation9 + $0x208] sm:$0xff] }
 0x37f   : > { %8360 = vst [vmem:[#allocation29_spill] sm:$0xff] %v7747_v44  ;;  %3932 = vmatprep.mubr.f32.mxu1 %v7730_v51  ;;  %v8328_v3 = vmax.f32 %v7747_v44, 0.0  ;;  %v2606_v34 = vmul.f32 %v7476_v21, %v2565_v54  ;;  %v2838_v21 = vld [vmem:[#allocation2 + $0x2] sm:$0xff]  ;;  %v3642_v51 = vld [vmem:[#allocation9 + $0x220] sm:$0xff] }
 0x380   : > { %v7754_v36 = vld [vmem:[#allocation2 + $0x168] sm:$0xff]  ;;  %v3640_v54 = vld [vmem:[#allocation9 + $0x210] sm:$0xff] }
 0x381   : > { %2708 = vst [vmem:[#allocation2 + $0x181] sm:$0xff] %v8328_v3  ;;  %v7759_v62 = vadd.f32 %v7482_v9, %v2606_v34  ;;  %v5756_v9 = vpack.c.bf16 %v3639_v19, %v3638_v31  ;;  %v3641_v34 = vld [vmem:[#allocation9 + $0x218] sm:$0xff]  ;;  %v7774_v19 = vld [vmem:[#allocation2 + $0x1a] sm:$0xff] }
 0x382   : > { %3933 = vmatmul.mubr.f32.gmra.mrb[92].mxu1 %v7754_v36  ;;  %v2839_v3 = vld [vmem:[#allocation2 + $0xa] sm:$0xff]  ;;  %v5759_v44 = vpack.c.bf16 %v3641_v34, %v3640_v54  ;;  %v3652_v54 = vld [vmem:[#allocation9 + $0x270] sm:$0xff] }
 0x383   : > { %3937 = vmatprep.mubr.f32.mxu1 %v7740_v33  ;;  %v8333_v8 = vmax.f32 %v7759_v62, 0.0  ;;  %v8361_v33 = vmov 0.0|0.0   ;;  %v3645_v31 = vld [vmem:[#allocation9 + $0x238] sm:$0xff] }
 0x384   : > { %v7764_v5 = vld [vmem:[#allocation2 + $0x170] sm:$0xff]  ;;  %v3653_v34 = vld [vmem:[#allocation9 + $0x278] sm:$0xff] }
 0x385   : > { %2709 = vst [vmem:[#allocation2 + $0x189] sm:$0xff] %v8333_v8  ;;  %v5762_v8 = vpack.c.bf16 %v3643_v53, %v3642_v51  ;;  %v3649_v53 = vld [vmem:[#allocation9 + $0x258] sm:$0xff]  ;;  %v3650_v51 = vld [vmem:[#allocation9 + $0x260] sm:$0xff] }
 0x386   : > { %3938 = vmatmul.mubr.f32.gmra.mrb[94].mxu1 %v7764_v5 }
 0x387   : > { %4007 = vmatprep.mubr.f32.mxu1 %v7496_v20  ;;  %v3644_v20 = vld [vmem:[#allocation9 + $0x230] sm:$0xff] }
 0x38a   : > { %4008 = vmatmul.mubr.f32.vlgmr.msra.gmra.mrb[32].mxu1 %v2838_v21  ;;  %v3646_v21 = vld [vmem:[#allocation9 + $0x240] sm:$0xff] }
 0x38b   : > { %4012 = vmatprep.mubr.f32.mxu1 %v7502_v29  ;;  %5757 = vmatpush1.bf16.msra.mxu1 %v5756_v9  ;;  %v5765_v29 = vpack.c.bf16 %v3645_v31, %v3644_v20  ;;  %v7779_v9 = vld [vmem:[#allocation2 + $0x22] sm:$0xff]  ;;  %v3655_v20 = vld [vmem:[#allocation9 + $0x288] sm:$0xff] }
 0x38c   : > { %5758 = vmatprep.subr.bf16.mxu1 %v8361_v33  ;;  %v3657_v31 = vld [vmem:[#allocation9 + $0x298] sm:$0xff] }
 0x38e   : > { %4013 = vmatmul.mubr.f32.gmra.mrb[34].mxu1 %v2839_v3  ;;  %v3647_v3 = vld [vmem:[#allocation9 + $0x248] sm:$0xff] }
 0x38f   : > { %4017 = vmatprep.mubr.f32.mxu1 %v7508_v6  ;;  %5760 = vmatpush1.bf16.msra.mxu1 %v5759_v44  ;;  %v5768_v6 = vpack.c.bf16 %v3647_v3, %v3646_v21  ;;  %v3648_v44 = vld [vmem:[#allocation9 + $0x250] sm:$0xff]  ;;  %v3661_v21 = vld [vmem:[#allocation9 + $0x2b8] sm:$0xff]  ;;  %v3663_v3 = vld [vmem:[#allocation9 + $0x2c8] sm:$0xff] }
 0x390   : > { %5761 = vmatprep.subr.bf16.mxu1 %v8361_v33 }
 0x392   : > { %4018 = vmatmul.mubr.f32.gmra.mrb[36].mxu1 %v7774_v19 }
 0x393   : > { %4022 = vmatprep.mubr.f32.mxu1 %v7516_v24  ;;  %5763 = vmatpush1.bf16.msra.mxu1 %v5762_v8  ;;  %v5771_v24 = vpack.c.bf16 %v3649_v53, %v3648_v44  ;;  %v3651_v8 = vld [vmem:[#allocation9 + $0x268] sm:$0xff]  ;;  %v3669_v53 = vld [vmem:[#allocation9 + $0x2f8] sm:$0xff] }
 0x394   : > { %5764 = vmatprep.subr.bf16.mxu1 %v8361_v33  ;;  %v3667_v44 = vld [vmem:[#allocation9 + $0x2e8] sm:$0xff] }
 0x396   : > { %4023 = vmatmul.mubr.f32.gmra.mrb[38].mxu1 %v7779_v9 }
 0x397   : > { %4027 = vmatprep.mubr.f32.mxu1 %v7526_v23  ;;  %5766 = vmatpush1.bf16.msra.mxu1 %v5765_v29  ;;  %v5774_v23 = vpack.c.bf16 %v3651_v8, %v3650_v51  ;;  %v3659_v29 = vld [vmem:[#allocation9 + $0x2a8] sm:$0xff]  ;;  %v2967_v8 = vld [vmem:[#allocation2 + $0x21] sm:$0xff] }
 0x398   : > { %5767 = vmatprep.subr.bf16.mxu1 %v8361_v33  ;;  %v3675_v51 = vld [vmem:[#allocation9 + $0x328] sm:$0xff] }
 0x39a   : > { %4028 = vmatmul.mubr.f32.gmra.mrb[40].mxu1 %v7514_v1  ;;  %v5777_v1 = vpack.c.bf16 %v3653_v34, %v3652_v54  ;;  %v3676_v54 = vld [vmem:[#allocation9 + $0x330] sm:$0xff]  ;;  %v3677_v34 = vld [vmem:[#allocation9 + $0x338] sm:$0xff] }
 0x39b   : > { %4032 = vmatprep.mubr.f32.mxu1 %v7534_v59  ;;  %5769 = vmatpush1.bf16.msra.mxu1 %v5768_v6  ;;  %v3654_v59 = vld [vmem:[#allocation9 + $0x280] sm:$0xff]  ;;  %v3665_v6 = vld [vmem:[#allocation9 + $0x2d8] sm:$0xff] }
 0x39c   : > { %5770 = vmatprep.subr.bf16.mxu1 %v8361_v33 }
 0x39e   : > { %4033 = vmatmul.mubr.f32.gmra.mrb[42].mxu1 %v7518_v26  ;;  %v5780_v26 = vpack.c.bf16 %v3655_v20, %v3654_v59 }
 0x39f   : > { %4037 = vmatprep.mubr.f32.mxu1 %v7544_v16  ;;  %5772 = vmatpush1.bf16.msra.mxu1 %v5771_v24  ;;  %v3656_v16 = vld [vmem:[#allocation9 + $0x290] sm:$0xff]  ;;  %v3674_v24 = vld [vmem:[#allocation9 + $0x320] sm:$0xff] }
 0x3a0   : > { %5773 = vmatprep.subr.bf16.mxu1 %v8361_v33 }
 0x3a2   : > { %4038 = vmatmul.mubr.f32.gmra.mrb[44].mxu1 %v7532_v37  ;;  %v5783_v37 = vpack.c.bf16 %v3657_v31, %v3656_v16  ;;  %v3678_v16 = vld [vmem:[#allocation9 + $0x340] sm:$0xff]  ;;  %v3679_v31 = vld [vmem:[#allocation9 + $0x348] sm:$0xff] }
 0x3a3   : > { %4042 = vmatprep.mubr.f32.mxu1 %v7552_v43  ;;  %5775 = vmatpush1.bf16.msra.mxu1 %v5774_v23  ;;  %v3658_v43 = vld [vmem:[#allocation9 + $0x2a0] sm:$0xff]  ;;  %v5810_v23 = vpack.c.bf16 %v3675_v51, %v3674_v24  ;;  %v3688_v51 = vld [vmem:[#allocation9 + $0x390] sm:$0xff] }
 0x3a4   : > { %5776 = vmatprep.subr.bf16.mxu1 %v8361_v33 }
 0x3a6   : > { %4043 = vmatmul.mubr.f32.gmra.mrb[46].mxu1 %v7536_v63  ;;  %v5786_v63 = vpack.c.bf16 %v3659_v29, %v3658_v43  ;;  %v3034_v43 = vld [vmem:[#allocation2 + $0x4a] sm:$0xff]  ;;  %v5816_v29 = vpack.c.bf16 %v3679_v31, %v3678_v16  ;;  %v3691_v16 = vld [vmem:[#allocation9 + $0x3a8] sm:$0xff]  ;;  %v7927_v31 = vld [vmem:[#allocation2 + $0x81] sm:$0xff] }
 0x3a7   : > { %4047 = vmatprep.mubr.f32.mxu1 %v7562_v50  ;;  %5778 = vmatpush1.bf16.msra.mxu1 %v5777_v1  ;;  %v3660_v50 = vld [vmem:[#allocation9 + $0x2b0] sm:$0xff]  ;;  %v7883_v1 = vld [vmem:[#allocation2 + $0x31] sm:$0xff] }
 0x3a8   : > { %5779 = vmatprep.subr.bf16.mxu1 %v8361_v33 }
 0x3aa   : > { %4048 = vmatmul.mubr.f32.gmra.mrb[48].mxu1 %v7550_v57  ;;  %v5789_v57 = vpack.c.bf16 %v3661_v21, %v3660_v50  ;;  %v3681_v50 = vld [vmem:[#allocation9 + $0x358] sm:$0xff] }
 0x3ab   : > { %4052 = vmatprep.mubr.f32.mxu1 %v7570_v60  ;;  %5781 = vmatpush1.bf16.msra.mxu1 %v5780_v26  ;;  %v3662_v60 = vld [vmem:[#allocation9 + $0x2c0] sm:$0xff]  ;;  %v5813_v26 = vpack.c.bf16 %v3677_v34, %v3676_v54  ;;  %v3039_v54 = vld [vmem:[#allocation2 + $0x82] sm:$0xff] }
 0x3ac   : > { %5782 = vmatprep.subr.bf16.mxu1 %v8361_v33  ;;  %v7895_v21 = vld [vmem:[#allocation2 + $0x49] sm:$0xff] }
 0x3ae   : > { %4053 = vmatmul.mubr.f32.gmra.mrb[50].mxu1 %v7554_v47  ;;  %v5792_v47 = vpack.c.bf16 %v3663_v3, %v3662_v60  ;;  %v3035_v60 = vld [vmem:[#allocation2 + $0x52] sm:$0xff] }
 0x3af   : > { %4057 = vmatprep.mubr.f32.mxu1 %v7580_v18  ;;  %5784 = vmatpush1.bf16.msra.mxu1 %v5783_v37  ;;  %v3664_v18 = vld [vmem:[#allocation9 + $0x2d0] sm:$0xff] }
 0x3b0   : > { %5785 = vmatprep.subr.bf16.mxu1 %v8361_v33  ;;  %v7891_v37 = vld [vmem:[#allocation2 + $0x39] sm:$0xff] }
 0x3b2   : > { %4058 = vmatmul.mubr.f32.gmra.mrb[52].mxu1 %v7568_v38  ;;  %v5795_v38 = vpack.c.bf16 %v3665_v6, %v3664_v18  ;;  %v3682_v18 = vld [vmem:[#allocation9 + $0x360] sm:$0xff]  ;;  %v3683_v6 = vld [vmem:[#allocation9 + $0x368] sm:$0xff] }
 0x3b3   : > { %4062 = vmatprep.mubr.f32.mxu1 %v7588_v22  ;;  %5787 = vmatpush1.bf16.msra.mxu1 %v5786_v63  ;;  %v3666_v22 = vld [vmem:[#allocation9 + $0x2e0] sm:$0xff]  ;;  %v3680_v63 = vld [vmem:[#allocation9 + $0x350] sm:$0xff] }
 0x3b4   : > { %5788 = vmatprep.subr.bf16.mxu1 %v8361_v33 }
 0x3b6   : > { %4063 = vmatmul.mubr.f32.gmra.mrb[54].mxu1 %v7572_v25  ;;  %v5798_v25 = vpack.c.bf16 %v3667_v44, %v3666_v22  ;;  %v3036_v22 = vld [vmem:[#allocation2 + $0x62] sm:$0xff]  ;;  %v5822_v44 = vpack.c.bf16 %v3683_v6, %v3682_v18  ;;  %v3041_v18 = vld [vmem:[#allocation2 + $0x9a] sm:$0xff] }
 0x3b7   : > { %4067 = vmatprep.mubr.f32.mxu1 %v7598_v61  ;;  %5790 = vmatpush1.bf16.msra.mxu1 %v5789_v57  ;;  %v3668_v61 = vld [vmem:[#allocation9 + $0x2f0] sm:$0xff] }
 0x3b8   : > { %5791 = vmatprep.subr.bf16.mxu1 %v8361_v33 }
 0x3ba   : > { %4068 = vmatmul.mubr.f32.gmra.mrb[56].mxu1 %v7586_v13  ;;  %v5801_v13 = vpack.c.bf16 %v3669_v53, %v3668_v61  ;;  %v3685_v61 = vld [vmem:[#allocation9 + $0x378] sm:$0xff] }
 0x3bb   : > { %4072 = vmatprep.mubr.f32.mxu1 %v7606_v39  ;;  %5793 = vmatpush1.bf16.msra.mxu1 %v5792_v47  ;;  %v5819_v47 = vpack.c.bf16 %v3681_v50, %v3680_v63  ;;  %v7907_v53 = vld [vmem:[#allocation2 + $0x61] sm:$0xff] }
 0x3bc   : > { %5794 = vmatprep.subr.bf16.mxu1 %v8361_v33  ;;  %v3692_v63 = vld [vmem:[#allocation9 + $0x3b0] sm:$0xff]  ;;  %v3693_v50 = vld [vmem:[#allocation9 + $0x3b8] sm:$0xff] }
 0x3be   : > { %4073 = vmatmul.mubr.f32.gmra.mrb[58].mxu1 %v7590_v15  ;;  %v8362_v15 = vld [vmem:[#allocation22_spill] sm:$0xff] }
 0x3bf   : > { %4077 = vmatprep.mubr.f32.mxu1 %v7616_v49  ;;  %5796 = vmatpush1.bf16.msra.mxu1 %v5795_v38  ;;  %v8364_v49 = vld [vmem:[#allocation26_spill] sm:$0xff] }
 0x3c0   : > { %5797 = vmatprep.subr.bf16.mxu1 %v8361_v33  ;;  %v7903_v38 = vld [vmem:[#allocation2 + $0x51] sm:$0xff] }
 0x3c2   : > { %4078 = vmatmul.mubr.f32.gmra.mrb[60].mxu1 %v7604_v55  ;;  %v8363_v55 = vld [vmem:[#allocation23_spill] sm:$0xff] }
 0x3c3   : > { %4082 = vmatprep.mubr.f32.mxu1 %v7624_v45  ;;  %5799 = vmatpush1.bf16.msra.mxu1 %v5798_v25  ;;  %v3684_v25 = vld [vmem:[#allocation9 + $0x370] sm:$0xff] }
 0x3c4   : > { %5800 = vmatprep.subr.bf16.mxu1 %v8361_v33 }
 0x3c6   : > { %4083 = vmatmul.mubr.f32.gmra.mrb[62].mxu1 %v7608_v28 }
 0x3c7   : > { %4087 = vmatprep.mubr.f32.mxu1 %v7634_v12  ;;  %5802 = vmatpush1.bf16.msra.mxu1 %v5801_v13  ;;  %v7856_v12 = vld [vmem:[#allocation2 + $0x15a] sm:$0xff] }
 0x3c8   : > { %5803 = vmatprep.subr.bf16.mxu1 %v8361_v33 }
 0x3ca   : > { %4088 = vmatmul.mubr.f32.gmra.mrb[64].mxu1 %v7622_v7  ;;  %v7848_v7 = vld [vmem:[#allocation2 + $0x152] sm:$0xff] }
 0x3cb   : > { %4092 = vmatprep.mubr.f32.mxu1 %v7642_v42  ;;  %v7862_v42 = vld [vmem:[#allocation2 + $0x16a] sm:$0xff] }
 0x3ce   : > { %4093 = vmatmul.mubr.f32.gmra.mrb[66].mxu1 %v7626_v11 }
 0x3cf   : > { %4097 = vmatprep.mubr.f32.mxu1 %v7652_v48  ;;  %v7867_v48 = vld [vmem:[#allocation2 + $0x188] sm:$0xff] }
 0x3d2   : > { %4098 = vmatmul.mubr.f32.gmra.mrb[68].mxu1 %v7640_v35  ;;  %v7859_v35 = vld [vmem:[#allocation2 + $0x180] sm:$0xff] }
 0x3d3   : > { %4102 = vmatprep.mubr.f32.mxu1 %v7660_v46 }
 0x3d6   : > { %4103 = vmatmul.mubr.f32.gmra.mrb[70].mxu1 %v7644_v14 }
 0x3d7   : > { %4107 = vmatprep.mubr.f32.mxu1 %v7670_v56  ;;  %v3670_v56 = vld [vmem:[#allocation9 + $0x300] sm:$0xff] }
 0x3da   : > { %4108 = vmatmul.mubr.f32.gmra.mrb[72].mxu1 %v7658_v4 }
 0x3db   : > { %4112 = vmatprep.mubr.f32.mxu1 %v7678_v41  ;;  %v3671_v41 = vld [vmem:[#allocation9 + $0x308] sm:$0xff] }
 0x3de   : > { %4113 = vmatmul.mubr.f32.gmra.mrb[74].mxu1 %v7662_v32 }
 0x3df   : > { %4117 = vmatprep.mubr.f32.mxu1 %v7688_v2  ;;  %v7872_v2 = vld [vmem:[#allocation2 + $0x172] sm:$0xff] }
 0x3e2   : > { %4118 = vmatmul.mubr.f32.gmra.mrb[76].mxu1 %v7676_v10 }
 0x3e3   : > { %4122 = vmatprep.mubr.f32.mxu1 %v7696_v27  ;;  %v5804_v27 = vpack.c.bf16 %v3671_v41, %v3670_v56  ;;  %v3037_v56 = vld [vmem:[#allocation2 + $0x6a] sm:$0xff] }
 0x3e6   : > { %4123 = vmatmul.mubr.f32.gmra.mrb[78].mxu1 %v8362_v15 }
 0x3e7   : > { %4127 = vmatprep.mubr.f32.mxu1 %v7708_v17  ;;  %v3672_v17 = vld [vmem:[#allocation9 + $0x310] sm:$0xff] }
 0x3ea   : > { %4128 = vmatmul.mubr.f32.gmra.mrb[80].mxu1 %v7694_v40 }
 0x3eb   : > { %4132 = vmatprep.mubr.f32.mxu1 %v7719_v0  ;;  %v3673_v0 = vld [vmem:[#allocation9 + $0x318] sm:$0xff] }
 0x3ee   : > { %4133 = vmatmul.mubr.f32.gmra.mrb[82].mxu1 %v8363_v55 }
 0x3ef   : > { %4137 = vmatprep.mubr.f32.mxu1 %v7733_v30  ;;  %v2966_v30 = vld [vmem:[#allocation2 + $0x19] sm:$0xff] }
 0x3f1   : > { %v7840_v39 = vpop.f32.mrb[64].mxu0 }
 0x3f2   : > { %4138 = vmatmul.mubr.f32.gmra.mrb[84].mxu1 %v7717_v58  ;;  %v7843_v28 = vpop.f32.mrb[65].mxu0 }
 0x3f3   : > { %4142 = vmatprep.mubr.f32.mxu1 %v7743_v52 }
 0x3f6   : > { %4143 = vmatmul.mubr.f32.gmra.mrb[86].mxu1 %v8364_v49 }
 0x3f7   : > { %4147 = vmatprep.mubr.f32.mxu1 %v7754_v36 }
 0x3f9   : > { %v7850_v45 = vpop.f32.mrb[66].mxu0 }
 0x3fa   : > { %4148 = vmatmul.mubr.f32.gmra.mrb[88].mxu1 %v7848_v7  ;;  %v7853_v11 = vpop.f32.mrb[67].mxu0 }
 0x3fb   : > { %4152 = vmatprep.mubr.f32.mxu1 %v7764_v5  ;;  %v5807_v5 = vpack.c.bf16 %v3673_v0, %v3672_v17  ;;  %v3686_v17 = vld [vmem:[#allocation9 + $0x380] sm:$0xff]  ;;  %v3687_v0 = vld [vmem:[#allocation9 + $0x388] sm:$0xff] }
 0x3fc   : > { %v5828_v24 = vpack.c.bf16 %v3687_v0, %v3686_v17  ;;  %v3696_v17 = vld [vmem:[#allocation9 + $0x3d0] sm:$0xff]  ;;  %v3697_v0 = vld [vmem:[#allocation9 + $0x3d8] sm:$0xff] }
 0x3fe   : > { %4153 = vmatmul.mubr.f32.gmra.mrb[90].mxu1 %v7856_v12 }
 0x3ff   : > { %4157 = vmatprep.mubr.f32.mxu1 %v7859_v35 }
 0x401   : > { %v7864_v14 = vpop.f32.mrb[68].mxu0 }
 0x402   : > { %4158 = vmatmul.mubr.f32.gmra.mrb[92].mxu1 %v7862_v42  ;;  %v7869_v46 = vpop.f32.mrb[69].mxu0 }
 0x403   : > { %4162 = vmatprep.mubr.f32.mxu1 %v7867_v48 }
 0x406   : > { %4163 = vmatmul.mubr.f32.gmra.mrb[94].mxu1 %v7872_v2 }
 0x407   : > { %4232 = vmatprep.mubr.f32.mxu1 %v7774_v19  ;;  %v3032_v19 = vld [vmem:[#allocation2 + $0x32] sm:$0xff] }
 0x409   : > { %v7876_v52 = vpop.f32.mrb[70].mxu0 }
 0x40a   : > { %4233 = vmatmul.mubr.f32.vlgmr.msra.gmra.mrb[32].mxu1 %v2966_v30  ;;  %v7878_v36 = vpop.f32.mrb[71].mxu0  ;;  %v7915_v30 = vld [vmem:[#allocation2 + $0x69] sm:$0xff] }
 0x40b   : > { %4237 = vmatprep.mubr.f32.mxu1 %v7779_v9  ;;  %5805 = vmatpush1.bf16.msra.mxu1 %v5804_v27  ;;  %v3033_v9 = vld [vmem:[#allocation2 + $0x3a] sm:$0xff]  ;;  %v5825_v27 = vpack.c.bf16 %v3685_v61, %v3684_v25 }
 0x40c   : > { %5806 = vmatprep.subr.bf16.mxu1 %v8361_v33  ;;  %v3695_v25 = vld [vmem:[#allocation9 + $0x3c8] sm:$0xff] }
 0x40d   : > { %v7939_v61 = vld [vmem:[#allocation2 + $0x99] sm:$0xff] }
 0x40e   : > { %4238 = vmatmul.mubr.f32.gmra.mrb[34].mxu1 %v2967_v8  ;;  %v3689_v8 = vld [vmem:[#allocation9 + $0x398] sm:$0xff] }
 0x40f   : > { %4242 = vmatprep.mubr.f32.mxu1 %v3032_v19  ;;  %5808 = vmatpush1.bf16.msra.mxu1 %v5807_v5  ;;  %v3038_v5 = vld [vmem:[#allocation2 + $0x7a] sm:$0xff] }
 0x410   : > { %5809 = vmatprep.subr.bf16.mxu1 %v8361_v33  ;;  %v7919_v19 = vld [vmem:[#allocation2 + $0x79] sm:$0xff] }
 0x411   : > { %v7885_v59 = vpop.f32.mrb[72].mxu0 }
 0x412   : > { %4243 = vmatmul.mubr.f32.gmra.mrb[36].mxu1 %v7883_v1  ;;  %v7888_v20 = vpop.f32.mrb[73].mxu0 }
 0x413   : > { %4247 = vmatprep.mubr.f32.mxu1 %v3033_v9  ;;  %5811 = vmatpush1.bf16.msra.mxu1 %v5810_v23  ;;  %v5831_v9 = vpack.c.bf16 %v3689_v8, %v3688_v51  ;;  %v3043_v51 = vld [vmem:[#allocation2 + $0xb2] sm:$0xff] }
 0x414   : > { %5812 = vmatprep.subr.bf16.mxu1 %v8361_v33 }
 0x416   : > { %4248 = vmatmul.mubr.f32.gmra.mrb[38].mxu1 %v7891_v37 }
 0x417   : > { %4252 = vmatprep.mubr.f32.mxu1 %v3034_v43  ;;  %5814 = vmatpush1.bf16.msra.mxu1 %v5813_v26  ;;  %v3690_v26 = vld [vmem:[#allocation9 + $0x3a0] sm:$0xff] }
 0x418   : > { %5815 = vmatprep.subr.bf16.mxu1 %v8361_v33  ;;  %v3040_v43 = vld [vmem:[#allocation2 + $0x92] sm:$0xff] }
 0x419   : > { %v7897_v57 = vpop.f32.mrb[74].mxu0 }
 0x41a   : > { %4253 = vmatmul.mubr.f32.gmra.mrb[40].mxu1 %v7895_v21  ;;  %v7900_v3 = vpop.f32.mrb[75].mxu0 }
 0x41b   : > { %4257 = vmatprep.mubr.f32.mxu1 %v3035_v60  ;;  %5817 = vmatpush1.bf16.msra.mxu1 %v5816_v29  ;;  %v5834_v29 = vpack.c.bf16 %v3691_v16, %v3690_v26  ;;  %v7931_v60 = vld [vmem:[#allocation2 + $0x91] sm:$0xff] }
 0x41c   : > { %5818 = vmatprep.subr.bf16.mxu1 %v8361_v33  ;;  %v3699_v26 = vld [vmem:[#allocation9 + $0x3e8] sm:$0xff] }
 0x41d   : > { %v7951_v16 = vld [vmem:[#allocation2 + $0xb1] sm:$0xff] }
 0x41e   : > { %4258 = vmatmul.mubr.f32.gmra.mrb[42].mxu1 %v7903_v38 }
 0x41f   : > { %4262 = vmatprep.mubr.f32.mxu1 %v3036_v22  ;;  %5820 = vmatpush1.bf16.msra.mxu1 %v5819_v47  ;;  %v5837_v22 = vpack.c.bf16 %v3693_v50, %v3692_v63  ;;  %v3700_v63 = vld [vmem:[#allocation9 + $0x3f0] sm:$0xff]  ;;  %v3701_v50 = vld [vmem:[#allocation9 + $0x3f8] sm:$0xff] }
 0x420   : > { %5821 = vmatprep.subr.bf16.mxu1 %v8361_v33 }
 0x421   : > { %v7909_v13 = vpop.f32.mrb[76].mxu0 }
 0x422   : > { %4263 = vmatmul.mubr.f32.gmra.mrb[44].mxu1 %v7907_v53  ;;  %v7912_v41 = vpop.f32.mrb[77].mxu0 }
 0x423   : > { %4267 = vmatprep.mubr.f32.mxu1 %v3037_v56  ;;  %5823 = vmatpush1.bf16.msra.mxu1 %v5822_v44  ;;  %v3694_v44 = vld [vmem:[#allocation9 + $0x3c0] sm:$0xff] }
 0x424   : > { %5824 = vmatprep.subr.bf16.mxu1 %v8361_v33  ;;  %v3042_v56 = vld [vmem:[#allocation2 + $0xaa] sm:$0xff] }
 0x426   : > { %4268 = vmatmul.mubr.f32.gmra.mrb[46].mxu1 %v7915_v30 }
 0x427   : > { %4272 = vmatprep.mubr.f32.mxu1 %v3038_v5  ;;  %5826 = vmatpush1.bf16.msra.mxu1 %v5825_v27  ;;  %v5840_v27 = vpack.c.bf16 %v3695_v25, %v3694_v44  ;;  %v7943_v5 = vld [vmem:[#allocation2 + $0xa9] sm:$0xff] }
 0x428   : > { %5827 = vmatprep.subr.bf16.mxu1 %v8361_v33  ;;  %v3045_v44 = vld [vmem:[#allocation2 + $0xca] sm:$0xff] }
 0x429   : > { %v7921_v23 = vpop.f32.mrb[78].mxu0 }
 0x42a   : > { %4273 = vmatmul.mubr.f32.gmra.mrb[48].mxu1 %v7919_v19  ;;  %v7924_v34 = vpop.f32.mrb[79].mxu0 }
 0x42b   : > { %4277 = vmatprep.mubr.f32.mxu1 %v3039_v54  ;;  %5829 = vmatpush1.bf16.msra.mxu1 %v5828_v24  ;;  %v5843_v54 = vpack.c.bf16 %v3697_v0, %v3696_v17  ;;  %v3046_v17 = vld [vmem:[#allocation2 + $0xda] sm:$0xff]  ;;  %v8365_v0 = vld [vmem:[#allocation14_spill] sm:$0xff] }
 0x42c   : > { %5830 = vmatprep.subr.bf16.mxu1 %v8361_v33 }
 0x42e   : > { %4278 = vmatmul.mubr.f32.gmra.mrb[50].mxu1 %v7927_v31 }
 0x42f   : > { %4282 = vmatprep.mubr.f32.mxu1 %v3040_v43  ;;  %5832 = vmatpush1.bf16.msra.mxu1 %v5831_v9  ;;  %v3698_v9 = vld [vmem:[#allocation9 + $0x3e0] sm:$0xff]  ;;  %v3044_v43 = vld [vmem:[#allocation2 + $0xc2] sm:$0xff] }
 0x430   : > { %5833 = vmatprep.subr.bf16.mxu1 %v8361_v33 }
 0x431   : > { %v7933_v47 = vpop.f32.mrb[80].mxu0 }
 0x432   : > { %4283 = vmatmul.mubr.f32.gmra.mrb[52].mxu1 %v7931_v60  ;;  %v7936_v6 = vpop.f32.mrb[81].mxu0 }
 0x433   : > { %4287 = vmatprep.mubr.f32.mxu1 %v3041_v18  ;;  %5835 = vmatpush1.bf16.msra.mxu1 %v5834_v29  ;;  %v5846_v29 = vpack.c.bf16 %v3699_v26, %v3698_v9  ;;  %v7955_v18 = vld [vmem:[#allocation2 + $0xc1] sm:$0xff] }
 0x434   : > { %5836 = vmatprep.subr.bf16.mxu1 %v8361_v33  ;;  %v3047_v9 = vld [vmem:[#allocation2 + $0xe2] sm:$0xff] }
 0x436   : > { %4288 = vmatmul.mubr.f32.gmra.mrb[54].mxu1 %v7939_v61 }
 0x437   : > { %4292 = vmatprep.mubr.f32.mxu1 %v3042_v56  ;;  %5838 = vmatpush1.bf16.msra.mxu1 %v5837_v22  ;;  %v5849_v56 = vpack.c.bf16 %v3701_v50, %v3700_v63  ;;  %v7986_v63 = vld [vmem:[#allocation2 + $0x109] sm:$0xff]  ;;  %v7990_v50 = vld [vmem:[#allocation2 + $0x111] sm:$0xff] }
 0x438   : > { %5839 = vmatprep.subr.bf16.mxu1 %v8361_v33 }
 0x439   : > { %v7945_v24 = vpop.f32.mrb[82].mxu0 }
 0x43a   : > { %4293 = vmatmul.mubr.f32.gmra.mrb[56].mxu1 %v7943_v5  ;;  %v7948_v8 = vpop.f32.mrb[83].mxu0 }
 0x43b   : > { %4297 = vmatprep.mubr.f32.mxu1 %v3043_v51  ;;  %5841 = vmatpush1.bf16.msra.mxu1 %v5840_v27  ;;  %v7963_v27 = vld [vmem:[#allocation2 + $0xc9] sm:$0xff]  ;;  %v7967_v51 = vld [vmem:[#allocation2 + $0xd9] sm:$0xff] }
 0x43c   : > { %5842 = vmatprep.subr.bf16.mxu1 %v8361_v33 }
 0x43e   : > { %4298 = vmatmul.mubr.f32.gmra.mrb[58].mxu1 %v7951_v16 }
 0x43f   : > { %4302 = vmatprep.mubr.f32.mxu1 %v3044_v43  ;;  %5844 = vmatpush1.bf16.msra.mxu1 %v5843_v54  ;;  %v7978_v43 = vld [vmem:[#allocation2 + $0xf1] sm:$0xff] }
 0x440   : > { %5845 = vmatprep.subr.bf16.mxu1 %v8361_v33 }
 0x441   : > { %v7957_v22 = vpop.f32.mrb[84].mxu0 }
 0x442   : > { %4303 = vmatmul.mubr.f32.gmra.mrb[60].mxu1 %v7955_v18  ;;  %v7960_v25 = vpop.f32.mrb[85].mxu0 }
 0x443   : > { %4307 = vmatprep.mubr.f32.mxu1 %v3045_v44  ;;  %5847 = vmatpush1.bf16.msra.mxu1 %v5846_v29  ;;  %v7982_v29 = vld [vmem:[#allocation2 + $0xf9] sm:$0xff] }
 0x444   : > { %5848 = vmatprep.subr.bf16.mxu1 %v8361_v33  ;;  %v7974_v33 = vld [vmem:[#allocation2 + $0xe1] sm:$0xff] }
 0x445   : > { %v8369_v44 = vld [vmem:[#allocation28_spill] sm:$0xff] }
 0x446   : > { %4308 = vmatmul.mubr.f32.gmra.mrb[62].mxu1 %v7963_v27 }
 0x447   : > { %4312 = vmatprep.mubr.f32.mxu1 %v3046_v17  ;;  %5850 = vmatpush1.bf16.msra.mxu1 %v5849_v56  ;;  %v8370_v56 = vld [vmem:[#allocation29_spill] sm:$0xff] }
 0x448   : > { %5883 = vmatprep.subr.bf16.mxu1 %v8365_v0  ;;  %v8371_v17 = vmax.f32 %v8370_v56, 0.0  ;;  %v8374_v56 = vld [vmem:[#allocation16_spill] sm:$0xff] }
 0x449   : > { %v7969_v54 = vpop.f32.mrb[86].mxu0 }
 0x44a   : > { %4313 = vmatmul.mubr.f32.gmra.mrb[64].mxu1 %v7967_v51  ;;  %v7972_v26 = vpop.f32.mrb[87].mxu0 }
 0x44b   : > { %4317 = vmatprep.mubr.f32.mxu1 %v3047_v9  ;;  %v8022_v9 = vld [vmem:[#allocation2 + $0x18a] sm:$0xff] }
 0x44e   : > { %4318 = vmatmul.mubr.f32.gmra.mrb[66].mxu1 %v7974_v33 }
 0x44f   : > { %4322 = vmatprep.mubr.f32.mxu1 %v7658_v4  ;;  %v7994_v4 = vld [vmem:[#allocation2 + $0x121] sm:$0xff] }
 0x452   : > { %4323 = vmatmul.mubr.f32.gmra.mrb[68].mxu1 %v7978_v43 }
 0x453   : > { %4327 = vmatprep.mubr.f32.mxu1 %v7662_v32  ;;  %v7998_v32 = vld [vmem:[#allocation2 + $0x129] sm:$0xff] }
 0x456   : > { %4328 = vmatmul.mubr.f32.gmra.mrb[70].mxu1 %v7982_v29 }
 0x457   : > { %4332 = vmatprep.mubr.f32.mxu1 %v7676_v10  ;;  %v8002_v10 = vld [vmem:[#allocation2 + $0x139] sm:$0xff] }
 0x45a   : > { %4333 = vmatmul.mubr.f32.gmra.mrb[72].mxu1 %v7986_v63 }
 0x45b   : > { %4337 = vmatprep.mubr.f32.mxu1 %v8362_v15  ;;  %v8006_v15 = vld [vmem:[#allocation2 + $0x141] sm:$0xff] }
 0x45e   : > { %4338 = vmatmul.mubr.f32.gmra.mrb[74].mxu1 %v7990_v50 }
 0x45f   : > { %4342 = vmatprep.mubr.f32.mxu1 %v7694_v40  ;;  %v8366_v40 = vld [vmem:[#allocation24_spill] sm:$0xff] }
 0x462   : > { %4343 = vmatmul.mubr.f32.gmra.mrb[76].mxu1 %v7994_v4 }
 0x463   : > { %4347 = vmatprep.mubr.f32.mxu1 %v8363_v55  ;;  %v8367_v55 = vld [vmem:[#allocation25_spill] sm:$0xff] }
 0x466   : > { %4348 = vmatmul.mubr.f32.gmra.mrb[78].mxu1 %v7998_v32 }
 0x467   : > { %4352 = vmatprep.mubr.f32.mxu1 %v7717_v58  ;;  %v8368_v58 = vld [vmem:[#allocation27_spill] sm:$0xff] }
 0x46a   : > { %4353 = vmatmul.mubr.f32.gmra.mrb[80].mxu1 %v8002_v10 }
 0x46b   : > { %4357 = vmatprep.mubr.f32.mxu1 %v8364_v49  ;;  %v8017_v49 = vld [vmem:[#allocation2 + $0x182] sm:$0xff] }
 0x46e   : > { %4358 = vmatmul.mubr.f32.gmra.mrb[82].mxu1 %v8006_v15 }
 0x46f   : > { %4362 = vmatprep.mubr.f32.mxu1 %v7848_v7 }
 0x472   : > { %4363 = vmatmul.mubr.f32.gmra.mrb[84].mxu1 %v8366_v40  ;;  %v8372_v40 = vmax.f32 %v7759_v62, 0.0  ;;  %v3096_v62 = vld [vmem:[#allocation2 + $0x48] sm:$0xff] }
 0x473   : > { %4367 = vmatprep.mubr.f32.mxu1 %v7856_v12 }
 0x476   : > { %4368 = vmatmul.mubr.f32.gmra.mrb[86].mxu1 %v8367_v55  ;;  %v3094_v55 = vld [vmem:[#allocation2 + $0x30] sm:$0xff] }
 0x477   : > { %4372 = vmatprep.mubr.f32.mxu1 %v7862_v42 }
 0x47a   : > { %4373 = vmatmul.mubr.f32.gmra.mrb[88].mxu1 %v8368_v58  ;;  %v8373_v58 = vld [vmem:[#allocation15_spill] sm:$0xff] }
 0x47b   : > { %4377 = vmatprep.mubr.f32.mxu1 %v7872_v2 }
 0x47e   : > { %4378 = vmatmul.mubr.f32.gmra.mrb[90].mxu1 %v8369_v44  ;;  %v3095_v44 = vld [vmem:[#allocation2 + $0x38] sm:$0xff] }
 0x47f   : > { %4382 = vmatprep.mubr.f32.mxu1 %v8017_v49 }
 0x482   : > { %4383 = vmatmul.mubr.f32.gmra.mrb[92].mxu1 %v8371_v17  ;;  %v8377_v17 = vld [vmem:[#allocation19_spill] sm:$0xff] }
 0x483   : > { %4387 = vmatprep.mubr.f32.mxu1 %v8022_v9 }
 0x486   : > { %4388 = vmatmul.mubr.f32.gmra.mrb[94].mxu1 %v8372_v40  ;;  %v8378_v40 = vld [vmem:[#allocation20_spill] sm:$0xff] }
 0x487   : > { %4457 = vmatprep.mubr.f32.mxu1 %v7883_v1  ;;  %v8375_v1 = vld [vmem:[#allocation17_spill] sm:$0xff] }
 0x48a   : > { %4458 = vmatmul.mubr.f32.vlgmr.msra.gmra.mrb[32].mxu1 %v3094_v55  ;;  %v8379_v55 = vld [vmem:[#allocation21_spill] sm:$0xff] }
 0x48b   : > { %4462 = vmatprep.mubr.f32.mxu1 %v7891_v37  ;;  %5891 = vmatpush3.bf16.msra.mxu1 %v8365_v0  ;;  %v3097_v37 = vld [vmem:[#allocation2 + $0x50] sm:$0xff] }
 0x48c   : > { %5884 = vmatprep.subr.bf16.mxu1 %v8373_v58  ;;  %v8376_v0 = vld [vmem:[#allocation18_spill] sm:$0xff] }
 0x48e   : > { %4463 = vmatmul.mubr.f32.gmra.mrb[34].mxu1 %v3095_v44  ;;  %v3104_v44 = vld [vmem:[#allocation2 + $0xa8] sm:$0xff] }
 0x48f   : > { %4467 = vmatprep.mubr.f32.mxu1 %v7895_v21  ;;  %5892 = vmatpush3.bf16.msra.mxu1 %v8373_v58  ;;  %v3098_v21 = vld [vmem:[#allocation2 + $0x60] sm:$0xff]  ;;  %v3102_v58 = vld [vmem:[#allocation2 + $0x90] sm:$0xff] }
 0x490   : > { %5885 = vmatprep.subr.bf16.mxu1 %v8374_v56 }
 0x492   : > { %4468 = vmatmul.mubr.f32.gmra.mrb[36].mxu1 %v3096_v62  ;;  %v3182_v62 = vld [vmem:[#allocation2 + $0x151] sm:$0xff] }
 0x493   : > { %4472 = vmatprep.mubr.f32.mxu1 %v7903_v38  ;;  %5893 = vmatpush3.bf16.msra.mxu1 %v8374_v56  ;;  %v3099_v38 = vld [vmem:[#allocation2 + $0x68] sm:$0xff]  ;;  %v3106_v56 = vld [vmem:[#allocation2 + $0xc0] sm:$0xff] }
 0x494   : > { %5886 = vmatprep.subr.bf16.mxu1 %v8375_v1 }
 0x496   : > { %4473 = vmatmul.mubr.f32.gmra.mrb[38].mxu1 %v3097_v37  ;;  %v3184_v37 = vld [vmem:[#allocation2 + $0x169] sm:$0xff] }
 0x497   : > { %4477 = vmatprep.mubr.f32.mxu1 %v7907_v53  ;;  %5894 = vmatpush3.bf16.msra.mxu1 %v8375_v1  ;;  %v3100_v53 = vld [vmem:[#allocation2 + $0x78] sm:$0xff] }
 0x498   : > { %5887 = vmatprep.subr.bf16.mxu1 %v8376_v0  ;;  %v3183_v1 = vld [vmem:[#allocation2 + $0x159] sm:$0xff] }
 0x49a   : > { %4478 = vmatmul.mubr.f32.gmra.mrb[40].mxu1 %v3098_v21  ;;  %v3186_v21 = vld [vmem:[#allocation2 + $0x181] sm:$0xff] }
 0x49b   : > { %4482 = vmatprep.mubr.f32.mxu1 %v7915_v30  ;;  %5895 = vmatpush3.bf16.msra.mxu1 %v8376_v0  ;;  %v3101_v30 = vld [vmem:[#allocation2 + $0x80] sm:$0xff]  ;;  %v3185_v0 = vld [vmem:[#allocation2 + $0x171] sm:$0xff] }
 0x49c   : > { %5888 = vmatprep.subr.bf16.mxu1 %v8377_v17 }
 0x49e   : > { %4483 = vmatmul.mubr.f32.gmra.mrb[42].mxu1 %v3099_v38  ;;  %v3124_v38 = vld [vmem:[#allocation2 + $0x198] sm:$0xff] }
 0x49f   : > { %4487 = vmatprep.mubr.f32.mxu1 %v7919_v19  ;;  %5896 = vmatpush3.bf16.msra.mxu1 %v8377_v17  ;;  %v3103_v19 = vld [vmem:[#allocation2 + $0x98] sm:$0xff] }
 0x4a0   : > { %5889 = vmatprep.subr.bf16.mxu1 %v8378_v40  ;;  %v3188_v17 = vld [vmem:[#allocation2 + $0x199] sm:$0xff] }
 0x4a2   : > { %4488 = vmatmul.mubr.f32.gmra.mrb[44].mxu1 %v3100_v53  ;;  %v6389_v53 = vld [vmem:[#allocation2 + $0x8] sm:$0xff] }
 0x4a3   : > { %4492 = vmatprep.mubr.f32.mxu1 %v7927_v31  ;;  %5897 = vmatpush3.bf16.msra.mxu1 %v8378_v40  ;;  %v3105_v31 = vld [vmem:[#allocation2 + $0xb0] sm:$0xff]  ;;  %v3189_v40 = vld [vmem:[#allocation2 + $0x1a1] sm:$0xff] }
 0x4a4   : > { %5890 = vmatprep.subr.bf16.mxu1 %v8379_v55 }
 0x4a6   : > { %4493 = vmatmul.mubr.f32.gmra.mrb[46].mxu1 %v3101_v30 }
 0x4a7   : > { %4497 = vmatprep.mubr.f32.mxu1 %v7931_v60  ;;  %5898 = vmatpush3.bf16.msra.mxu1 %v8379_v55  ;;  %v3107_v60 = vld [vmem:[#allocation2 + $0xc8] sm:$0xff] }
 0x4aa   : > { %4498 = vmatmul.mubr.f32.gmra.mrb[48].mxu1 %v3102_v58 }
 0x4ab   : > { %4502 = vmatprep.mubr.f32.mxu1 %v7939_v61  ;;  %v3108_v61 = vld [vmem:[#allocation2 + $0xd8] sm:$0xff] }
 0x4ae   : > { %4503 = vmatmul.mubr.f32.gmra.mrb[50].mxu1 %v3103_v19 }
 0x4af   : > { %4507 = vmatprep.mubr.f32.mxu1 %v7943_v5  ;;  %v3109_v5 = vld [vmem:[#allocation2 + $0xe0] sm:$0xff] }
 0x4b2   : > { %4508 = vmatmul.mubr.f32.gmra.mrb[52].mxu1 %v3104_v44 }
 0x4b3   : > { %4512 = vmatprep.mubr.f32.mxu1 %v7951_v16  ;;  %v3110_v16 = vld [vmem:[#allocation2 + $0xf0] sm:$0xff] }
 0x4b6   : > { %4513 = vmatmul.mubr.f32.gmra.mrb[54].mxu1 %v3105_v31 }
 0x4b7   : > { %4517 = vmatprep.mubr.f32.mxu1 %v7955_v18  ;;  %v3111_v18 = vld [vmem:[#allocation2 + $0xf8] sm:$0xff] }
 0x4ba   : > { %4518 = vmatmul.mubr.f32.gmra.mrb[56].mxu1 %v3106_v56  ;;  %v4844_v56 = vld [vmem:[%s6785_s13 + $0x8] sm:$0xff] }
 0x4bb   : > { %4522 = vmatprep.mubr.f32.mxu1 %v7963_v27  ;;  %v3112_v27 = vld [vmem:[#allocation2 + $0x108] sm:$0xff] }
 0x4be   : > { %4523 = vmatmul.mubr.f32.gmra.mrb[58].mxu1 %v3107_v60 }
 0x4bf   : > { %4527 = vmatprep.mubr.f32.mxu1 %v7967_v51  ;;  %v3113_v51 = vld [vmem:[#allocation2 + $0x110] sm:$0xff] }
 0x4c2   : > { %4528 = vmatmul.mubr.f32.gmra.mrb[60].mxu1 %v3108_v61 }
 0x4c3   : > { %4532 = vmatprep.mubr.f32.mxu1 %v7974_v33  ;;  %v3114_v33 = vld [vmem:[#allocation2 + $0x120] sm:$0xff] }
 0x4c6   : > { %4533 = vmatmul.mubr.f32.gmra.mrb[62].mxu1 %v3109_v5 }
 0x4c7   : > { %4537 = vmatprep.mubr.f32.mxu1 %v7978_v43  ;;  %v3115_v43 = vld [vmem:[#allocation2 + $0x128] sm:$0xff] }
 0x4ca   : > { %4538 = vmatmul.mubr.f32.gmra.mrb[64].mxu1 %v3110_v16 }
 0x4cb   : > { %4542 = vmatprep.mubr.f32.mxu1 %v7982_v29  ;;  %v3116_v29 = vld [vmem:[#allocation2 + $0x138] sm:$0xff] }
 0x4ce   : > { %4543 = vmatmul.mubr.f32.gmra.mrb[66].mxu1 %v3111_v18 }
 0x4cf   : > { %4547 = vmatprep.mubr.f32.mxu1 %v7986_v63  ;;  %v3117_v63 = vld [vmem:[#allocation2 + $0x140] sm:$0xff] }
 0x4d2   : > { %4548 = vmatmul.mubr.f32.gmra.mrb[68].mxu1 %v3112_v27 }
 0x4d3   : > { %4552 = vmatprep.mubr.f32.mxu1 %v7990_v50  ;;  %v3118_v50 = vld [vmem:[#allocation2 + $0x150] sm:$0xff] }
 0x4d6   : > { %4553 = vmatmul.mubr.f32.gmra.mrb[70].mxu1 %v3113_v51  ;;  %v4845_v51 = vld [vmem:[%s6785_s13 + $0x10] sm:$0xff] }
 0x4d7   : > { %4557 = vmatprep.mubr.f32.mxu1 %v7994_v4  ;;  %v3119_v4 = vld [vmem:[#allocation2 + $0x158] sm:$0xff] }
 0x4da   : > { %4558 = vmatmul.mubr.f32.gmra.mrb[72].mxu1 %v3114_v33 }
 0x4db   : > { %4562 = vmatprep.mubr.f32.mxu1 %v7998_v32  ;;  %v3120_v32 = vld [vmem:[#allocation2 + $0x168] sm:$0xff] }
 0x4de   : > { %4563 = vmatmul.mubr.f32.gmra.mrb[74].mxu1 %v3115_v43 }
 0x4df   : > { %4567 = vmatprep.mubr.f32.mxu1 %v8002_v10  ;;  %v3121_v10 = vld [vmem:[#allocation2 + $0x170] sm:$0xff] }
 0x4e2   : > { %4568 = vmatmul.mubr.f32.gmra.mrb[76].mxu1 %v3116_v29 }
 0x4e3   : > { %4572 = vmatprep.mubr.f32.mxu1 %v8006_v15  ;;  %v3187_v15 = vld [vmem:[#allocation2 + $0x189] sm:$0xff] }
 0x4e6   : > { %4573 = vmatmul.mubr.f32.gmra.mrb[78].mxu1 %v3117_v63 }
 0x4e7   : > { %4577 = vmatprep.mubr.f32.mxu1 %v3182_v62 }
 0x4ea   : > { %4578 = vmatmul.mubr.f32.gmra.mrb[80].mxu1 %v3118_v50 }
 0x4eb   : > { %4582 = vmatprep.mubr.f32.mxu1 %v3183_v1  ;;  %v4846_v1 = vld [vmem:[%s6785_s13 + $0x18] sm:$0xff] }
 0x4ee   : > { %4583 = vmatmul.mubr.f32.gmra.mrb[82].mxu1 %v3119_v4 }
 0x4ef   : > { %4587 = vmatprep.mubr.f32.mxu1 %v3184_v37 }
 0x4f2   : > { %4588 = vmatmul.mubr.f32.gmra.mrb[84].mxu1 %v3120_v32 }
 0x4f3   : > { %4592 = vmatprep.mubr.f32.mxu1 %v3185_v0 }
 0x4f6   : > { %4593 = vmatmul.mubr.f32.gmra.mrb[86].mxu1 %v3121_v10 }
 0x4f7   : > { %4597 = vmatprep.mubr.f32.mxu1 %v3186_v21 }
 0x4fa   : > { %4598 = vmatmul.mubr.f32.gmra.mrb[88].mxu1 %v7859_v35  ;;  %v3252_v35 = vld [vmem:[#allocation2 + $0x19a] sm:$0xff] }
 0x4fb   : > { %4602 = vmatprep.mubr.f32.mxu1 %v3187_v15 }
 0x4fe   : > { %4603 = vmatmul.mubr.f32.gmra.mrb[90].mxu1 %v7867_v48  ;;  %v3253_v48 = vld [vmem:[#allocation2 + $0x1a2] sm:$0xff] }
 0x4ff   : > { %4607 = vmatprep.mubr.f32.mxu1 %v3188_v17 }
 0x502   : > { %4608 = vmatmul.mubr.f32.gmra.mrb[92].mxu1 %v3124_v38 }
 0x503   : > { %4612 = vmatprep.mubr.f32.mxu1 %v3189_v40 }
 0x506   : > { %4613 = vmatmul.mubr.f32.gmra.mrb[94].mxu1 %v6389_v53 }
 0x507   : > { %5423 = vmatprep.mubr.f32.mxu1 %v7848_v7  ;;  %v8077_v7 = vld [vmem:[%s8296_s5] ss:$0 sm:$0xff] }
 0x50a   : > { %5424 = vmatmul.mubr.f32.vlgmr.msra.gmra.mrb[96].mxu1 %v7856_v12 }
 0x50b   : > { %5426 = vmatprep.mubr.f32.mxu1 %v7862_v42 }
 0x50e   : > { %5427 = vmatmul.mubr.f32.gmra.mrb[98].mxu1 %v7872_v2  ;;  %v8083_v2 = vld [vmem:[%s8297_s6] ss:$0 sm:$0xff] }
 0x50f   : > { %5429 = vmatprep.mubr.f32.mxu1 %v8017_v49 }
 0x512   : > { %5430 = vmatmul.mubr.f32.gmra.mrb[100].mxu1 %v8022_v9  ;;  %v4843_v9 = vld [vmem:[%s6785_s13] sm:$0xff] }
 0x513   : > { %5432 = vmatprep.mubr.f32.mxu1 %v3252_v35 }
 0x516   : > { %5433 = vmatmul.mubr.f32.gmra.mrb[102].mxu1 %v3253_v48 }
 0x55d   : > { %v4459_v55 = vpop.f32.mrb[32].mxu1 }
 0x55e   : > { %v4685_v12 = vadd.f32 %v7843_v28, %v4459_v55  ;;  %v4461_v42 = vpop.f32.mrb[33].mxu1 }
 0x560   : > { %v4882_v49 = vmul.f32 %v8077_v7, %v4685_v12 }
 0x561   : > { %v4464_v30 = vpop.f32.mrb[34].mxu1 }
 0x562   : > { %v4921_v58 = vadd.f32 %v8083_v2, %v4882_v49  ;;  %v4690_v19 = vadd.f32 %v7840_v39, %v4464_v30  ;;  %v4466_v44 = vpop.f32.mrb[35].mxu1 }
 0x564   : > { %v4953_v31 = vadd.f32 %v4921_v58, %v4843_v9  ;;  %v4883_v28 = vmul.f32 %v8077_v7, %v4690_v19 }
 0x565   : > { %v4469_v60 = vpop.f32.mrb[36].mxu1 }
 0x566   : > { %v4985_v61 = vmax.f32 %v4953_v31, 0.0  ;;  %v4922_v5 = vadd.f32 %v8083_v2, %v4883_v28  ;;  %v4695_v16 = vadd.f32 %v7853_v11, %v4469_v60  ;;  %v4471_v18 = vpop.f32.mrb[37].mxu1 }
 0x568   : > { %5017 = vst [vmem:[%s8095_s21] sm:$0xff] %v4985_v61  ;;  %v4954_v39 = vadd.f32 %v4922_v5, %v4844_v56  ;;  %v4884_v27 = vmul.f32 %v8077_v7, %v4695_v16 }
 0x569   : > { %v4474_v33 = vpop.f32.mrb[38].mxu1 }
 0x56a   : > { %v4986_v43 = vmax.f32 %v4954_v39, 0.0  ;;  %v4923_v29 = vadd.f32 %v8083_v2, %v4884_v27  ;;  %v4700_v63 = vadd.f32 %v7850_v45, %v4474_v33  ;;  %v4476_v11 = vpop.f32.mrb[39].mxu1  ;;  %v4847_v45 = vld [vmem:[%s6785_s13 + $0x20] sm:$0xff] }
 0x56c   : > { %5018 = vst [vmem:[%s8095_s21 + $0x8] sm:$0xff] %v4986_v43  ;;  %v4955_v62 = vadd.f32 %v4923_v29, %v4845_v51  ;;  %v4885_v50 = vmul.f32 %v8077_v7, %v4700_v63 }
 0x56d   : > { %v4479_v4 = vpop.f32.mrb[40].mxu1 }
 0x56e   : > { %v4987_v37 = vmax.f32 %v4955_v62, 0.0  ;;  %v4924_v32 = vadd.f32 %v8083_v2, %v4885_v50  ;;  %v4705_v0 = vadd.f32 %v7869_v46, %v4479_v4  ;;  %v4481_v10 = vpop.f32.mrb[41].mxu1  ;;  %v4848_v46 = vld [vmem:[%s6785_s13 + $0x28] sm:$0xff] }
 0x570   : > { %5019 = vst [vmem:[%s8095_s21 + $0x10] sm:$0xff] %v4987_v37  ;;  %v4956_v21 = vadd.f32 %v4924_v32, %v4846_v1  ;;  %v4886_v15 = vmul.f32 %v8077_v7, %v4705_v0 }
 0x571   : > { %v4484_v17 = vpop.f32.mrb[42].mxu1 }
 0x572   : > { %v4988_v38 = vmax.f32 %v4956_v21, 0.0  ;;  %v4925_v40 = vadd.f32 %v8083_v2, %v4886_v15  ;;  %v4710_v53 = vadd.f32 %v7864_v14, %v4484_v17  ;;  %v4486_v35 = vpop.f32.mrb[43].mxu1  ;;  %v4849_v14 = vld [vmem:[%s6785_s13 + $0x30] sm:$0xff] }
 0x574   : > { %5020 = vst [vmem:[%s8095_s21 + $0x18] sm:$0xff] %v4988_v38  ;;  %v4957_v48 = vadd.f32 %v4925_v40, %v4847_v45  ;;  %v4887_v55 = vmul.f32 %v8077_v7, %v4710_v53 }
 0x575   : > { %v4489_v12 = vpop.f32.mrb[44].mxu1 }
 0x576   : > { %v4989_v42 = vmax.f32 %v4957_v48, 0.0  ;;  %v4926_v49 = vadd.f32 %v8083_v2, %v4887_v55  ;;  %v4715_v9 = vadd.f32 %v7878_v36, %v4489_v12  ;;  %v4491_v30 = vpop.f32.mrb[45].mxu1  ;;  %v4850_v36 = vld [vmem:[%s6785_s13 + $0x38] sm:$0xff] }
 0x578   : > { %5021 = vst [vmem:[%s8095_s21 + $0x20] sm:$0xff] %v4989_v42  ;;  %v4958_v58 = vadd.f32 %v4926_v49, %v4848_v46  ;;  %v4888_v19 = vmul.f32 %v8077_v7, %v4715_v9 }
 0x579   : > { %v4494_v44 = vpop.f32.mrb[46].mxu1 }
 0x57a   : > { %v4990_v31 = vmax.f32 %v4958_v58, 0.0  ;;  %v4927_v28 = vadd.f32 %v8083_v2, %v4888_v19  ;;  %v4720_v56 = vadd.f32 %v7876_v52, %v4494_v44  ;;  %v4496_v60 = vpop.f32.mrb[47].mxu1  ;;  %v4851_v52 = vld [vmem:[%s6785_s13 + $0x40] sm:$0xff] }
 0x57c   : > { %5022 = vst [vmem:[%s8095_s21 + $0x28] sm:$0xff] %v4990_v31  ;;  %v4959_v61 = vadd.f32 %v4927_v28, %v4849_v14  ;;  %v4889_v5 = vmul.f32 %v8077_v7, %v4720_v56 }
 0x57d   : > { %v4499_v16 = vpop.f32.mrb[48].mxu1 }
 0x57e   : > { %v4991_v18 = vmax.f32 %v4959_v61, 0.0  ;;  %v4928_v39 = vadd.f32 %v8083_v2, %v4889_v5  ;;  %v4725_v27 = vadd.f32 %v7888_v20, %v4499_v16  ;;  %v4501_v51 = vpop.f32.mrb[49].mxu1  ;;  %v4852_v20 = vld [vmem:[%s6785_s13 + $0x48] sm:$0xff] }
 0x580   : > { %5023 = vst [vmem:[%s8095_s21 + $0x30] sm:$0xff] %v4991_v18  ;;  %v4960_v33 = vadd.f32 %v4928_v39, %v4850_v36  ;;  %v4890_v43 = vmul.f32 %v8077_v7, %v4725_v27 }
 0x581   : > { %v4504_v29 = vpop.f32.mrb[50].mxu1 }
 0x582   : > { %v4992_v63 = vmax.f32 %v4960_v33, 0.0  ;;  %v4929_v11 = vadd.f32 %v8083_v2, %v4890_v43  ;;  %v4730_v62 = vadd.f32 %v7885_v59, %v4504_v29  ;;  %v4506_v50 = vpop.f32.mrb[51].mxu1  ;;  %v4853_v59 = vld [vmem:[%s6785_s13 + $0x50] sm:$0xff] }
 0x584   : > { %5024 = vst [vmem:[%s8095_s21 + $0x38] sm:$0xff] %v4992_v63  ;;  %v4961_v1 = vadd.f32 %v4929_v11, %v4851_v52  ;;  %v4891_v4 = vmul.f32 %v8077_v7, %v4730_v62 }
 0x585   : > { %v4509_v37 = vpop.f32.mrb[52].mxu1 }
 0x586   : > { %v4993_v32 = vmax.f32 %v4961_v1, 0.0  ;;  %v4930_v0 = vadd.f32 %v8083_v2, %v4891_v4  ;;  %v4735_v10 = vadd.f32 %v7900_v3, %v4509_v37  ;;  %v4511_v21 = vpop.f32.mrb[53].mxu1  ;;  %v4854_v3 = vld [vmem:[%s6785_s13 + $0x58] sm:$0xff] }
 0x588   : > { %5025 = vst [vmem:[%s8095_s21 + $0x40] sm:$0xff] %v4993_v32  ;;  %v4962_v15 = vadd.f32 %v4930_v0, %v4852_v20  ;;  %v4892_v45 = vmul.f32 %v8077_v7, %v4735_v10 }
 0x589   : > { %v4514_v17 = vpop.f32.mrb[54].mxu1 }
 0x58a   : > { %v4994_v38 = vmax.f32 %v4962_v15, 0.0  ;;  %v4931_v40 = vadd.f32 %v8083_v2, %v4892_v45  ;;  %v4740_v53 = vadd.f32 %v7897_v57, %v4514_v17  ;;  %v4516_v35 = vpop.f32.mrb[55].mxu1  ;;  %v4855_v57 = vld [vmem:[%s6785_s13 + $0x60] sm:$0xff] }
 0x58c   : > { %5026 = vst [vmem:[%s8095_s21 + $0x48] sm:$0xff] %v4994_v38  ;;  %v4963_v48 = vadd.f32 %v4931_v40, %v4853_v59  ;;  %v4893_v55 = vmul.f32 %v8077_v7, %v4740_v53 }
 0x58d   : > { %v4519_v46 = vpop.f32.mrb[56].mxu1 }
 0x58e   : > { %v4995_v12 = vmax.f32 %v4963_v48, 0.0  ;;  %v4932_v42 = vadd.f32 %v8083_v2, %v4893_v55  ;;  %v4745_v49 = vadd.f32 %v7912_v41, %v4519_v46  ;;  %v4521_v9 = vpop.f32.mrb[57].mxu1  ;;  %v4856_v41 = vld [vmem:[%s6785_s13 + $0x68] sm:$0xff] }
 0x590   : > { %5027 = vst [vmem:[%s8095_s21 + $0x50] sm:$0xff] %v4995_v12  ;;  %v4964_v30 = vadd.f32 %v4932_v42, %v4854_v3  ;;  %v4894_v58 = vmul.f32 %v8077_v7, %v4745_v49 }
 0x591   : > { %v4524_v19 = vpop.f32.mrb[58].mxu1 }
 0x592   : > { %v4996_v14 = vmax.f32 %v4964_v30, 0.0  ;;  %v4933_v44 = vadd.f32 %v8083_v2, %v4894_v58  ;;  %v4750_v31 = vadd.f32 %v7909_v13, %v4524_v19  ;;  %v4526_v28 = vpop.f32.mrb[59].mxu1  ;;  %v4857_v13 = vld [vmem:[%s6785_s13 + $0x70] sm:$0xff] }
 0x594   : > { %5028 = vst [vmem:[%s8095_s21 + $0x58] sm:$0xff] %v4996_v14  ;;  %v4965_v56 = vadd.f32 %v4933_v44, %v4855_v57  ;;  %v4895_v60 = vmul.f32 %v8077_v7, %v4750_v31 }
 0x595   : > { %v4529_v61 = vpop.f32.mrb[60].mxu1 }
 0x596   : > { %v4997_v5 = vmax.f32 %v4965_v56, 0.0  ;;  %v4934_v36 = vadd.f32 %v8083_v2, %v4895_v60  ;;  %v4755_v16 = vadd.f32 %v7924_v34, %v4529_v61  ;;  %v4531_v18 = vpop.f32.mrb[61].mxu1  ;;  %v4858_v34 = vld [vmem:[%s6785_s13 + $0x78] sm:$0xff] }
 0x598   : > { %5029 = vst [vmem:[%s8095_s21 + $0x60] sm:$0xff] %v4997_v5  ;;  %v4966_v39 = vadd.f32 %v4934_v36, %v4856_v41  ;;  %v4896_v27 = vmul.f32 %v8077_v7, %v4755_v16 }
 0x599   : > { %v4534_v51 = vpop.f32.mrb[62].mxu1 }
 0x59a   : > { %v4998_v33 = vmax.f32 %v4966_v39, 0.0  ;;  %v4935_v43 = vadd.f32 %v8083_v2, %v4896_v27  ;;  %v4760_v52 = vadd.f32 %v7921_v23, %v4534_v51  ;;  %v4536_v29 = vpop.f32.mrb[63].mxu1  ;;  %v4859_v23 = vld [vmem:[%s6785_s13 + $0x80] sm:$0xff] }
 0x59c   : > { %5030 = vst [vmem:[%s8095_s21 + $0x68] sm:$0xff] %v4998_v33  ;;  %v4967_v63 = vadd.f32 %v4935_v43, %v4857_v13  ;;  %v4897_v11 = vmul.f32 %v8077_v7, %v4760_v52  ;;  %v4865_v52 = vld [vmem:[%s6785_s13 + $0xb0] sm:$0xff] }
 0x59d   : > { %v4539_v62 = vpop.f32.mrb[64].mxu1 }
 0x59e   : > { %v4999_v50 = vmax.f32 %v4967_v63, 0.0  ;;  %v4936_v1 = vadd.f32 %v8083_v2, %v4897_v11  ;;  %v4765_v4 = vadd.f32 %v7936_v6, %v4539_v62  ;;  %v4541_v20 = vpop.f32.mrb[65].mxu1  ;;  %v4860_v6 = vld [vmem:[%s6785_s13 + $0x88] sm:$0xff] }
 0x5a0   : > { %5031 = vst [vmem:[%s8095_s21 + $0x70] sm:$0xff] %v4999_v50  ;;  %v4968_v37 = vadd.f32 %v4936_v1, %v4858_v34  ;;  %v4898_v32 = vmul.f32 %v8077_v7, %v4765_v4 }
 0x5a1   : > { %v4544_v0 = vpop.f32.mrb[66].mxu1 }
 0x5a2   : > { %v5000_v10 = vmax.f32 %v4968_v37, 0.0  ;;  %v4937_v21 = vadd.f32 %v8083_v2, %v4898_v32  ;;  %v4770_v15 = vadd.f32 %v7933_v47, %v4544_v0  ;;  %v4546_v45 = vpop.f32.mrb[67].mxu1  ;;  %v4861_v47 = vld [vmem:[%s6785_s13 + $0x90] sm:$0xff] }
 0x5a4   : > { %5032 = vst [vmem:[%s8095_s21 + $0x78] sm:$0xff] %v5000_v10  ;;  %v4969_v59 = vadd.f32 %v4937_v21, %v4859_v23  ;;  %v4899_v17 = vmul.f32 %v8077_v7, %v4770_v15 }
 0x5a5   : > { %v4549_v38 = vpop.f32.mrb[68].mxu1 }
 0x5a6   : > { %v5001_v40 = vmax.f32 %v4969_v59, 0.0  ;;  %v4938_v53 = vadd.f32 %v8083_v2, %v4899_v17  ;;  %v4775_v35 = vadd.f32 %v7948_v8, %v4549_v38  ;;  %v4551_v48 = vpop.f32.mrb[69].mxu1  ;;  %v4862_v8 = vld [vmem:[%s6785_s13 + $0x98] sm:$0xff] }
 0x5a8   : > { %5033 = vst [vmem:[%s8095_s21 + $0x80] sm:$0xff] %v5001_v40  ;;  %v4970_v55 = vadd.f32 %v4938_v53, %v4860_v6  ;;  %v4900_v3 = vmul.f32 %v8077_v7, %v4775_v35 }
 0x5a9   : > { %v4554_v46 = vpop.f32.mrb[70].mxu1 }
 0x5aa   : > { %v5002_v12 = vmax.f32 %v4970_v55, 0.0  ;;  %v4939_v42 = vadd.f32 %v8083_v2, %v4900_v3  ;;  %v4780_v49 = vadd.f32 %v7945_v24, %v4554_v46  ;;  %v4556_v9 = vpop.f32.mrb[71].mxu1  ;;  %v4863_v24 = vld [vmem:[%s6785_s13 + $0xa0] sm:$0xff] }
 0x5ac   : > { %5034 = vst [vmem:[%s8095_s21 + $0x88] sm:$0xff] %v5002_v12  ;;  %v4971_v30 = vadd.f32 %v4939_v42, %v4861_v47  ;;  %v4901_v58 = vmul.f32 %v8077_v7, %v4780_v49  ;;  %v4868_v49 = vld [vmem:[%s6785_s13 + $0xc8] sm:$0xff] }
 0x5ad   : > { %v4559_v57 = vpop.f32.mrb[72].mxu1 }
 0x5ae   : > { %v5003_v19 = vmax.f32 %v4971_v30, 0.0  ;;  %v4940_v14 = vadd.f32 %v8083_v2, %v4901_v58  ;;  %v4785_v44 = vadd.f32 %v7960_v25, %v4559_v57  ;;  %v4561_v31 = vpop.f32.mrb[73].mxu1  ;;  %v4864_v25 = vld [vmem:[%s6785_s13 + $0xa8] sm:$0xff] }
 0x5b0   : > { %5035 = vst [vmem:[%s8095_s21 + $0x90] sm:$0xff] %v5003_v19  ;;  %v4972_v28 = vadd.f32 %v4940_v14, %v4862_v8  ;;  %v4902_v56 = vmul.f32 %v8077_v7, %v4785_v44  ;;  %v4867_v8 = vld [vmem:[%s6785_s13 + $0xc0] sm:$0xff] }
 0x5b1   : > { %v4564_v60 = vpop.f32.mrb[74].mxu1 }
 0x5b2   : > { %v5004_v41 = vmax.f32 %v4972_v28, 0.0  ;;  %v4941_v61 = vadd.f32 %v8083_v2, %v4902_v56  ;;  %v4790_v5 = vadd.f32 %v7957_v22, %v4564_v60  ;;  %v4566_v36 = vpop.f32.mrb[75].mxu1 }
 0x5b3   : > { %v4869_v36 = vld [vmem:[%s6785_s13 + $0xd0] sm:$0xff] }
 0x5b4   : > { %5036 = vst [vmem:[%s8095_s21 + $0x98] sm:$0xff] %v5004_v41  ;;  %v4973_v16 = vadd.f32 %v4941_v61, %v4863_v24  ;;  %v4903_v18 = vmul.f32 %v8077_v7, %v4790_v5  ;;  %v4870_v24 = vld [vmem:[%s6785_s13 + $0xd8] sm:$0xff] }
 0x5b5   : > { %v4569_v39 = vpop.f32.mrb[76].mxu1 }
 0x5b6   : > { %v5005_v27 = vmax.f32 %v4973_v16, 0.0  ;;  %v4942_v13 = vadd.f32 %v8083_v2, %v4903_v18  ;;  %v4795_v51 = vadd.f32 %v7972_v26, %v4569_v39  ;;  %v4571_v33 = vpop.f32.mrb[77].mxu1  ;;  %v4866_v26 = vld [vmem:[%s6785_s13 + $0xb8] sm:$0xff] }
 0x5b8   : > { %5037 = vst [vmem:[%s8095_s21 + $0xa0] sm:$0xff] %v5005_v27  ;;  %v4974_v43 = vadd.f32 %v4942_v13, %v4864_v25  ;;  %v4904_v22 = vmul.f32 %v8077_v7, %v4795_v51 }
 0x5b9   : > { %v4574_v29 = vpop.f32.mrb[78].mxu1 }
 0x5ba   : > { %v5006_v63 = vmax.f32 %v4974_v43, 0.0  ;;  %v4943_v11 = vadd.f32 %v8083_v2, %v4904_v22  ;;  %v4800_v34 = vadd.f32 %v7969_v54, %v4574_v29  ;;  %v4576_v62 = vpop.f32.mrb[79].mxu1  ;;  %v4872_v43 = vld [vmem:[%s6785_s13 + $0xe8] sm:$0xff] }
 0x5bc   : > { %5038 = vst [vmem:[%s8095_s21 + $0xa8] sm:$0xff] %v5006_v63  ;;  %v4975_v50 = vadd.f32 %v4943_v11, %v4865_v52  ;;  %v4905_v1 = vmul.f32 %v8077_v7, %v4800_v34  ;;  %v4871_v11 = vld [vmem:[%s6785_s13 + $0xe0] sm:$0xff] }
 0x5bd   : > { %v4579_v4 = vpop.f32.mrb[80].mxu1 }
 0x5be   : > { %v5007_v20 = vmax.f32 %v4975_v50, 0.0  ;;  %v4944_v37 = vadd.f32 %v8083_v2, %v4905_v1  ;;  %v4581_v32 = vpop.f32.mrb[81].mxu1 }
 0x5bf   : > { %v4874_v32 = vld [vmem:[%s6785_s13 + $0xf8] sm:$0xff] }
 0x5c0   : > { %5039 = vst [vmem:[%s8095_s21 + $0xb0] sm:$0xff] %v5007_v20  ;;  %v4976_v23 = vadd.f32 %v4944_v37, %v4866_v26 }
 0x5c1   : > { %v4584_v0 = vpop.f32.mrb[82].mxu1 }
 0x5c2   : > { %v5008_v10 = vmax.f32 %v4976_v23, 0.0  ;;  %v4586_v21 = vpop.f32.mrb[83].mxu1 }
 0x5c3   : > { %v4873_v21 = vld [vmem:[%s6785_s13 + $0xf0] sm:$0xff]  ;;  %s6476_s13 = scalar_lea.vmem %s8245_s22, 4096 }
 0x5c4   : > { %5040 = vst [vmem:[%s8095_s21 + $0xb8] sm:$0xff] %v5008_v10  ;;  %p6477_p11 = scmp.ne.s32.totalorder %s8245_s22, %s6476_s13  ;;  %p6484_p9 = scmp.lt.s32.totalorder %s6482_s10, %s6476_s13 }
 0x5c5   : > { %v4589_v15 = vpop.f32.mrb[84].mxu1 }
 0x5c6   : > { %v4591_v45 = vpop.f32.mrb[85].mxu1  ;;  %p6478_p2 = pnand %p6477_p11, %p8380_p0  ;;  %p6485_p12 = por %p6484_p9, %p6483_p7 }
 0x5c8   : > { %p6479_p3 = pneg %p6478_p2 }
 0x5c9   : > { %v4594_v54 = vpop.f32.mrb[86].mxu1 }
 0x5ca   : > { %v4596_v59 = vpop.f32.mrb[87].mxu1  ;;  %p6486_p1 = pnand %p6485_p12, %p6479_p3 }
 0x5cd   : > { %v4599_v17 = vpop.f32.mrb[88].mxu1 }
 0x5ce   : > { %v4601_v6 = vpop.f32.mrb[89].mxu1 }
 0x5d1   : > { %v4604_v38 = vpop.f32.mrb[90].mxu1 }
 0x5d2   : > { %v4606_v40 = vpop.f32.mrb[91].mxu1 }
 0x5d5   : > { %v4609_v53 = vpop.f32.mrb[92].mxu1 }
 0x5d6   : > { %v4611_v35 = vpop.f32.mrb[93].mxu1 }
 0x5d9   : > { %v4614_v48 = vpop.f32.mrb[94].mxu1 }
 0x5da   : > { %v4616_v55 = vpop.f32.mrb[95].mxu1 }
 0x5dd   : > { %v5425_v3 = vpop.f32.mrb[96].mxu1 }
 0x5de   : > { %v4810_v47 = vadd.f32 %v5425_v3, %v4584_v0  ;;  %v4804_v46 = vpop.f32.mrb[97].mxu1 }
 0x5df   : > { %v4805_v12 = vadd.f32 %v4804_v46, %v4579_v4 }
 0x5e0   : > { %v4907_v42 = vmul.f32 %v8077_v7, %v4810_v47 }
 0x5e1   : > { %v4906_v9 = vmul.f32 %v8077_v7, %v4805_v12  ;;  %v5428_v30 = vpop.f32.mrb[98].mxu1 }
 0x5e2   : > { %v4946_v58 = vadd.f32 %v8083_v2, %v4907_v42  ;;  %v4820_v57 = vadd.f32 %v5428_v30, %v4594_v54  ;;  %v4814_v19 = vpop.f32.mrb[99].mxu1 }
 0x5e3   : > { %v4945_v14 = vadd.f32 %v8083_v2, %v4906_v9  ;;  %v4815_v44 = vadd.f32 %v4814_v19, %v4589_v15 }
 0x5e4   : > { %v4978_v31 = vadd.f32 %v4946_v58, %v4868_v49  ;;  %v4909_v28 = vmul.f32 %v8077_v7, %v4820_v57 }
 0x5e5   : > { %v4977_v56 = vadd.f32 %v4945_v14, %v4867_v8  ;;  %v4908_v60 = vmul.f32 %v8077_v7, %v4815_v44  ;;  %v5431_v41 = vpop.f32.mrb[100].mxu1 }
 0x5e6   : > { %v5010_v61 = vmax.f32 %v4978_v31, 0.0  ;;  %v4948_v5 = vadd.f32 %v8083_v2, %v4909_v28  ;;  %v4830_v16 = vadd.f32 %v5431_v41, %v4604_v38  ;;  %v4824_v18 = vpop.f32.mrb[101].mxu1 }
 0x5e7   : > { %v5009_v25 = vmax.f32 %v4977_v56, 0.0  ;;  %v4947_v39 = vadd.f32 %v8083_v2, %v4908_v60  ;;  %v4825_v27 = vadd.f32 %v4824_v18, %v4599_v17 }
 0x5e8   : > { %5042 = vst [vmem:[%s8095_s21 + $0xc8] sm:$0xff] %v5010_v61  ;;  %v4980_v13 = vadd.f32 %v4948_v5, %v4870_v24  ;;  %v4911_v51 = vmul.f32 %v8077_v7, %v4830_v16 }
 0x5e9   : > { %5041 = vst [vmem:[%s8095_s21 + $0xc0] sm:$0xff] %v5009_v25  ;;  %v4979_v33 = vadd.f32 %v4947_v39, %v4869_v36  ;;  %v4910_v22 = vmul.f32 %v8077_v7, %v4825_v27  ;;  %v5434_v52 = vpop.f32.mrb[102].mxu1 }
 0x5ea   : > { %v5012_v29 = vmax.f32 %v4980_v13, 0.0  ;;  %v4950_v63 = vadd.f32 %v8083_v2, %v4911_v51  ;;  %v4840_v34 = vadd.f32 %v5434_v52, %v4614_v48  ;;  %v4834_v62 = vpop.f32.mrb[103].mxu1 }
 0x5eb   : > { %v5011_v50 = vmax.f32 %v4979_v33, 0.0  ;;  %v4949_v1 = vadd.f32 %v8083_v2, %v4910_v22  ;;  %v4835_v26 = vadd.f32 %v4834_v62, %v4609_v53 }
 0x5ec   : > { %5044 = vst [vmem:[%s8095_s21 + $0xd8] sm:$0xff] %v5012_v29  ;;  %v4982_v4 = vadd.f32 %v4950_v63, %v4872_v43  ;;  %v4913_v20 = vmul.f32 %v8077_v7, %v4840_v34 }
 0x5ed   : > { %5043 = vst [vmem:[%s8095_s21 + $0xd0] sm:$0xff] %v5011_v50  ;;  %v4981_v37 = vadd.f32 %v4949_v1, %v4871_v11  ;;  %v4912_v23 = vmul.f32 %v8077_v7, %v4835_v26 }
 0x5ee   : > { %v5014_v0 = vmax.f32 %v4982_v4, 0.0  ;;  %v4952_v10 = vadd.f32 %v8083_v2, %v4913_v20 }
 0x5ef   : > { %v5013_v15 = vmax.f32 %v4981_v37, 0.0  ;;  %v4951_v45 = vadd.f32 %v8083_v2, %v4912_v23 }
 0x5f0   : > { %5046 = vst [vmem:[%s8095_s21 + $0xe8] sm:$0xff] %v5014_v0  ;;  %v4984_v54 = vadd.f32 %v4952_v10, %v4874_v32 }
 0x5f1   : > { %5045 = vst [vmem:[%s8095_s21 + $0xe0] sm:$0xff] %v5013_v15  ;;  %v4983_v59 = vadd.f32 %v4951_v45, %v4873_v21 }
 0x5f2   : > { %v5016_v17 = vmax.f32 %v4984_v54, 0.0 }
 0x5f3   : > { %v5015_v7 = vmax.f32 %v4983_v59, 0.0 }
 0x5f4   : > { %5048 = vst [vmem:[%s8095_s21 + $0xf8] sm:$0xff] %v5016_v17 }
 0x5f5   : > { %5047 = vst [vmem:[%s8095_s21 + $0xf0] sm:$0xff] %v5015_v7 }
 0x5f6   : > { %6489 = shalt.err (!%p6486_p1)
}
 0x5f7   : > { %s6490_s15 = scalar_lea.hbm %s8243_s9, 4096  ;;  %s6494_s21 = scalar_lea.hbm %s8298_s7, 8192 }
 0x5f8   : > { %p6491_p13 = scmp.ne.s32.totalorder %s8243_s9, %s6490_s15  ;;  %p6495_p4 = scmp.lt.u32.totalorder %s8243_s9, %s8298_s7 }
 0x5f9   : > { %p6496_p5 = scmp.lt.u32.totalorder %s6494_s21, %s6490_s15  ;;  %p6498_p11 = scmp.lt.u32.totalorder %s6490_s15, %s8243_s9 }
 0x5fa   : > { %p6492_p6 = pnand %p6491_p13, %p8380_p0 }
 0x5fb   : > { %p6497_p8 = por %p6496_p5, %p6495_p4 }
 0x5fc   : > { %p6493_p10 = pneg %p6492_p6 }
 0x5fd   : > { %p6499_p2 = por %p6498_p11, %p6497_p8 }
 0x5ff   : > { %p6500_p3 = pnand %p6499_p2, %p6493_p10 }
 0x601   : > { %6503 = shalt.err (!%p6500_p3)
}
 0x602   : > { %s6556_s30 = smov 128   ;;  %s6557_s13 = smov 8  }
 0x603   : > { %6293 = dma.vmem_to_hbm [thread:$0]  (%p8380_p0), %s8245_s22, 4096, %s8243_s9, %s5050_s28, %s6556_s30, %s6556_s30, %s6557_s13  }
 0x604 PF: > { %s5078_s29 = sand.u32 1, %s6534_s24   ;;  %p8381_p7 = scmp.ne.s32.totalorder %s8335_s8, 0 }
 0x605   : > { %p8382_p9 = scmp.ge.s32.totalorder %s6546_s27, 2  ;;  %s5079_s11 = scalar_lea.sflag [#allocation6], %s5078_s29 }
 0x607   : > { %p6307_p12 = pnand %p8382_p9, %p8381_p7 }
 0x609   : > { %6529 = dma.done.wait (!%p6307_p12), %s5079_s11, 4096  }
 0x60a   : > { %6531 = vsyncadd (!%p6307_p12), %s5079_s11, 4294963200  ;;  %p21_p1 = scmp.ge.s32.totalorder %s6714_s12, 4   ;;  %s8383_s24 = smov %s6538_s25 }
 0x60b   : > { %s8384_s25 = smov %s6542_s26  ;;  %s8385_s26 = smov %s6730_s17 }
 0x60c   : > { %s8386_s27 = smov %s6714_s12  ;;  %23 = sbr.rel (!%p21_p1) target bundleno = 6 (0x6), region = 104 }
 0x613   :  { %5084 = vsyncpa [#allocation5], 1 }
 0x614   :  { %5086 = vsyncpa [#allocation5 + $0x1], 1 }
 0x615   :  { %5087 = vsyncpa [#allocation8], 1 }
 0x616   :  { %5088 = vsyncpa [#allocation6], 1 }
 0x617   :  { %5090 = vsyncpa [#allocation6 + $0x1], 1 }

</bundles_post_ra>
